<compile_context>
chip_gen: v7x
topology: tpu7x:2x2x1
jax: 0.10.0
libtpu: 0.0.40
codegen_flags: <defaults>
</compile_context>

<pallas_src>
import jax
import jax.numpy as jnp
from jax.experimental import pallas as pl
from jax.experimental.pallas import tpu as pltpu

_EPS = 1e-5          # PyTorch BatchNorm2d default
_SLOPE = 0.2         # LeakyReLU negative slope
_VMEM_LIMIT = 32 * 1024 * 1024   # safe on v5e/v6e (128 MiB) and v7x (64 MiB)


# ----------------------------------------------------------------------------
# helpers
# ----------------------------------------------------------------------------
def _round_up(x, m):
    return (x + m - 1) // m * m


def _cdiv(a, b):
    return -(-a // b)


def _pad2d(a, rows, cols):
    r, c = a.shape
    if r == rows and c == cols:
        return a
    return jnp.pad(a, ((0, rows - r), (0, cols - c)))


def _choose_tm(M, tm_max):
    """Pick the M tile. Aim for >=2 tiles (v7x has 2 TCs over 'parallel' axes)."""
    m8 = _round_up(M, 8)
    tm = min(tm_max, m8)
    if _cdiv(m8, tm) < 2 and m8 >= 16:
        tm = _round_up(_cdiv(m8, 2), 8)
    m_pad = _round_up(m8, tm)
    return tm, m_pad


def _im2col(x, kh, kw, stride, pad):
    """x: (N, H, W, C) bf16 -> (N*OH*OW, kh*kw*C), feature order (kh, kw, c).

    XLA fuses the preceding BN/LeakyReLU elementwise into this gather.
    """
    # TODO(synk): fold the 16 taps into the conv kernel's K axis (in-kernel
    # gather via manual DMA / pl.ds on the padded NHWC slab) to avoid writing
    # the 4x-expanded im2col matrix to HBM; kept as XLA glue for robustness.
    if pad > 0:
        x = jnp.pad(x, ((0, 0), (pad, pad), (pad, pad), (0, 0)))
    N, H, W, C = x.shape
    OH = (H - kh) // stride + 1
    OW = (W - kw) // stride + 1
    patches = [x[:, i:i + stride * OH:stride, j:j + stride * OW:stride, :]
               for i in range(kh) for j in range(kw)]
    cols = jnp.concatenate(patches, axis=-1)            # (N, OH, OW, kh*kw*C)
    return cols.reshape(N * OH * OW, kh * kw * C), (N, OH, OW)


def _conv_weight_matrix(w):
    """PyTorch conv weight (CO, CI, KH, KW) -> (KH*KW*CI, CO), im2col order."""
    CO, CI, KH, KW = w.shape
    return jnp.transpose(w, (2, 3, 1, 0)).reshape(KH * KW * CI, CO)


# ----------------------------------------------------------------------------
# conv matmul kernel: single resident K block, fused epilogue
# ----------------------------------------------------------------------------
def _make_conv_kernel(*, fuse_leaky, emit_stats):
    def epilogue(y, o_ref, stats_ref):
        if emit_stats:
            # stats from the f32 accumulation, before the bf16 cast; padded M
            # rows are exactly zero (zero-padded x), so they contribute nothing.
            stats_ref[0:1, :] = jnp.sum(y, axis=0, keepdims=True)
            stats_ref[1:2, :] = jnp.sum(y * y, axis=0, keepdims=True)
        if fuse_leaky:
            y = jnp.where(y >= 0.0, y, _SLOPE * y)
        o_ref[...] = y.astype(o_ref.dtype)

    if emit_stats:
        def kernel(x_ref, w_ref, o_ref, stats_ref):
            y = jnp.dot(x_ref[...], w_ref[...],
                        preferred_element_type=jnp.float32)
            epilogue(y, o_ref, stats_ref)
    else:
        def kernel(x_ref, w_ref, o_ref):
            y = jnp.dot(x_ref[...], w_ref[...],
                        preferred_element_type=jnp.float32)
            epilogue(y, o_ref, None)
    return kernel


def fused_conv_matmul(cols, w2d, *, out_dtype, fuse_leaky=False,
                      emit_stats=False, tm_max=512):
    """Tiled bf16 MXU matmul cols (M,K) @ w2d (K,CO) with fused epilogue.

    K is a single block (constant index_map) => the weight stays resident in
    VMEM across all M tiles. Returns y_pad or (y_pad, per_tile_stats)."""
    M, K = cols.shape
    K2, CO = w2d.shape
    assert K == K2
    co_pad = _round_up(max(CO, 128), 128)                # lane-dense output
    k_pad = _round_up(K, 128)
    tm, m_pad = _choose_tm(M, tm_max)
    num_m = m_pad // tm

    x = _pad2d(cols, m_pad, k_pad).astype(jnp.bfloat16)
    w = _pad2d(w2d, k_pad, co_pad).astype(jnp.bfloat16)

    y_spec = pl.BlockSpec((tm, co_pad), lambda m: (m, 0))
    in_specs = [pl.BlockSpec((tm, k_pad), lambda m: (m, 0)),
                pl.BlockSpec((k_pad, co_pad), lambda m: (0, 0))]  # resident w
    if emit_stats:
        out_shape = (jax.ShapeDtypeStruct((m_pad, co_pad), out_dtype),
                     jax.ShapeDtypeStruct((num_m * 8, co_pad), jnp.float32))
        out_specs = (y_spec, pl.BlockSpec((8, co_pad), lambda m: (m, 0)))
    else:
        out_shape = jax.ShapeDtypeStruct((m_pad, co_pad), out_dtype)
        out_specs = y_spec

    return pl.pallas_call(
        _make_conv_kernel(fuse_leaky=fuse_leaky, emit_stats=emit_stats),
        out_shape=out_shape,
        grid=(num_m,),
        in_specs=in_specs,
        out_specs=out_specs,
        compiler_params=pltpu.CompilerParams(
            dimension_semantics=("parallel",),
            vmem_limit_bytes=_VMEM_LIMIT),
    )(x, w)


# ----------------------------------------------------------------------------
# BatchNorm finalize + apply (tiny XLA glue, fused into the next gather)
# ----------------------------------------------------------------------------
def _bn_leaky_glue(y_pad, stats, m_real, co, gamma, beta):
    """Fold per-tile (sum, sumsq) into scale/shift and apply BN + LeakyReLU.

    Matches PyTorch training-mode BatchNorm2d (batch stats, biased variance,
    eps=1e-5). Returns the normalized activation (m_real, co) in bf16."""
    co_pad = stats.shape[-1]
    st = stats.reshape(-1, 8, co_pad)
    s1 = jnp.sum(st[:, 0, :co], axis=0)
    s2 = jnp.sum(st[:, 1, :co], axis=0)
    inv_m = 1.0 / float(m_real)
    mean = s1 * inv_m
    # TODO(synk): E[x^2]-E[x]^2 in f32 can cancel for very large M; a Welford
    # merge with per-tile counts would be more robust.
    var = jnp.maximum(s2 * inv_m - mean * mean, 0.0)
    scale = gamma.astype(jnp.float32) * jax.lax.rsqrt(var + _EPS)
    shift = beta.astype(jnp.float32) - mean * scale
    y = y_pad[:m_real, :co].astype(jnp.float32) * scale + shift
    y = jnp.where(y >= 0.0, y, _SLOPE * y)
    return y.astype(jnp.bfloat16)


# ----------------------------------------------------------------------------
# conv blocks and the fused conv5 + Flatten + Linear tail
# ----------------------------------------------------------------------------
def _conv_block(x, w_torch, *, stride, pad, gamma=None, beta=None, tm_max=512):
    """Conv2d(4,4,stride,pad,bias=False) [+ BatchNorm2d] + LeakyReLU, NHWC bf16."""
    co = w_torch.shape[0]
    cols, (N, OH, OW) = _im2col(x, 4, 4, stride, pad)
    M = cols.shape[0]
    w2d = _conv_weight_matrix(w_torch)

    if gamma is not None:
        y_pad, stats = fused_conv_matmul(
            cols, w2d, out_dtype=jnp.bfloat16, emit_stats=True, tm_max=tm_max)
        y = _bn_leaky_glue(y_pad, stats, M, co, gamma, beta)
    else:
        y_pad = fused_conv_matmul(
            cols, w2d, out_dtype=jnp.bfloat16, fuse_leaky=True, tm_max=tm_max)
        y = y_pad[:M, :co]
    return y.reshape(N, OH, OW, co)


def conv5_fc_fused(x, w5_torch, wfc, bfc):
    """conv5 (4x4/s1/p0 -> 1x1) + Flatten + Linear(64, nz) in one Pallas kernel.
    x: (N, 4, 4, C) bf16 -> (N, nz) f32. K is a single resident block."""
    N, H, W, C = x.shape
    assert H == 4 and W == 4, "SDFEncoder expects 64x64 inputs (conv5 sees 4x4)"
    cols = x.reshape(N, H * W * C)     # im2col of a 4x4/s1/p0 conv == flatten
    M, K = cols.shape
    co5 = w5_torch.shape[0]
    nz = wfc.shape[0]
    co5_pad = _round_up(max(co5, 128), 128)
    nz_pad = _round_up(max(nz, 128), 128)
    k_pad = _round_up(K, 128)
    tm, m_pad = _choose_tm(M, 512)
    num_m = m_pad // tm

    xp = _pad2d(cols, m_pad, k_pad).astype(jnp.bfloat16)
    w5 = _pad2d(_conv_weight_matrix(w5_torch), k_pad, co5_pad).astype(jnp.bfloat16)
    # Linear weight (nz, 64) -> (64, nz); zero rows cover padded conv5 channels.
    # bf16 for the second dot (f32 x f32 hits the slow multi-pass MXU path).
    wfc2 = _pad2d(wfc.T, co5_pad, nz_pad).astype(jnp.bfloat16)
    bias = jnp.zeros((8, nz_pad), jnp.float32).at[0, :nz].set(
        bfc.astype(jnp.float32))

    def kernel(x_ref, w5_ref, wfc_ref, b_ref, o_ref):
        h = jnp.dot(x_ref[...], w5_ref[...],
                    preferred_element_type=jnp.float32)   # conv5, no activation
        y = jnp.dot(h.astype(jnp.bfloat16), wfc_ref[...],
                    preferred_element_type=jnp.float32)
        o_ref[...] = (y + b_ref[0:1, :]).astype(o_ref.dtype)

    out = pl.pallas_call(
        kernel,
        out_shape=jax.ShapeDtypeStruct((m_pad, nz_pad), jnp.float32),
        grid=(num_m,),
        in_specs=[pl.BlockSpec((tm, k_pad), lambda m: (m, 0)),
                  pl.BlockSpec((k_pad, co5_pad), lambda m: (0, 0)),
                  pl.BlockSpec((co5_pad, nz_pad), lambda m: (0, 0)),
                  pl.BlockSpec((8, nz_pad), lambda m: (0, 0))],
        out_specs=pl.BlockSpec((tm, nz_pad), lambda m: (m, 0)),
        compiler_params=pltpu.CompilerParams(
            dimension_semantics=("parallel",),
            vmem_limit_bytes=_VMEM_LIMIT),
    )(xp, w5, wfc2, bias)
    return out[:N, :nz]


# ----------------------------------------------------------------------------
# parameters and full forward pass
# ----------------------------------------------------------------------------
def init_params(key, nz=32, ndf=64, nc=2):
    ks = jax.random.split(key, 7)

    def conv_w(k, co, ci):
        return 0.02 * jax.random.normal(k, (co, ci, 4, 4), jnp.float32)

    return {
        "conv1": conv_w(ks[0], ndf, nc),
        "conv2": conv_w(ks[1], ndf * 2, ndf),
        "conv3": conv_w(ks[2], ndf * 4, ndf * 2),
        "conv4": conv_w(ks[3], ndf * 8, ndf * 4),
        "conv5": conv_w(ks[4], 64, ndf * 8),
        # BatchNorm2d affine params (PyTorch default init: gamma=1, beta=0)
        "bn2_g": jnp.ones((ndf * 2,), jnp.float32),
        "bn2_b": jnp.zeros((ndf * 2,), jnp.float32),
        "bn3_g": jnp.ones((ndf * 4,), jnp.float32),
        "bn3_b": jnp.zeros((ndf * 4,), jnp.float32),
        "bn4_g": jnp.ones((ndf * 8,), jnp.float32),
        "bn4_b": jnp.zeros((ndf * 8,), jnp.float32),
        "fc_w": 0.02 * jax.random.normal(ks[5], (nz, 64), jnp.float32),
        "fc_b": 0.02 * jax.random.normal(ks[6], (nz,), jnp.float32),
    }


def sdf_encoder_forward(params, x_nchw):
    """x_nchw: (N, 2, 64, 64) float32 (PyTorch NCHW) -> (N, nz) float32.

    Note: activations are bf16 between layers; tolerance vs an fp32 PyTorch
    reference must account for that. BatchNorm uses training-mode batch stats
    (same as a freshly constructed nn.Module in train mode)."""
    x = jnp.transpose(x_nchw, (0, 2, 3, 1)).astype(jnp.bfloat16)   # NHWC, bf16
    # conv1: trivial per-row FLOPs (K=32) -> large M tile to amortize overhead.
    x = _conv_block(x, params["conv1"], stride=2, pad=1, tm_max=2048)
    x = _conv_block(x, params["conv2"], stride=2, pad=1,
                    gamma=params["bn2_g"], beta=params["bn2_b"])
    x = _conv_block(x, params["conv3"], stride=2, pad=1,
                    gamma=params["bn3_g"], beta=params["bn3_b"])
    x = _conv_block(x, params["conv4"], stride=2, pad=1,
                    gamma=params["bn4_g"], beta=params["bn4_b"])
    # conv5 + Flatten + Linear(64, nz), fused (1x1 spatial => flatten == channels)
    return conv5_fc_fused(x, params["conv5"], params["fc_w"], params["fc_b"])


if __name__ == "__main__":
    # Small but forward-consistent shapes: spatial must be 64 so the final
    # 4x4/stride-1/pad-0 conv reduces to 1x1; nc=2 is fixed by the module.
    nz, ndf, nc = 32, 16, 2
    key = jax.random.PRNGKey(0)
    kp, kx = jax.random.split(key)
    params = init_params(kp, nz=nz, ndf=ndf, nc=nc)
    x = jax.random.normal(kx, (2, nc, 64, 64), jnp.float32)   # NCHW like PyTorch
    fwd = jax.jit(sdf_encoder_forward)
    out = jax.block_until_ready(fwd(params, x))
    assert out.shape == (2, nz) and out.dtype == jnp.float32
    print("KERNEL_OK")
</pallas_src>

<mosaic_0001>
module attributes {stable_mosaic.version = 11 : i64} {
  func.func @kernel(%arg0: i32, %arg1: memref<1024x128xbf16, #tpu.memory_space<vmem>>, %arg2: memref<128x128xbf16, #tpu.memory_space<vmem>>, %arg3: memref<1024x128xbf16, #tpu.memory_space<vmem>>) attributes {dimension_semantics = [#tpu.dimension_semantics<parallel>], iteration_bounds = array<i64: 2>, scalar_prefetch = 0 : i64, scratch_operands = 0 : i64, tpu.core_type = #tpu.core_type<tc>, window_params = [{transform_indices = @transform_0, window_bounds = array<i64: 1024, 128>}, {pipeline_mode = #tpu.pipeline_mode<synchronous>, transform_indices = @transform_1, window_bounds = array<i64: 128, 128>}, {transform_indices = @transform_2, window_bounds = array<i64: 1024, 128>}]} {
    %c0 = arith.constant 0 : index
    %c0_0 = arith.constant 0 : index
    %0 = vector.load %arg1[%c0, %c0_0] : memref<1024x128xbf16, #tpu.memory_space<vmem>>, vector<1024x128xbf16>
    %c0_1 = arith.constant 0 : index
    %c0_2 = arith.constant 0 : index
    %1 = vector.load %arg2[%c0_1, %c0_2] : memref<128x128xbf16, #tpu.memory_space<vmem>>, vector<128x128xbf16>
    %cst = arith.constant dense<0.000000e+00> : vector<1024x128xf32>
    %2 = tpu.matmul %0, %1, %cst {dimension_numbers = #tpu.dot_dimension_numbers<[1], [0], [0], [1], [0, 0, 1, 1], [], []>} : vector<1024x128xbf16>, vector<128x128xbf16>, vector<1024x128xf32> -> vector<1024x128xf32>
    %cst_3 = arith.constant 0.000000e+00 : f32
    %3 = vector.broadcast %cst_3 : f32 to vector<1024x128xf32>
    %4 = arith.cmpf oge, %2, %3 : vector<1024x128xf32>
    %cst_4 = arith.constant 2.000000e-01 : f32
    %5 = vector.broadcast %cst_4 : f32 to vector<1024x128xf32>
    %6 = arith.mulf %5, %2 : vector<1024x128xf32>
    %7 = arith.select %4, %2, %6 : vector<1024x128xi1>, vector<1024x128xf32>
    %8 = arith.truncf %7 : vector<1024x128xf32> to vector<1024x128xbf16>
    %c0_5 = arith.constant 0 : index
    %c0_6 = arith.constant 0 : index
    %9 = vector.load %arg3[%c0_5, %c0_6] : memref<1024x128xbf16, #tpu.memory_space<vmem>>, vector<1024x128xbf16>
    tpu.vector_store %arg3[%c0_5, %c0_6], %8 {strides = array<i32>} : memref<1024x128xbf16, #tpu.memory_space<vmem>>, vector<1024x128xbf16>,
    return
  }
  func.func @transform_0(%arg0: i32) -> (i32, i32) {
    %c0_i32 = arith.constant 0 : i32
    %c0_i32_0 = arith.constant 0 : i32
    return %arg0, %c0_i32 : i32, i32
  }
  func.func @transform_1(%arg0: i32) -> (i32, i32) {
    %c0_i32 = arith.constant 0 : i32
    %c0_i32_0 = arith.constant 0 : i32
    %c0_i32_1 = arith.constant 0 : i32
    return %c0_i32, %c0_i32_0 : i32, i32
  }
  func.func @transform_2(%arg0: i32) -> (i32, i32) {
    %c0_i32 = arith.constant 0 : i32
    %c0_i32_0 = arith.constant 0 : i32
    return %arg0, %c0_i32 : i32, i32
  }
}

module attributes {stable_mosaic.version = 11 : i64} {
  func.func @kernel(%arg0: i32, %arg1: memref<256x256xbf16, #tpu.memory_space<vmem>>, %arg2: memref<256x128xbf16, #tpu.memory_space<vmem>>, %arg3: memref<256x128xbf16, #tpu.memory_space<vmem>>, %arg4: memref<8x128xf32, #tpu.memory_space<vmem>>) attributes {dimension_semantics = [#tpu.dimension_semantics<parallel>], iteration_bounds = array<i64: 2>, scalar_prefetch = 0 : i64, scratch_operands = 0 : i64, tpu.core_type = #tpu.core_type<tc>, window_params = [{transform_indices = @transform_0, window_bounds = array<i64: 256, 256>}, {pipeline_mode = #tpu.pipeline_mode<synchronous>, transform_indices = @transform_1, window_bounds = array<i64: 256, 128>}, {transform_indices = @transform_2, window_bounds = array<i64: 256, 128>}, {transform_indices = @transform_3, window_bounds = array<i64: 8, 128>}]} {
    %c0 = arith.constant 0 : index
    %c0_0 = arith.constant 0 : index
    %0 = vector.load %arg1[%c0, %c0_0] : memref<256x256xbf16, #tpu.memory_space<vmem>>, vector<256x256xbf16>
    %c0_1 = arith.constant 0 : index
    %c0_2 = arith.constant 0 : index
    %1 = vector.load %arg2[%c0_1, %c0_2] : memref<256x128xbf16, #tpu.memory_space<vmem>>, vector<256x128xbf16>
    %cst = arith.constant dense<0.000000e+00> : vector<256x128xf32>
    %2 = tpu.matmul %0, %1, %cst {dimension_numbers = #tpu.dot_dimension_numbers<[1], [0], [0], [1], [0, 0, 1, 1], [], []>} : vector<256x256xbf16>, vector<256x128xbf16>, vector<256x128xf32> -> vector<256x128xf32>
    %cst_3 = arith.constant dense<0.000000e+00> : vector<128xf32>
    %3 = vector.multi_reduction <add>, %2, %cst_3 [0] : vector<256x128xf32> to vector<128xf32>
    %4 = vector.shape_cast %3 : vector<128xf32> to vector<1x128xf32>
    %c0_4 = arith.constant 0 : index
    %c0_5 = arith.constant 0 : index
    %5 = vector.load %arg4[%c0_4, %c0_5] : memref<8x128xf32, #tpu.memory_space<vmem>>, vector<1x128xf32>
    tpu.vector_store %arg4[%c0_4, %c0_5], %4 {strides = array<i32>} : memref<8x128xf32, #tpu.memory_space<vmem>>, vector<1x128xf32>,
    %6 = arith.mulf %2, %2 : vector<256x128xf32>
    %cst_6 = arith.constant dense<0.000000e+00> : vector<128xf32>
    %7 = vector.multi_reduction <add>, %6, %cst_6 [0] : vector<256x128xf32> to vector<128xf32>
    %8 = vector.shape_cast %7 : vector<128xf32> to vector<1x128xf32>
    %c1 = arith.constant 1 : index
    %c0_7 = arith.constant 0 : index
    %9 = vector.load %arg4[%c1, %c0_7] : memref<8x128xf32, #tpu.memory_space<vmem>>, vector<1x128xf32>
    tpu.vector_store %arg4[%c1, %c0_7], %8 {strides = array<i32>} : memref<8x128xf32, #tpu.memory_space<vmem>>, vector<1x128xf32>,
    %10 = arith.truncf %2 : vector<256x128xf32> to vector<256x128xbf16>
    %c0_8 = arith.constant 0 : index
    %c0_9 = arith.constant 0 : index
    %11 = vector.load %arg3[%c0_8, %c0_9] : memref<256x128xbf16, #tpu.memory_space<vmem>>, vector<256x128xbf16>
    tpu.vector_store %arg3[%c0_8, %c0_9], %10 {strides = array<i32>} : memref<256x128xbf16, #tpu.memory_space<vmem>>, vector<256x128xbf16>,
    return
  }
  func.func @transform_0(%arg0: i32) -> (i32, i32) {
    %c0_i32 = arith.constant 0 : i32
    %c0_i32_0 = arith.constant 0 : i32
    return %arg0, %c0_i32 : i32, i32
  }
  func.func @transform_1(%arg0: i32) -> (i32, i32) {
    %c0_i32 = arith.constant 0 : i32
    %c0_i32_0 = arith.constant 0 : i32
    %c0_i32_1 = arith.constant 0 : i32
    return %c0_i32, %c0_i32_0 : i32, i32
  }
  func.func @transform_2(%arg0: i32) -> (i32, i32) {
    %c0_i32 = arith.constant 0 : i32
    %c0_i32_0 = arith.constant 0 : i32
    return %arg0, %c0_i32 : i32, i32
  }
  func.func @transform_3(%arg0: i32) -> (i32, i32) {
    %c0_i32 = arith.constant 0 : i32
    %c0_i32_0 = arith.constant 0 : i32
    return %arg0, %c0_i32 : i32, i32
  }
}

module attributes {stable_mosaic.version = 11 : i64} {
  func.func @kernel(%arg0: i32, %arg1: memref<64x512xbf16, #tpu.memory_space<vmem>>, %arg2: memref<512x128xbf16, #tpu.memory_space<vmem>>, %arg3: memref<64x128xbf16, #tpu.memory_space<vmem>>, %arg4: memref<8x128xf32, #tpu.memory_space<vmem>>) attributes {dimension_semantics = [#tpu.dimension_semantics<parallel>], iteration_bounds = array<i64: 2>, scalar_prefetch = 0 : i64, scratch_operands = 0 : i64, tpu.core_type = #tpu.core_type<tc>, window_params = [{transform_indices = @transform_0, window_bounds = array<i64: 64, 512>}, {pipeline_mode = #tpu.pipeline_mode<synchronous>, transform_indices = @transform_1, window_bounds = array<i64: 512, 128>}, {transform_indices = @transform_2, window_bounds = array<i64: 64, 128>}, {transform_indices = @transform_3, window_bounds = array<i64: 8, 128>}]} {
    %c0 = arith.constant 0 : index
    %c0_0 = arith.constant 0 : index
    %0 = vector.load %arg1[%c0, %c0_0] : memref<64x512xbf16, #tpu.memory_space<vmem>>, vector<64x512xbf16>
    %c0_1 = arith.constant 0 : index
    %c0_2 = arith.constant 0 : index
    %1 = vector.load %arg2[%c0_1, %c0_2] : memref<512x128xbf16, #tpu.memory_space<vmem>>, vector<512x128xbf16>
    %cst = arith.constant dense<0.000000e+00> : vector<64x128xf32>
    %2 = tpu.matmul %0, %1, %cst {dimension_numbers = #tpu.dot_dimension_numbers<[1], [0], [0], [1], [0, 0, 1, 1], [], []>} : vector<64x512xbf16>, vector<512x128xbf16>, vector<64x128xf32> -> vector<64x128xf32>
    %cst_3 = arith.constant dense<0.000000e+00> : vector<128xf32>
    %3 = vector.multi_reduction <add>, %2, %cst_3 [0] : vector<64x128xf32> to vector<128xf32>
    %4 = vector.shape_cast %3 : vector<128xf32> to vector<1x128xf32>
    %c0_4 = arith.constant 0 : index
    %c0_5 = arith.constant 0 : index
    %5 = vector.load %arg4[%c0_4, %c0_5] : memref<8x128xf32, #tpu.memory_space<vmem>>, vector<1x128xf32>
    tpu.vector_store %arg4[%c0_4, %c0_5], %4 {strides = array<i32>} : memref<8x128xf32, #tpu.memory_space<vmem>>, vector<1x128xf32>,
    %6 = arith.mulf %2, %2 : vector<64x128xf32>
    %cst_6 = arith.constant dense<0.000000e+00> : vector<128xf32>
    %7 = vector.multi_reduction <add>, %6, %cst_6 [0] : vector<64x128xf32> to vector<128xf32>
    %8 = vector.shape_cast %7 : vector<128xf32> to vector<1x128xf32>
    %c1 = arith.constant 1 : index
    %c0_7 = arith.constant 0 : index
    %9 = vector.load %arg4[%c1, %c0_7] : memref<8x128xf32, #tpu.memory_space<vmem>>, vector<1x128xf32>
    tpu.vector_store %arg4[%c1, %c0_7], %8 {strides = array<i32>} : memref<8x128xf32, #tpu.memory_space<vmem>>, vector<1x128xf32>,
    %10 = arith.truncf %2 : vector<64x128xf32> to vector<64x128xbf16>
    %c0_8 = arith.constant 0 : index
    %c0_9 = arith.constant 0 : index
    %11 = vector.load %arg3[%c0_8, %c0_9] : memref<64x128xbf16, #tpu.memory_space<vmem>>, vector<64x128xbf16>
    tpu.vector_store %arg3[%c0_8, %c0_9], %10 {strides = array<i32>} : memref<64x128xbf16, #tpu.memory_space<vmem>>, vector<64x128xbf16>,
    return
  }
  func.func @transform_0(%arg0: i32) -> (i32, i32) {
    %c0_i32 = arith.constant 0 : i32
    %c0_i32_0 = arith.constant 0 : i32
    return %arg0, %c0_i32 : i32, i32
  }
  func.func @transform_1(%arg0: i32) -> (i32, i32) {
    %c0_i32 = arith.constant 0 : i32
    %c0_i32_0 = arith.constant 0 : i32
    %c0_i32_1 = arith.constant 0 : i32
    return %c0_i32, %c0_i32_0 : i32, i32
  }
  func.func @transform_2(%arg0: i32) -> (i32, i32) {
    %c0_i32 = arith.constant 0 : i32
    %c0_i32_0 = arith.constant 0 : i32
    return %arg0, %c0_i32 : i32, i32
  }
  func.func @transform_3(%arg0: i32) -> (i32, i32) {
    %c0_i32 = arith.constant 0 : i32
    %c0_i32_0 = arith.constant 0 : i32
    return %arg0, %c0_i32 : i32, i32
  }
}

module attributes {stable_mosaic.version = 11 : i64} {
  func.func @kernel(%arg0: i32, %arg1: memref<16x1024xbf16, #tpu.memory_space<vmem>>, %arg2: memref<1024x128xbf16, #tpu.memory_space<vmem>>, %arg3: memref<16x128xbf16, #tpu.memory_space<vmem>>, %arg4: memref<8x128xf32, #tpu.memory_space<vmem>>) attributes {dimension_semantics = [#tpu.dimension_semantics<parallel>], iteration_bounds = array<i64: 2>, scalar_prefetch = 0 : i64, scratch_operands = 0 : i64, tpu.core_type = #tpu.core_type<tc>, window_params = [{transform_indices = @transform_0, window_bounds = array<i64: 16, 1024>}, {pipeline_mode = #tpu.pipeline_mode<synchronous>, transform_indices = @transform_1, window_bounds = array<i64: 1024, 128>}, {transform_indices = @transform_2, window_bounds = array<i64: 16, 128>}, {transform_indices = @transform_3, window_bounds = array<i64: 8, 128>}]} {
    %c0 = arith.constant 0 : index
    %c0_0 = arith.constant 0 : index
    %0 = vector.load %arg1[%c0, %c0_0] : memref<16x1024xbf16, #tpu.memory_space<vmem>>, vector<16x1024xbf16>
    %c0_1 = arith.constant 0 : index
    %c0_2 = arith.constant 0 : index
    %1 = vector.load %arg2[%c0_1, %c0_2] : memref<1024x128xbf16, #tpu.memory_space<vmem>>, vector<1024x128xbf16>
    %cst = arith.constant dense<0.000000e+00> : vector<16x128xf32>
    %2 = tpu.matmul %0, %1, %cst {dimension_numbers = #tpu.dot_dimension_numbers<[1], [0], [0], [1], [0, 0, 1, 1], [], []>} : vector<16x1024xbf16>, vector<1024x128xbf16>, vector<16x128xf32> -> vector<16x128xf32>
    %cst_3 = arith.constant dense<0.000000e+00> : vector<128xf32>
    %3 = vector.multi_reduction <add>, %2, %cst_3 [0] : vector<16x128xf32> to vector<128xf32>
    %4 = vector.shape_cast %3 : vector<128xf32> to vector<1x128xf32>
    %c0_4 = arith.constant 0 : index
    %c0_5 = arith.constant 0 : index
    %5 = vector.load %arg4[%c0_4, %c0_5] : memref<8x128xf32, #tpu.memory_space<vmem>>, vector<1x128xf32>
    tpu.vector_store %arg4[%c0_4, %c0_5], %4 {strides = array<i32>} : memref<8x128xf32, #tpu.memory_space<vmem>>, vector<1x128xf32>,
    %6 = arith.mulf %2, %2 : vector<16x128xf32>
    %cst_6 = arith.constant dense<0.000000e+00> : vector<128xf32>
    %7 = vector.multi_reduction <add>, %6, %cst_6 [0] : vector<16x128xf32> to vector<128xf32>
    %8 = vector.shape_cast %7 : vector<128xf32> to vector<1x128xf32>
    %c1 = arith.constant 1 : index
    %c0_7 = arith.constant 0 : index
    %9 = vector.load %arg4[%c1, %c0_7] : memref<8x128xf32, #tpu.memory_space<vmem>>, vector<1x128xf32>
    tpu.vector_store %arg4[%c1, %c0_7], %8 {strides = array<i32>} : memref<8x128xf32, #tpu.memory_space<vmem>>, vector<1x128xf32>,
    %10 = arith.truncf %2 : vector<16x128xf32> to vector<16x128xbf16>
    %c0_8 = arith.constant 0 : index
    %c0_9 = arith.constant 0 : index
    %11 = vector.load %arg3[%c0_8, %c0_9] : memref<16x128xbf16, #tpu.memory_space<vmem>>, vector<16x128xbf16>
    tpu.vector_store %arg3[%c0_8, %c0_9], %10 {strides = array<i32>} : memref<16x128xbf16, #tpu.memory_space<vmem>>, vector<16x128xbf16>,
    return
  }
  func.func @transform_0(%arg0: i32) -> (i32, i32) {
    %c0_i32 = arith.constant 0 : i32
    %c0_i32_0 = arith.constant 0 : i32
    return %arg0, %c0_i32 : i32, i32
  }
  func.func @transform_1(%arg0: i32) -> (i32, i32) {
    %c0_i32 = arith.constant 0 : i32
    %c0_i32_0 = arith.constant 0 : i32
    %c0_i32_1 = arith.constant 0 : i32
    return %c0_i32, %c0_i32_0 : i32, i32
  }
  func.func @transform_2(%arg0: i32) -> (i32, i32) {
    %c0_i32 = arith.constant 0 : i32
    %c0_i32_0 = arith.constant 0 : i32
    return %arg0, %c0_i32 : i32, i32
  }
  func.func @transform_3(%arg0: i32) -> (i32, i32) {
    %c0_i32 = arith.constant 0 : i32
    %c0_i32_0 = arith.constant 0 : i32
    return %arg0, %c0_i32 : i32, i32
  }
}

module attributes {stable_mosaic.version = 11 : i64} {
  func.func @kernel(%arg0: i32, %arg1: memref<8x2048xbf16, #tpu.memory_space<vmem>>, %arg2: memref<2048x128xbf16, #tpu.memory_space<vmem>>, %arg3: memref<128x128xbf16, #tpu.memory_space<vmem>>, %arg4: memref<8x128xf32, #tpu.memory_space<vmem>>, %arg5: memref<8x128xf32, #tpu.memory_space<vmem>>) attributes {dimension_semantics = [#tpu.dimension_semantics<parallel>], iteration_bounds = array<i64: 1>, scalar_prefetch = 0 : i64, scratch_operands = 0 : i64, tpu.core_type = #tpu.core_type<tc>, window_params = [{transform_indices = @transform_0, window_bounds = array<i64: 8, 2048>}, {pipeline_mode = #tpu.pipeline_mode<synchronous>, transform_indices = @transform_1, window_bounds = array<i64: 2048, 128>}, {pipeline_mode = #tpu.pipeline_mode<synchronous>, transform_indices = @transform_2, window_bounds = array<i64: 128, 128>}, {pipeline_mode = #tpu.pipeline_mode<synchronous>, transform_indices = @transform_3, window_bounds = array<i64: 8, 128>}, {transform_indices = @transform_4, window_bounds = array<i64: 8, 128>}]} {
    %c0 = arith.constant 0 : index
    %c0_0 = arith.constant 0 : index
    %0 = vector.load %arg1[%c0, %c0_0] : memref<8x2048xbf16, #tpu.memory_space<vmem>>, vector<8x2048xbf16>
    %c0_1 = arith.constant 0 : index
    %c0_2 = arith.constant 0 : index
    %1 = vector.load %arg2[%c0_1, %c0_2] : memref<2048x128xbf16, #tpu.memory_space<vmem>>, vector<2048x128xbf16>
    %cst = arith.constant dense<0.000000e+00> : vector<8x128xf32>
    %2 = tpu.matmul %0, %1, %cst {dimension_numbers = #tpu.dot_dimension_numbers<[1], [0], [0], [1], [0, 0, 1, 1], [], []>} : vector<8x2048xbf16>, vector<2048x128xbf16>, vector<8x128xf32> -> vector<8x128xf32>
    %3 = arith.truncf %2 : vector<8x128xf32> to vector<8x128xbf16>
    %c0_3 = arith.constant 0 : index
    %c0_4 = arith.constant 0 : index
    %4 = vector.load %arg3[%c0_3, %c0_4] : memref<128x128xbf16, #tpu.memory_space<vmem>>, vector<128x128xbf16>
    %cst_5 = arith.constant dense<0.000000e+00> : vector<8x128xf32>
    %5 = tpu.matmul %3, %4, %cst_5 {dimension_numbers = #tpu.dot_dimension_numbers<[1], [0], [0], [1], [0, 0, 1, 1], [], []>} : vector<8x128xbf16>, vector<128x128xbf16>, vector<8x128xf32> -> vector<8x128xf32>
    %c0_6 = arith.constant 0 : index
    %c0_7 = arith.constant 0 : index
    %6 = vector.load %arg4[%c0_6, %c0_7] : memref<8x128xf32, #tpu.memory_space<vmem>>, vector<1x128xf32>
    %7 = vector.broadcast %6 : vector<1x128xf32> to vector<8x128xf32>
    %8 = arith.addf %5, %7 : vector<8x128xf32>
    %c0_8 = arith.constant 0 : index
    %c0_9 = arith.constant 0 : index
    %9 = vector.load %arg5[%c0_8, %c0_9] : memref<8x128xf32, #tpu.memory_space<vmem>>, vector<8x128xf32>
    tpu.vector_store %arg5[%c0_8, %c0_9], %8 {strides = array<i32>} : memref<8x128xf32, #tpu.memory_space<vmem>>, vector<8x128xf32>,
    return
  }
  func.func @transform_0(%arg0: i32) -> (i32, i32) {
    %c0_i32 = arith.constant 0 : i32
    %c0_i32_0 = arith.constant 0 : i32
    return %arg0, %c0_i32 : i32, i32
  }
  func.func @transform_1(%arg0: i32) -> (i32, i32) {
    %c0_i32 = arith.constant 0 : i32
    %c0_i32_0 = arith.constant 0 : i32
    %c0_i32_1 = arith.constant 0 : i32
    return %c0_i32, %c0_i32_0 : i32, i32
  }
  func.func @transform_2(%arg0: i32) -> (i32, i32) {
    %c0_i32 = arith.constant 0 : i32
    %c0_i32_0 = arith.constant 0 : i32
    %c0_i32_1 = arith.constant 0 : i32
    return %c0_i32, %c0_i32_0 : i32, i32
  }
  func.func @transform_3(%arg0: i32) -> (i32, i32) {
    %c0_i32 = arith.constant 0 : i32
    %c0_i32_0 = arith.constant 0 : i32
    %c0_i32_1 = arith.constant 0 : i32
    return %c0_i32, %c0_i32_0 : i32, i32
  }
  func.func @transform_4(%arg0: i32) -> (i32, i32) {
    %c0_i32 = arith.constant 0 : i32
    %c0_i32_0 = arith.constant 0 : i32
    return %arg0, %c0_i32 : i32, i32
  }
}

</mosaic_0001>

<bundles_post_ra>
// kernel: sdf_encoder_forward.5
= control target key start
LH: loop header
LB: loop body
LE: loop exit
PB: predicated region body
PF: predicated region fallthrough
CT: control target
= control target key end

     0   :  { %s3406_s9 = smov 0   ;;  %s3601_s0 = inlined_call_operand.vmem [shape: bf16[2048,128], index: 0, kind: input, shape index: {}]   ;;  %s3602_s1 = inlined_call_operand.vmem [shape: bf16[128,128], index: 1, kind: input, shape index: {}]   ;;  %s3603_s2 = inlined_call_operand.vmem [shape: bf16[2048,128], index: 2, kind: output, shape index: {}]  }
   0x1 LB: > { %s2349_s10 = sadd.s32 4294967295, %s3389_s9   ;;  %p2353_p0 = scmp.ge.s32.totalorder %s3389_s9, 1  ;;  %s3389_s9 = sphi %s3406_s9, %s12_s9  }
   0x2   : > { %p113_p1 = scmp.lt.s32.totalorder %s3389_s9, 3 }
   0x4   : > { %p114_p2 = pnand %p2353_p0, %p113_p1 }
   0x5   : > { %v3311_v0 = vld [vmem:[%s3602_s1] sm:$0xff] (!%p114_p2)   ;;  %s2354_s13 = sshll.u32 (!%p114_p2), %s2349_s10, 7  ;;  %v3312_v1 = vld [vmem:[%s3602_s1 + $0x8] sm:$0xff] (!%p114_p2)   ;;  %v3313_v2 = vld [vmem:[%s3602_s1 + $0x10] sm:$0xff] (!%p114_p2)  }
   0x6   : > { %117 = sbr.rel (%p114_p2) target bundleno = 381 (0x17d), region = 28  ;;  %p136_p3 = scmp.lt.s32.totalorder (!%p114_p2), %s2354_s13, 255  ;;  %3143 = vmatprep.subr.bf16.mxu0 (!%p114_p2), %v3311_v0  ;;  %3287 = vmatprep.subr.bf16.mxu1 (!%p114_p2), %v3311_v0  ;;  %v3314_v3 = vld [vmem:[%s3602_s1 + $0x18] sm:$0xff] (!%p114_p2)   ;;  %v3315_v6 = vld [vmem:[%s3602_s1 + $0x20] sm:$0xff] (!%p114_p2)   ;;  %v3316_v7 = vld [vmem:[%s3602_s1 + $0x28] sm:$0xff] (!%p114_p2)  }
   0x7   : > { %3144 = vmatpush3.bf16.msra.mxu0 (!%p114_p2), %v3311_v0  ;;  %3295 = vmatpush3.bf16.msra.mxu1 (!%p114_p2), %v3311_v0  ;;  %v3317_v8 = vld [vmem:[%s3602_s1 + $0x30] sm:$0xff] (!%p114_p2)   ;;  %v3318_v9 = vld [vmem:[%s3602_s1 + $0x38] sm:$0xff] (!%p114_p2)  }
   0x8   : > { %3145 = vmatprep.subr.bf16.mxu0 (!%p114_p2), %v3312_v1  ;;  %3288 = vmatprep.subr.bf16.mxu1 (!%p114_p2), %v3312_v1 }
   0xb   : > { %3146 = vmatpush3.bf16.msra.mxu0 (!%p114_p2), %v3312_v1  ;;  %3296 = vmatpush3.bf16.msra.mxu1 (!%p114_p2), %v3312_v1 }
   0xc   : > { %3147 = vmatprep.subr.bf16.mxu0 (!%p114_p2), %v3313_v2  ;;  %3289 = vmatprep.subr.bf16.mxu1 (!%p114_p2), %v3313_v2 }
   0xd   : > { %s3605_s13 = smov (!%p136_p3, %s2354_s13), 255 }
   0xe   : > { %s2355_s18 = sshll.u32 %s3605_s13, 2 }
   0xf   : > { %s3431_s21 = scalar_lea.vmem %s3601_s0, %s2355_s18  ;;  %3148 = vmatpush3.bf16.msra.mxu0 %v3313_v2  ;;  %3297 = vmatpush3.bf16.msra.mxu1 %v3313_v2  ;;  %s3517_s6 = scalar_lea.vmem %s3603_s2, %s2355_s18 }
  0x10   : > { %v3319_v4 = vld [vmem:[%s3431_s21] sm:$0xff]   ;;  %3149 = vmatprep.subr.bf16.mxu0 %v3314_v3  ;;  %3290 = vmatprep.subr.bf16.mxu1 %v3314_v3  ;;  %v3321_v10 = vld [vmem:[%s3431_s21 + $0x8] sm:$0xff]   ;;  %v3323_v12 = vld [vmem:[%s3431_s21 + $0x10] sm:$0xff]  }
  0x11   : > { %v3320_v5 = vld [vmem:[%s3431_s21 + $0x100] sm:$0xff]   ;;  %3159 = vmatprep.mubr.bf16.mxu0 %v3319_v4  ;;  %v3322_v11 = vld [vmem:[%s3431_s21 + $0x108] sm:$0xff]   ;;  %v3324_v13 = vld [vmem:[%s3431_s21 + $0x110] sm:$0xff]  }
  0x12   : > { %3223 = vmatprep.mubr.bf16.mxu1 %v3320_v5  ;;  %v3325_v14 = vld [vmem:[%s3431_s21 + $0x18] sm:$0xff]   ;;  %v3327_v16 = vld [vmem:[%s3431_s21 + $0x20] sm:$0xff]   ;;  %v3329_v18 = vld [vmem:[%s3431_s21 + $0x28] sm:$0xff]  }
  0x13   : > { %3150 = vmatpush3.bf16.msra.mxu0 %v3314_v3  ;;  %3298 = vmatpush3.bf16.msra.mxu1 %v3314_v3  ;;  %v3326_v15 = vld [vmem:[%s3431_s21 + $0x118] sm:$0xff]   ;;  %v3328_v17 = vld [vmem:[%s3431_s21 + $0x120] sm:$0xff]   ;;  %v3330_v19 = vld [vmem:[%s3431_s21 + $0x128] sm:$0xff]  }
  0x14   : > { %3151 = vmatprep.subr.bf16.mxu0 %v3315_v6  ;;  %3291 = vmatprep.subr.bf16.mxu1 %v3315_v6  ;;  %v3331_v20 = vld [vmem:[%s3431_s21 + $0x30] sm:$0xff]   ;;  %v3333_v22 = vld [vmem:[%s3431_s21 + $0x38] sm:$0xff]   ;;  %v3335_v24 = vld [vmem:[%s3431_s21 + $0x40] sm:$0xff]  }
  0x15   : > { %v3332_v21 = vld [vmem:[%s3431_s21 + $0x130] sm:$0xff]   ;;  %v3334_v23 = vld [vmem:[%s3431_s21 + $0x138] sm:$0xff]   ;;  %v3336_v25 = vld [vmem:[%s3431_s21 + $0x140] sm:$0xff]  }
  0x16   : > { %v3337_v26 = vld [vmem:[%s3431_s21 + $0x48] sm:$0xff]   ;;  %v3339_v28 = vld [vmem:[%s3431_s21 + $0x50] sm:$0xff]   ;;  %v3341_v30 = vld [vmem:[%s3431_s21 + $0x58] sm:$0xff]  }
  0x17   : > { %3152 = vmatpush3.bf16.msra.mxu0 %v3315_v6  ;;  %3299 = vmatpush3.bf16.msra.mxu1 %v3315_v6  ;;  %v3338_v27 = vld [vmem:[%s3431_s21 + $0x148] sm:$0xff]   ;;  %v3340_v29 = vld [vmem:[%s3431_s21 + $0x150] sm:$0xff]   ;;  %v3342_v31 = vld [vmem:[%s3431_s21 + $0x158] sm:$0xff]  }
  0x18   : > { %3153 = vmatprep.subr.bf16.mxu0 %v3316_v7  ;;  %3292 = vmatprep.subr.bf16.mxu1 %v3316_v7  ;;  %v3343_v32 = vld [vmem:[%s3431_s21 + $0x60] sm:$0xff]   ;;  %v3345_v34 = vld [vmem:[%s3431_s21 + $0x68] sm:$0xff]   ;;  %v3347_v36 = vld [vmem:[%s3431_s21 + $0x70] sm:$0xff]  }
  0x19   : > { %v3344_v33 = vld [vmem:[%s3431_s21 + $0x160] sm:$0xff]   ;;  %v3346_v35 = vld [vmem:[%s3431_s21 + $0x168] sm:$0xff]   ;;  %v3348_v37 = vld [vmem:[%s3431_s21 + $0x170] sm:$0xff]  }
  0x1a   : > { %v3349_v38 = vld [vmem:[%s3431_s21 + $0x78] sm:$0xff]   ;;  %v3351_v40 = vld [vmem:[%s3431_s21 + $0x80] sm:$0xff]   ;;  %v3353_v42 = vld [vmem:[%s3431_s21 + $0x88] sm:$0xff]  }
  0x1b   : > { %3154 = vmatpush3.bf16.msra.mxu0 %v3316_v7  ;;  %3300 = vmatpush3.bf16.msra.mxu1 %v3316_v7  ;;  %v3350_v39 = vld [vmem:[%s3431_s21 + $0x178] sm:$0xff]   ;;  %v3352_v41 = vld [vmem:[%s3431_s21 + $0x180] sm:$0xff]   ;;  %v3354_v43 = vld [vmem:[%s3431_s21 + $0x188] sm:$0xff]  }
  0x1c   : > { %3155 = vmatprep.subr.bf16.mxu0 %v3317_v8  ;;  %3293 = vmatprep.subr.bf16.mxu1 %v3317_v8  ;;  %v3355_v44 = vld [vmem:[%s3431_s21 + $0x90] sm:$0xff]   ;;  %v3357_v46 = vld [vmem:[%s3431_s21 + $0x98] sm:$0xff]   ;;  %v3359_v48 = vld [vmem:[%s3431_s21 + $0xa0] sm:$0xff]  }
  0x1d   : > { %v3356_v45 = vld [vmem:[%s3431_s21 + $0x190] sm:$0xff]   ;;  %v3358_v47 = vld [vmem:[%s3431_s21 + $0x198] sm:$0xff]   ;;  %v3360_v49 = vld [vmem:[%s3431_s21 + $0x1a0] sm:$0xff]  }
  0x1e   : > { %v3361_v50 = vld [vmem:[%s3431_s21 + $0xa8] sm:$0xff]   ;;  %v3363_v52 = vld [vmem:[%s3431_s21 + $0xb0] sm:$0xff]   ;;  %v3365_v54 = vld [vmem:[%s3431_s21 + $0xb8] sm:$0xff]  }
  0x1f   : > { %3156 = vmatpush3.bf16.msra.mxu0 %v3317_v8  ;;  %3301 = vmatpush3.bf16.msra.mxu1 %v3317_v8  ;;  %v3362_v51 = vld [vmem:[%s3431_s21 + $0x1a8] sm:$0xff]   ;;  %v3364_v53 = vld [vmem:[%s3431_s21 + $0x1b0] sm:$0xff]   ;;  %v3366_v55 = vld [vmem:[%s3431_s21 + $0x1b8] sm:$0xff]  }
  0x20   : > { %3157 = vmatprep.subr.bf16.mxu0 %v3318_v9  ;;  %3294 = vmatprep.subr.bf16.mxu1 %v3318_v9  ;;  %v3367_v56 = vld [vmem:[%s3431_s21 + $0xc0] sm:$0xff]   ;;  %v3369_v58 = vld [vmem:[%s3431_s21 + $0xc8] sm:$0xff]   ;;  %v3371_v60 = vld [vmem:[%s3431_s21 + $0xd0] sm:$0xff]  }
  0x21   : > { %v3368_v57 = vld [vmem:[%s3431_s21 + $0x1c0] sm:$0xff]   ;;  %v3370_v59 = vld [vmem:[%s3431_s21 + $0x1c8] sm:$0xff]   ;;  %v3372_v61 = vld [vmem:[%s3431_s21 + $0x1d0] sm:$0xff]  }
  0x22   : > { %v3373_v62 = vld [vmem:[%s3431_s21 + $0xd8] sm:$0xff]   ;;  %v3375_v0 = vld [vmem:[%s3431_s21 + $0xe0] sm:$0xff]   ;;  %v3377_v2 = vld [vmem:[%s3431_s21 + $0xe8] sm:$0xff]  }
  0x23   : > { %3158 = vmatpush3.bf16.msra.mxu0 %v3318_v9  ;;  %3302 = vmatpush3.bf16.msra.mxu1 %v3318_v9  ;;  %v3374_v63 = vld [vmem:[%s3431_s21 + $0x1d8] sm:$0xff]   ;;  %v3376_v1 = vld [vmem:[%s3431_s21 + $0x1e0] sm:$0xff]   ;;  %v3378_v3 = vld [vmem:[%s3431_s21 + $0x1e8] sm:$0xff]  }
  0x24   : > { %v3379_v4 = vld [vmem:[%s3431_s21 + $0xf0] sm:$0xff]   ;;  %v3381_v6 = vld [vmem:[%s3431_s21 + $0xf8] sm:$0xff]  }
  0x25   : > { %v3380_v5 = vld [vmem:[%s3431_s21 + $0x1f0] sm:$0xff]   ;;  %v3382_v7 = vld [vmem:[%s3431_s21 + $0x1f8] sm:$0xff]  }
  0x26   : > { %3160 = vmatmul.mubr.bf16.vlgmr.msra.gmra.mrb[0].mxu0 %v3321_v10  ;;  %3224 = vmatmul.mubr.bf16.vlgmr.msra.gmra.mrb[0].mxu1 %v3322_v11 }
  0x27   : > { %3163 = vmatprep.mubr.bf16.mxu0 %v3323_v12  ;;  %3227 = vmatprep.mubr.bf16.mxu1 %v3324_v13 }
  0x2e   : > { %3164 = vmatmul.mubr.bf16.gmra.mrb[4].mxu0 %v3325_v14  ;;  %3228 = vmatmul.mubr.bf16.gmra.mrb[4].mxu1 %v3326_v15 }
  0x2f   : > { %3167 = vmatprep.mubr.bf16.mxu0 %v3327_v16  ;;  %3231 = vmatprep.mubr.bf16.mxu1 %v3328_v17 }
  0x36   : > { %3168 = vmatmul.mubr.bf16.gmra.mrb[8].mxu0 %v3329_v18  ;;  %3232 = vmatmul.mubr.bf16.gmra.mrb[8].mxu1 %v3330_v19 }
  0x37   : > { %3171 = vmatprep.mubr.bf16.mxu0 %v3331_v20  ;;  %3235 = vmatprep.mubr.bf16.mxu1 %v3332_v21 }
  0x3e   : > { %3172 = vmatmul.mubr.bf16.gmra.mrb[12].mxu0 %v3333_v22  ;;  %3236 = vmatmul.mubr.bf16.gmra.mrb[12].mxu1 %v3334_v23 }
  0x3f   : > { %3175 = vmatprep.mubr.bf16.mxu0 %v3335_v24  ;;  %3239 = vmatprep.mubr.bf16.mxu1 %v3336_v25 }
  0x46   : > { %3176 = vmatmul.mubr.bf16.gmra.mrb[16].mxu0 %v3337_v26  ;;  %3240 = vmatmul.mubr.bf16.gmra.mrb[16].mxu1 %v3338_v27 }
  0x47   : > { %3179 = vmatprep.mubr.bf16.mxu0 %v3339_v28  ;;  %3243 = vmatprep.mubr.bf16.mxu1 %v3340_v29 }
  0x4e   : > { %3180 = vmatmul.mubr.bf16.gmra.mrb[20].mxu0 %v3341_v30  ;;  %3244 = vmatmul.mubr.bf16.gmra.mrb[20].mxu1 %v3342_v31 }
  0x4f   : > { %3183 = vmatprep.mubr.bf16.mxu0 %v3343_v32  ;;  %3247 = vmatprep.mubr.bf16.mxu1 %v3344_v33 }
  0x56   : > { %3184 = vmatmul.mubr.bf16.gmra.mrb[24].mxu0 %v3345_v34  ;;  %3248 = vmatmul.mubr.bf16.gmra.mrb[24].mxu1 %v3346_v35 }
  0x57   : > { %3187 = vmatprep.mubr.bf16.mxu0 %v3347_v36  ;;  %3251 = vmatprep.mubr.bf16.mxu1 %v3348_v37 }
  0x5e   : > { %3188 = vmatmul.mubr.bf16.gmra.mrb[28].mxu0 %v3349_v38  ;;  %3252 = vmatmul.mubr.bf16.gmra.mrb[28].mxu1 %v3350_v39 }
  0x5f   : > { %3191 = vmatprep.mubr.bf16.mxu0 %v3351_v40  ;;  %3255 = vmatprep.mubr.bf16.mxu1 %v3352_v41 }
  0x66   : > { %3192 = vmatmul.mubr.bf16.gmra.mrb[32].mxu0 %v3353_v42  ;;  %3256 = vmatmul.mubr.bf16.gmra.mrb[32].mxu1 %v3354_v43 }
  0x67   : > { %3195 = vmatprep.mubr.bf16.mxu0 %v3355_v44  ;;  %3259 = vmatprep.mubr.bf16.mxu1 %v3356_v45 }
  0x6e   : > { %3196 = vmatmul.mubr.bf16.gmra.mrb[36].mxu0 %v3357_v46  ;;  %3260 = vmatmul.mubr.bf16.gmra.mrb[36].mxu1 %v3358_v47 }
  0x6f   : > { %3199 = vmatprep.mubr.bf16.mxu0 %v3359_v48  ;;  %3263 = vmatprep.mubr.bf16.mxu1 %v3360_v49 }
  0x76   : > { %3200 = vmatmul.mubr.bf16.gmra.mrb[40].mxu0 %v3361_v50  ;;  %3264 = vmatmul.mubr.bf16.gmra.mrb[40].mxu1 %v3362_v51 }
  0x77   : > { %3203 = vmatprep.mubr.bf16.mxu0 %v3363_v52  ;;  %3267 = vmatprep.mubr.bf16.mxu1 %v3364_v53 }
  0x7e   : > { %3204 = vmatmul.mubr.bf16.gmra.mrb[44].mxu0 %v3365_v54  ;;  %3268 = vmatmul.mubr.bf16.gmra.mrb[44].mxu1 %v3366_v55 }
  0x7f   : > { %3207 = vmatprep.mubr.bf16.mxu0 %v3367_v56  ;;  %3271 = vmatprep.mubr.bf16.mxu1 %v3368_v57 }
  0x86   : > { %3208 = vmatmul.mubr.bf16.gmra.mrb[48].mxu0 %v3369_v58  ;;  %3272 = vmatmul.mubr.bf16.gmra.mrb[48].mxu1 %v3370_v59 }
  0x87   : > { %3211 = vmatprep.mubr.bf16.mxu0 %v3371_v60  ;;  %3275 = vmatprep.mubr.bf16.mxu1 %v3372_v61 }
  0x8e   : > { %3212 = vmatmul.mubr.bf16.gmra.mrb[52].mxu0 %v3373_v62  ;;  %3276 = vmatmul.mubr.bf16.gmra.mrb[52].mxu1 %v3374_v63 }
  0x8f   : > { %3215 = vmatprep.mubr.bf16.mxu0 %v3375_v0  ;;  %3279 = vmatprep.mubr.bf16.mxu1 %v3376_v1 }
  0x96   : > { %3216 = vmatmul.mubr.bf16.gmra.mrb[56].mxu0 %v3377_v2  ;;  %3280 = vmatmul.mubr.bf16.gmra.mrb[56].mxu1 %v3378_v3 }
  0x97   : > { %3219 = vmatprep.mubr.bf16.mxu0 %v3379_v4  ;;  %3283 = vmatprep.mubr.bf16.mxu1 %v3380_v5 }
  0x9e   : > { %3220 = vmatmul.mubr.bf16.gmra.mrb[60].mxu0 %v3381_v6  ;;  %3284 = vmatmul.mubr.bf16.gmra.mrb[60].mxu1 %v3382_v7 }
  0xf9   : > { %v3161_v8 = vpop.f32.mrb[0].mxu0  ;;  %v3225_v9 = vpop.f32.mrb[0].mxu1 }
  0xfa   : > { %vm1271_vm0 = vcmp.ge.f32.partialorder %v3161_v8, 0.0  ;;  %v1399_v10 = vmul.f32 0.2, %v3161_v8  ;;  %v1463_v11 = vmul.f32 0.2, %v3225_v9  ;;  %vm1335_vm1 = vcmp.ge.f32.partialorder %v3225_v9, 0.0 }
  0xfb   : > { %v758_v12 = vpop.f32.mrb[1].mxu0  ;;  %v1014_v13 = vpop.f32.mrb[1].mxu1 }
  0xfc   : > { %v1397_v14 = vmul.f32 0.2, %v758_v12  ;;  %v3162_v15 = vpop.f32.mrb[2].mxu0  ;;  %v3226_v16 = vpop.f32.mrb[2].mxu1  ;;  %v1527_v17 = vsel %vm1271_vm0, %v3161_v8, %v1399_v10  ;;  %v1461_v18 = vmul.f32 0.2, %v1014_v13  ;;  %v1591_v20 = vsel %vm1335_vm1, %v3225_v9, %v1463_v11 }
  0xfd   : > { %vm1272_vm2 = vcmp.ge.f32.partialorder %v3162_v15, 0.0  ;;  %v1400_v19 = vmul.f32 0.2, %v3162_v15  ;;  %vm1269_vm3 = vcmp.ge.f32.partialorder %v758_v12, 0.0  ;;  %vm1336_vm4 = vcmp.ge.f32.partialorder %v3226_v16, 0.0  ;;  %v761_v22 = vpop.f32.mrb[3].mxu0 }
  0xfe   : > { %v1464_v21 = vmul.f32 0.2, %v3226_v16  ;;  %v1017_v23 = vpop.f32.mrb[3].mxu1  ;;  %vm1333_vm5 = vcmp.ge.f32.partialorder %v1014_v13, 0.0  ;;  %vm1270_vm6 = vcmp.ge.f32.partialorder %v761_v22, 0.0  ;;  %v1525_v29 = vsel %vm1269_vm3, %v758_v12, %v1397_v14 }
  0xff   : > { %v1528_v24 = vsel %vm1272_vm2, %v3162_v15, %v1400_v19  ;;  %v1398_v25 = vmul.f32 0.2, %v761_v22  ;;  %vm1334_vm7 = vcmp.ge.f32.partialorder %v1017_v23, 0.0  ;;  %v1462_v28 = vmul.f32 0.2, %v1017_v23 }
 0x100   : > { %v2696_v26 = vpack.c.bf16 %v1528_v24, %v1527_v17  ;;  %v1592_v27 = vsel %vm1336_vm4, %v3226_v16, %v1464_v21  ;;  %v1589_v34 = vsel %vm1333_vm5, %v1014_v13, %v1461_v18 }
 0x101   : > { %v2856_v30 = vpack.c.bf16 %v1592_v27, %v1591_v20  ;;  %v1526_v31 = vsel %vm1270_vm6, %v761_v22, %v1398_v25  ;;  %v3165_v32 = vpop.f32.mrb[4].mxu0  ;;  %v3229_v33 = vpop.f32.mrb[4].mxu1  ;;  %v1590_v36 = vsel %vm1334_vm7, %v1017_v23, %v1462_v28 }
 0x102   : > { %3008 = vst [vmem:[%s3517_s6 + $0x8] sm:$0xff] %v2696_v26   ;;  %v2691_v35 = vpack.c.bf16 %v1526_v31, %v1525_v29  ;;  %v1403_v37 = vmul.f32 0.2, %v3165_v32  ;;  %v774_v38 = vpop.f32.mrb[5].mxu0  ;;  %v1030_v39 = vpop.f32.mrb[5].mxu1  ;;  %v2851_v40 = vpack.c.bf16 %v1590_v36, %v1589_v34  ;;  %vm1275_vm8 = vcmp.ge.f32.partialorder %v3165_v32, 0.0 }
 0x103   : > { %3040 = vst [vmem:[%s3517_s6 + $0x108] sm:$0xff] %v2856_v30   ;;  %v1467_v41 = vmul.f32 0.2, %v3229_v33  ;;  %v3166_v42 = vpop.f32.mrb[6].mxu0  ;;  %v3230_v43 = vpop.f32.mrb[6].mxu1  ;;  %vm1339_vm9 = vcmp.ge.f32.partialorder %v3229_v33, 0.0 }
 0x104   : > { %2692 = vst [vmem:[%s3517_s6] sm:$0xff] %v2691_v35   ;;  %v1401_v44 = vmul.f32 0.2, %v774_v38  ;;  %v1465_v45 = vmul.f32 0.2, %v1030_v39  ;;  %v777_v46 = vpop.f32.mrb[7].mxu0  ;;  %3039 = vst [vmem:[%s3517_s6 + $0x100] sm:$0xff] %v2851_v40   ;;  %v1531_v49 = vsel %vm1275_vm8, %v3165_v32, %v1403_v37 }
 0x105   : > { %vm1273_vm10 = vcmp.ge.f32.partialorder %v774_v38, 0.0  ;;  %vm1276_vm11 = vcmp.ge.f32.partialorder %v3166_v42, 0.0  ;;  %v1404_v47 = vmul.f32 0.2, %v3166_v42  ;;  %vm1340_vm12 = vcmp.ge.f32.partialorder %v3230_v43, 0.0  ;;  %v1033_v48 = vpop.f32.mrb[7].mxu1 }
 0x106   : > { %vm1337_vm13 = vcmp.ge.f32.partialorder %v1030_v39, 0.0  ;;  %v1468_v50 = vmul.f32 0.2, %v3230_v43  ;;  %vm1274_vm14 = vcmp.ge.f32.partialorder %v777_v46, 0.0  ;;  %v1402_v52 = vmul.f32 0.2, %v777_v46 }
 0x107   : > { %v1532_v51 = vsel %vm1276_vm11, %v3166_v42, %v1404_v47  ;;  %vm1338_vm15 = vcmp.ge.f32.partialorder %v1033_v48, 0.0  ;;  %v1466_v53 = vmul.f32 0.2, %v1033_v48  ;;  %v1595_v54 = vsel %vm1339_vm9, %v3229_v33, %v1467_v41 }
 0x108   : > { %v1529_v55 = vsel %vm1273_vm10, %v774_v38, %v1401_v44  ;;  %v2706_v56 = vpack.c.bf16 %v1532_v51, %v1531_v49  ;;  %v1596_v57 = vsel %vm1340_vm12, %v3230_v43, %v1468_v50  ;;  %v1593_v58 = vsel %vm1337_vm13, %v1030_v39, %v1465_v45 }
 0x109   : > { %v2866_v59 = vpack.c.bf16 %v1596_v57, %v1595_v54  ;;  %v1530_v60 = vsel %vm1274_vm14, %v777_v46, %v1402_v52  ;;  %v1594_v61 = vsel %vm1338_vm15, %v1033_v48, %v1466_v53  ;;  %v3169_v62 = vpop.f32.mrb[8].mxu0  ;;  %v3233_v63 = vpop.f32.mrb[8].mxu1 }
 0x10a   : > { %3010 = vst [vmem:[%s3517_s6 + $0x18] sm:$0xff] %v2706_v56   ;;  %v2701_v0 = vpack.c.bf16 %v1530_v60, %v1529_v55  ;;  %v2861_v1 = vpack.c.bf16 %v1594_v61, %v1593_v58  ;;  %vm1279_vm0 = vcmp.ge.f32.partialorder %v3169_v62, 0.0  ;;  %v1407_v2 = vmul.f32 0.2, %v3169_v62  ;;  %v790_v3 = vpop.f32.mrb[9].mxu0  ;;  %v1046_v4 = vpop.f32.mrb[9].mxu1 }
 0x10b   : > { %3042 = vst [vmem:[%s3517_s6 + $0x118] sm:$0xff] %v2866_v59   ;;  %vm1343_vm1 = vcmp.ge.f32.partialorder %v3233_v63, 0.0  ;;  %v1471_v5 = vmul.f32 0.2, %v3233_v63  ;;  %v1405_v6 = vmul.f32 0.2, %v790_v3 }
 0x10c   : > { %3009 = vst [vmem:[%s3517_s6 + $0x10] sm:$0xff] %v2701_v0   ;;  %3041 = vst [vmem:[%s3517_s6 + $0x110] sm:$0xff] %v2861_v1   ;;  %v1469_v7 = vmul.f32 0.2, %v1046_v4  ;;  %v3170_v8 = vpop.f32.mrb[10].mxu0  ;;  %v3234_v9 = vpop.f32.mrb[10].mxu1  ;;  %v1535_v10 = vsel %vm1279_vm0, %v3169_v62, %v1407_v2 }
 0x10d   : > { %vm1277_vm2 = vcmp.ge.f32.partialorder %v790_v3, 0.0  ;;  %vm1280_vm3 = vcmp.ge.f32.partialorder %v3170_v8, 0.0  ;;  %v1408_v11 = vmul.f32 0.2, %v3170_v8  ;;  %v793_v12 = vpop.f32.mrb[11].mxu0  ;;  %v1049_v13 = vpop.f32.mrb[11].mxu1  ;;  %v1599_v18 = vsel %vm1343_vm1, %v3233_v63, %v1471_v5 }
 0x10e   : > { %vm1341_vm4 = vcmp.ge.f32.partialorder %v1046_v4, 0.0  ;;  %vm1344_vm5 = vcmp.ge.f32.partialorder %v3234_v9, 0.0  ;;  %v1472_v14 = vmul.f32 0.2, %v3234_v9  ;;  %vm1278_vm6 = vcmp.ge.f32.partialorder %v793_v12, 0.0 }
 0x10f   : > { %v1536_v15 = vsel %vm1280_vm3, %v3170_v8, %v1408_v11  ;;  %v1406_v16 = vmul.f32 0.2, %v793_v12  ;;  %vm1342_vm7 = vcmp.ge.f32.partialorder %v1049_v13, 0.0  ;;  %v1470_v17 = vmul.f32 0.2, %v1049_v13 }
 0x110   : > { %v1533_v19 = vsel %vm1277_vm2, %v790_v3, %v1405_v6  ;;  %v2716_v20 = vpack.c.bf16 %v1536_v15, %v1535_v10  ;;  %v1600_v21 = vsel %vm1344_vm5, %v3234_v9, %v1472_v14  ;;  %v1597_v22 = vsel %vm1341_vm4, %v1046_v4, %v1469_v7 }
 0x111   : > { %v2876_v23 = vpack.c.bf16 %v1600_v21, %v1599_v18  ;;  %v1534_v24 = vsel %vm1278_vm6, %v793_v12, %v1406_v16  ;;  %v1598_v25 = vsel %vm1342_vm7, %v1049_v13, %v1470_v17  ;;  %v3173_v26 = vpop.f32.mrb[12].mxu0  ;;  %v3237_v27 = vpop.f32.mrb[12].mxu1 }
 0x112   : > { %3012 = vst [vmem:[%s3517_s6 + $0x28] sm:$0xff] %v2716_v20   ;;  %v2711_v28 = vpack.c.bf16 %v1534_v24, %v1533_v19  ;;  %v2871_v29 = vpack.c.bf16 %v1598_v25, %v1597_v22  ;;  %vm1283_vm8 = vcmp.ge.f32.partialorder %v3173_v26, 0.0  ;;  %v1411_v30 = vmul.f32 0.2, %v3173_v26  ;;  %v806_v31 = vpop.f32.mrb[13].mxu0  ;;  %v1062_v32 = vpop.f32.mrb[13].mxu1 }
 0x113   : > { %3044 = vst [vmem:[%s3517_s6 + $0x128] sm:$0xff] %v2876_v23   ;;  %vm1347_vm9 = vcmp.ge.f32.partialorder %v3237_v27, 0.0  ;;  %v1475_v33 = vmul.f32 0.2, %v3237_v27  ;;  %v1409_v34 = vmul.f32 0.2, %v806_v31 }
 0x114   : > { %3011 = vst [vmem:[%s3517_s6 + $0x20] sm:$0xff] %v2711_v28   ;;  %3043 = vst [vmem:[%s3517_s6 + $0x120] sm:$0xff] %v2871_v29   ;;  %v1473_v35 = vmul.f32 0.2, %v1062_v32  ;;  %v3174_v36 = vpop.f32.mrb[14].mxu0  ;;  %v3238_v37 = vpop.f32.mrb[14].mxu1  ;;  %v1539_v38 = vsel %vm1283_vm8, %v3173_v26, %v1411_v30 }
 0x115   : > { %vm1281_vm10 = vcmp.ge.f32.partialorder %v806_v31, 0.0  ;;  %vm1284_vm11 = vcmp.ge.f32.partialorder %v3174_v36, 0.0  ;;  %v1412_v39 = vmul.f32 0.2, %v3174_v36  ;;  %v809_v40 = vpop.f32.mrb[15].mxu0  ;;  %v1065_v41 = vpop.f32.mrb[15].mxu1  ;;  %v1603_v46 = vsel %vm1347_vm9, %v3237_v27, %v1475_v33 }
 0x116   : > { %vm1345_vm12 = vcmp.ge.f32.partialorder %v1062_v32, 0.0  ;;  %vm1348_vm13 = vcmp.ge.f32.partialorder %v3238_v37, 0.0  ;;  %v1476_v42 = vmul.f32 0.2, %v3238_v37  ;;  %vm1282_vm14 = vcmp.ge.f32.partialorder %v809_v40, 0.0 }
 0x117   : > { %v1540_v43 = vsel %vm1284_vm11, %v3174_v36, %v1412_v39  ;;  %v1410_v44 = vmul.f32 0.2, %v809_v40  ;;  %vm1346_vm15 = vcmp.ge.f32.partialorder %v1065_v41, 0.0  ;;  %v1474_v45 = vmul.f32 0.2, %v1065_v41 }
 0x118   : > { %v1537_v47 = vsel %vm1281_vm10, %v806_v31, %v1409_v34  ;;  %v2726_v48 = vpack.c.bf16 %v1540_v43, %v1539_v38  ;;  %v1604_v49 = vsel %vm1348_vm13, %v3238_v37, %v1476_v42  ;;  %v1601_v50 = vsel %vm1345_vm12, %v1062_v32, %v1473_v35 }
 0x119   : > { %v2886_v51 = vpack.c.bf16 %v1604_v49, %v1603_v46  ;;  %v1538_v52 = vsel %vm1282_vm14, %v809_v40, %v1410_v44  ;;  %v1602_v53 = vsel %vm1346_vm15, %v1065_v41, %v1474_v45  ;;  %v3177_v54 = vpop.f32.mrb[16].mxu0  ;;  %v3241_v55 = vpop.f32.mrb[16].mxu1 }
 0x11a   : > { %3014 = vst [vmem:[%s3517_s6 + $0x38] sm:$0xff] %v2726_v48   ;;  %v2721_v56 = vpack.c.bf16 %v1538_v52, %v1537_v47  ;;  %v2881_v57 = vpack.c.bf16 %v1602_v53, %v1601_v50  ;;  %vm1287_vm0 = vcmp.ge.f32.partialorder %v3177_v54, 0.0  ;;  %v1415_v58 = vmul.f32 0.2, %v3177_v54  ;;  %v822_v59 = vpop.f32.mrb[17].mxu0  ;;  %v1078_v60 = vpop.f32.mrb[17].mxu1 }
 0x11b   : > { %3046 = vst [vmem:[%s3517_s6 + $0x138] sm:$0xff] %v2886_v51   ;;  %vm1351_vm1 = vcmp.ge.f32.partialorder %v3241_v55, 0.0  ;;  %v1479_v61 = vmul.f32 0.2, %v3241_v55  ;;  %v1413_v62 = vmul.f32 0.2, %v822_v59 }
 0x11c   : > { %3013 = vst [vmem:[%s3517_s6 + $0x30] sm:$0xff] %v2721_v56   ;;  %3045 = vst [vmem:[%s3517_s6 + $0x130] sm:$0xff] %v2881_v57   ;;  %v1477_v63 = vmul.f32 0.2, %v1078_v60  ;;  %v3178_v0 = vpop.f32.mrb[18].mxu0  ;;  %v3242_v1 = vpop.f32.mrb[18].mxu1  ;;  %v1543_v2 = vsel %vm1287_vm0, %v3177_v54, %v1415_v58 }
 0x11d   : > { %vm1285_vm2 = vcmp.ge.f32.partialorder %v822_v59, 0.0  ;;  %vm1288_vm3 = vcmp.ge.f32.partialorder %v3178_v0, 0.0  ;;  %v1416_v3 = vmul.f32 0.2, %v3178_v0  ;;  %v825_v4 = vpop.f32.mrb[19].mxu0  ;;  %v1081_v5 = vpop.f32.mrb[19].mxu1  ;;  %v1607_v10 = vsel %vm1351_vm1, %v3241_v55, %v1479_v61 }
 0x11e   : > { %vm1349_vm4 = vcmp.ge.f32.partialorder %v1078_v60, 0.0  ;;  %vm1352_vm5 = vcmp.ge.f32.partialorder %v3242_v1, 0.0  ;;  %v1480_v6 = vmul.f32 0.2, %v3242_v1  ;;  %vm1286_vm6 = vcmp.ge.f32.partialorder %v825_v4, 0.0 }
 0x11f   : > { %v1544_v7 = vsel %vm1288_vm3, %v3178_v0, %v1416_v3  ;;  %v1414_v8 = vmul.f32 0.2, %v825_v4  ;;  %vm1350_vm7 = vcmp.ge.f32.partialorder %v1081_v5, 0.0  ;;  %v1478_v9 = vmul.f32 0.2, %v1081_v5 }
 0x120   : > { %v1541_v11 = vsel %vm1285_vm2, %v822_v59, %v1413_v62  ;;  %v2736_v12 = vpack.c.bf16 %v1544_v7, %v1543_v2  ;;  %v1608_v13 = vsel %vm1352_vm5, %v3242_v1, %v1480_v6  ;;  %v1605_v14 = vsel %vm1349_vm4, %v1078_v60, %v1477_v63 }
 0x121   : > { %v2896_v15 = vpack.c.bf16 %v1608_v13, %v1607_v10  ;;  %v1542_v16 = vsel %vm1286_vm6, %v825_v4, %v1414_v8  ;;  %v1606_v17 = vsel %vm1350_vm7, %v1081_v5, %v1478_v9  ;;  %v3181_v18 = vpop.f32.mrb[20].mxu0  ;;  %v3245_v19 = vpop.f32.mrb[20].mxu1 }
 0x122   : > { %3016 = vst [vmem:[%s3517_s6 + $0x48] sm:$0xff] %v2736_v12   ;;  %v2731_v20 = vpack.c.bf16 %v1542_v16, %v1541_v11  ;;  %v2891_v21 = vpack.c.bf16 %v1606_v17, %v1605_v14  ;;  %vm1291_vm8 = vcmp.ge.f32.partialorder %v3181_v18, 0.0  ;;  %v1419_v22 = vmul.f32 0.2, %v3181_v18  ;;  %v838_v23 = vpop.f32.mrb[21].mxu0  ;;  %v1094_v24 = vpop.f32.mrb[21].mxu1 }
 0x123   : > { %3048 = vst [vmem:[%s3517_s6 + $0x148] sm:$0xff] %v2896_v15   ;;  %vm1355_vm9 = vcmp.ge.f32.partialorder %v3245_v19, 0.0  ;;  %v1483_v25 = vmul.f32 0.2, %v3245_v19  ;;  %v1417_v26 = vmul.f32 0.2, %v838_v23 }
 0x124   : > { %3015 = vst [vmem:[%s3517_s6 + $0x40] sm:$0xff] %v2731_v20   ;;  %3047 = vst [vmem:[%s3517_s6 + $0x140] sm:$0xff] %v2891_v21   ;;  %v1481_v27 = vmul.f32 0.2, %v1094_v24  ;;  %v3182_v28 = vpop.f32.mrb[22].mxu0  ;;  %v3246_v29 = vpop.f32.mrb[22].mxu1  ;;  %v1547_v30 = vsel %vm1291_vm8, %v3181_v18, %v1419_v22 }
 0x125   : > { %vm1289_vm10 = vcmp.ge.f32.partialorder %v838_v23, 0.0  ;;  %vm1292_vm11 = vcmp.ge.f32.partialorder %v3182_v28, 0.0  ;;  %v1420_v31 = vmul.f32 0.2, %v3182_v28  ;;  %v841_v32 = vpop.f32.mrb[23].mxu0  ;;  %v1097_v33 = vpop.f32.mrb[23].mxu1  ;;  %v1611_v38 = vsel %vm1355_vm9, %v3245_v19, %v1483_v25 }
 0x126   : > { %vm1353_vm12 = vcmp.ge.f32.partialorder %v1094_v24, 0.0  ;;  %vm1356_vm13 = vcmp.ge.f32.partialorder %v3246_v29, 0.0  ;;  %v1484_v34 = vmul.f32 0.2, %v3246_v29  ;;  %vm1290_vm14 = vcmp.ge.f32.partialorder %v841_v32, 0.0 }
 0x127   : > { %v1548_v35 = vsel %vm1292_vm11, %v3182_v28, %v1420_v31  ;;  %v1418_v36 = vmul.f32 0.2, %v841_v32  ;;  %vm1354_vm15 = vcmp.ge.f32.partialorder %v1097_v33, 0.0  ;;  %v1482_v37 = vmul.f32 0.2, %v1097_v33 }
 0x128   : > { %v1545_v39 = vsel %vm1289_vm10, %v838_v23, %v1417_v26  ;;  %v2746_v40 = vpack.c.bf16 %v1548_v35, %v1547_v30  ;;  %v1612_v41 = vsel %vm1356_vm13, %v3246_v29, %v1484_v34  ;;  %v1609_v42 = vsel %vm1353_vm12, %v1094_v24, %v1481_v27 }
 0x129   : > { %v2906_v43 = vpack.c.bf16 %v1612_v41, %v1611_v38  ;;  %v1546_v44 = vsel %vm1290_vm14, %v841_v32, %v1418_v36  ;;  %v1610_v45 = vsel %vm1354_vm15, %v1097_v33, %v1482_v37  ;;  %v3185_v46 = vpop.f32.mrb[24].mxu0  ;;  %v3249_v47 = vpop.f32.mrb[24].mxu1 }
 0x12a   : > { %3018 = vst [vmem:[%s3517_s6 + $0x58] sm:$0xff] %v2746_v40   ;;  %v2741_v48 = vpack.c.bf16 %v1546_v44, %v1545_v39  ;;  %v2901_v49 = vpack.c.bf16 %v1610_v45, %v1609_v42  ;;  %vm1295_vm0 = vcmp.ge.f32.partialorder %v3185_v46, 0.0  ;;  %v1423_v50 = vmul.f32 0.2, %v3185_v46  ;;  %v854_v51 = vpop.f32.mrb[25].mxu0  ;;  %v1110_v52 = vpop.f32.mrb[25].mxu1 }
 0x12b   : > { %3050 = vst [vmem:[%s3517_s6 + $0x158] sm:$0xff] %v2906_v43   ;;  %vm1359_vm1 = vcmp.ge.f32.partialorder %v3249_v47, 0.0  ;;  %v1487_v53 = vmul.f32 0.2, %v3249_v47  ;;  %v1421_v54 = vmul.f32 0.2, %v854_v51 }
 0x12c   : > { %3017 = vst [vmem:[%s3517_s6 + $0x50] sm:$0xff] %v2741_v48   ;;  %3049 = vst [vmem:[%s3517_s6 + $0x150] sm:$0xff] %v2901_v49   ;;  %v1485_v55 = vmul.f32 0.2, %v1110_v52  ;;  %v3186_v56 = vpop.f32.mrb[26].mxu0  ;;  %v3250_v57 = vpop.f32.mrb[26].mxu1  ;;  %v1551_v58 = vsel %vm1295_vm0, %v3185_v46, %v1423_v50 }
 0x12d   : > { %vm1293_vm2 = vcmp.ge.f32.partialorder %v854_v51, 0.0  ;;  %vm1296_vm3 = vcmp.ge.f32.partialorder %v3186_v56, 0.0  ;;  %v1424_v59 = vmul.f32 0.2, %v3186_v56  ;;  %v857_v60 = vpop.f32.mrb[27].mxu0  ;;  %v1113_v61 = vpop.f32.mrb[27].mxu1  ;;  %v1615_v2 = vsel %vm1359_vm1, %v3249_v47, %v1487_v53 }
 0x12e   : > { %vm1357_vm4 = vcmp.ge.f32.partialorder %v1110_v52, 0.0  ;;  %vm1360_vm5 = vcmp.ge.f32.partialorder %v3250_v57, 0.0  ;;  %v1488_v62 = vmul.f32 0.2, %v3250_v57  ;;  %vm1294_vm6 = vcmp.ge.f32.partialorder %v857_v60, 0.0 }
 0x12f   : > { %v1552_v63 = vsel %vm1296_vm3, %v3186_v56, %v1424_v59  ;;  %v1422_v0 = vmul.f32 0.2, %v857_v60  ;;  %vm1358_vm7 = vcmp.ge.f32.partialorder %v1113_v61, 0.0  ;;  %v1486_v1 = vmul.f32 0.2, %v1113_v61 }
 0x130   : > { %v1549_v3 = vsel %vm1293_vm2, %v854_v51, %v1421_v54  ;;  %v2756_v4 = vpack.c.bf16 %v1552_v63, %v1551_v58  ;;  %v1616_v5 = vsel %vm1360_vm5, %v3250_v57, %v1488_v62  ;;  %v1613_v6 = vsel %vm1357_vm4, %v1110_v52, %v1485_v55 }
 0x131   : > { %v2916_v7 = vpack.c.bf16 %v1616_v5, %v1615_v2  ;;  %v1550_v8 = vsel %vm1294_vm6, %v857_v60, %v1422_v0  ;;  %v1614_v9 = vsel %vm1358_vm7, %v1113_v61, %v1486_v1  ;;  %v3189_v10 = vpop.f32.mrb[28].mxu0  ;;  %v3253_v11 = vpop.f32.mrb[28].mxu1 }
 0x132   : > { %3020 = vst [vmem:[%s3517_s6 + $0x68] sm:$0xff] %v2756_v4   ;;  %v2751_v12 = vpack.c.bf16 %v1550_v8, %v1549_v3  ;;  %v2911_v13 = vpack.c.bf16 %v1614_v9, %v1613_v6  ;;  %vm1299_vm8 = vcmp.ge.f32.partialorder %v3189_v10, 0.0  ;;  %v1427_v14 = vmul.f32 0.2, %v3189_v10  ;;  %v870_v15 = vpop.f32.mrb[29].mxu0  ;;  %v1126_v16 = vpop.f32.mrb[29].mxu1 }
 0x133   : > { %3052 = vst [vmem:[%s3517_s6 + $0x168] sm:$0xff] %v2916_v7   ;;  %vm1363_vm9 = vcmp.ge.f32.partialorder %v3253_v11, 0.0  ;;  %v1491_v17 = vmul.f32 0.2, %v3253_v11  ;;  %v1425_v18 = vmul.f32 0.2, %v870_v15 }
 0x134   : > { %3019 = vst [vmem:[%s3517_s6 + $0x60] sm:$0xff] %v2751_v12   ;;  %3051 = vst [vmem:[%s3517_s6 + $0x160] sm:$0xff] %v2911_v13   ;;  %v1489_v19 = vmul.f32 0.2, %v1126_v16  ;;  %v3190_v20 = vpop.f32.mrb[30].mxu0  ;;  %v3254_v21 = vpop.f32.mrb[30].mxu1  ;;  %v1555_v22 = vsel %vm1299_vm8, %v3189_v10, %v1427_v14 }
 0x135   : > { %vm1297_vm10 = vcmp.ge.f32.partialorder %v870_v15, 0.0  ;;  %vm1300_vm11 = vcmp.ge.f32.partialorder %v3190_v20, 0.0  ;;  %v1428_v23 = vmul.f32 0.2, %v3190_v20  ;;  %v873_v24 = vpop.f32.mrb[31].mxu0  ;;  %v1129_v25 = vpop.f32.mrb[31].mxu1  ;;  %v1619_v30 = vsel %vm1363_vm9, %v3253_v11, %v1491_v17 }
 0x136   : > { %vm1361_vm12 = vcmp.ge.f32.partialorder %v1126_v16, 0.0  ;;  %vm1364_vm13 = vcmp.ge.f32.partialorder %v3254_v21, 0.0  ;;  %v1492_v26 = vmul.f32 0.2, %v3254_v21  ;;  %vm1298_vm14 = vcmp.ge.f32.partialorder %v873_v24, 0.0 }
 0x137   : > { %v1556_v27 = vsel %vm1300_vm11, %v3190_v20, %v1428_v23  ;;  %v1426_v28 = vmul.f32 0.2, %v873_v24  ;;  %vm1362_vm15 = vcmp.ge.f32.partialorder %v1129_v25, 0.0  ;;  %v1490_v29 = vmul.f32 0.2, %v1129_v25 }
 0x138   : > { %v1553_v31 = vsel %vm1297_vm10, %v870_v15, %v1425_v18  ;;  %v2766_v32 = vpack.c.bf16 %v1556_v27, %v1555_v22  ;;  %v1620_v33 = vsel %vm1364_vm13, %v3254_v21, %v1492_v26  ;;  %v1617_v34 = vsel %vm1361_vm12, %v1126_v16, %v1489_v19 }
 0x139   : > { %v2926_v35 = vpack.c.bf16 %v1620_v33, %v1619_v30  ;;  %v1554_v36 = vsel %vm1298_vm14, %v873_v24, %v1426_v28  ;;  %v1618_v37 = vsel %vm1362_vm15, %v1129_v25, %v1490_v29  ;;  %v3193_v38 = vpop.f32.mrb[32].mxu0  ;;  %v3257_v39 = vpop.f32.mrb[32].mxu1 }
 0x13a   : > { %3022 = vst [vmem:[%s3517_s6 + $0x78] sm:$0xff] %v2766_v32   ;;  %v2761_v40 = vpack.c.bf16 %v1554_v36, %v1553_v31  ;;  %v2921_v41 = vpack.c.bf16 %v1618_v37, %v1617_v34  ;;  %vm1303_vm0 = vcmp.ge.f32.partialorder %v3193_v38, 0.0  ;;  %v1431_v42 = vmul.f32 0.2, %v3193_v38  ;;  %v886_v43 = vpop.f32.mrb[33].mxu0  ;;  %v1142_v44 = vpop.f32.mrb[33].mxu1 }
 0x13b   : > { %3054 = vst [vmem:[%s3517_s6 + $0x178] sm:$0xff] %v2926_v35   ;;  %vm1367_vm1 = vcmp.ge.f32.partialorder %v3257_v39, 0.0  ;;  %v1495_v45 = vmul.f32 0.2, %v3257_v39  ;;  %v1429_v46 = vmul.f32 0.2, %v886_v43 }
 0x13c   : > { %3021 = vst [vmem:[%s3517_s6 + $0x70] sm:$0xff] %v2761_v40   ;;  %3053 = vst [vmem:[%s3517_s6 + $0x170] sm:$0xff] %v2921_v41   ;;  %v1493_v47 = vmul.f32 0.2, %v1142_v44  ;;  %v3194_v48 = vpop.f32.mrb[34].mxu0  ;;  %v3258_v49 = vpop.f32.mrb[34].mxu1  ;;  %v1559_v50 = vsel %vm1303_vm0, %v3193_v38, %v1431_v42 }
 0x13d   : > { %vm1301_vm2 = vcmp.ge.f32.partialorder %v886_v43, 0.0  ;;  %vm1304_vm3 = vcmp.ge.f32.partialorder %v3194_v48, 0.0  ;;  %v1432_v51 = vmul.f32 0.2, %v3194_v48  ;;  %v889_v52 = vpop.f32.mrb[35].mxu0  ;;  %v1145_v53 = vpop.f32.mrb[35].mxu1  ;;  %v1623_v58 = vsel %vm1367_vm1, %v3257_v39, %v1495_v45 }
 0x13e   : > { %vm1365_vm4 = vcmp.ge.f32.partialorder %v1142_v44, 0.0  ;;  %vm1368_vm5 = vcmp.ge.f32.partialorder %v3258_v49, 0.0  ;;  %v1496_v54 = vmul.f32 0.2, %v3258_v49  ;;  %vm1302_vm6 = vcmp.ge.f32.partialorder %v889_v52, 0.0 }
 0x13f   : > { %v1560_v55 = vsel %vm1304_vm3, %v3194_v48, %v1432_v51  ;;  %v1430_v56 = vmul.f32 0.2, %v889_v52  ;;  %vm1366_vm7 = vcmp.ge.f32.partialorder %v1145_v53, 0.0  ;;  %v1494_v57 = vmul.f32 0.2, %v1145_v53 }
 0x140   : > { %v1557_v59 = vsel %vm1301_vm2, %v886_v43, %v1429_v46  ;;  %v2776_v60 = vpack.c.bf16 %v1560_v55, %v1559_v50  ;;  %v1624_v61 = vsel %vm1368_vm5, %v3258_v49, %v1496_v54  ;;  %v1621_v62 = vsel %vm1365_vm4, %v1142_v44, %v1493_v47 }
 0x141   : > { %v2936_v63 = vpack.c.bf16 %v1624_v61, %v1623_v58  ;;  %v1558_v0 = vsel %vm1302_vm6, %v889_v52, %v1430_v56  ;;  %v1622_v1 = vsel %vm1366_vm7, %v1145_v53, %v1494_v57  ;;  %v3197_v2 = vpop.f32.mrb[36].mxu0  ;;  %v3261_v3 = vpop.f32.mrb[36].mxu1 }
 0x142   : > { %3024 = vst [vmem:[%s3517_s6 + $0x88] sm:$0xff] %v2776_v60   ;;  %v2771_v4 = vpack.c.bf16 %v1558_v0, %v1557_v59  ;;  %v2931_v5 = vpack.c.bf16 %v1622_v1, %v1621_v62  ;;  %vm1307_vm8 = vcmp.ge.f32.partialorder %v3197_v2, 0.0  ;;  %v1435_v6 = vmul.f32 0.2, %v3197_v2  ;;  %v902_v7 = vpop.f32.mrb[37].mxu0  ;;  %v1158_v8 = vpop.f32.mrb[37].mxu1 }
 0x143   : > { %3056 = vst [vmem:[%s3517_s6 + $0x188] sm:$0xff] %v2936_v63   ;;  %vm1371_vm9 = vcmp.ge.f32.partialorder %v3261_v3, 0.0  ;;  %v1499_v9 = vmul.f32 0.2, %v3261_v3  ;;  %v1433_v10 = vmul.f32 0.2, %v902_v7 }
 0x144   : > { %3023 = vst [vmem:[%s3517_s6 + $0x80] sm:$0xff] %v2771_v4   ;;  %3055 = vst [vmem:[%s3517_s6 + $0x180] sm:$0xff] %v2931_v5   ;;  %v1497_v11 = vmul.f32 0.2, %v1158_v8  ;;  %v3198_v12 = vpop.f32.mrb[38].mxu0  ;;  %v3262_v13 = vpop.f32.mrb[38].mxu1  ;;  %v1563_v14 = vsel %vm1307_vm8, %v3197_v2, %v1435_v6 }
 0x145   : > { %vm1305_vm10 = vcmp.ge.f32.partialorder %v902_v7, 0.0  ;;  %vm1308_vm11 = vcmp.ge.f32.partialorder %v3198_v12, 0.0  ;;  %v1436_v15 = vmul.f32 0.2, %v3198_v12  ;;  %v905_v16 = vpop.f32.mrb[39].mxu0  ;;  %v1161_v17 = vpop.f32.mrb[39].mxu1  ;;  %v1627_v22 = vsel %vm1371_vm9, %v3261_v3, %v1499_v9 }
 0x146   : > { %vm1369_vm12 = vcmp.ge.f32.partialorder %v1158_v8, 0.0  ;;  %vm1372_vm13 = vcmp.ge.f32.partialorder %v3262_v13, 0.0  ;;  %v1500_v18 = vmul.f32 0.2, %v3262_v13  ;;  %vm1306_vm14 = vcmp.ge.f32.partialorder %v905_v16, 0.0 }
 0x147   : > { %v1564_v19 = vsel %vm1308_vm11, %v3198_v12, %v1436_v15  ;;  %v1434_v20 = vmul.f32 0.2, %v905_v16  ;;  %vm1370_vm15 = vcmp.ge.f32.partialorder %v1161_v17, 0.0  ;;  %v1498_v21 = vmul.f32 0.2, %v1161_v17 }
 0x148   : > { %v1561_v23 = vsel %vm1305_vm10, %v902_v7, %v1433_v10  ;;  %v2786_v24 = vpack.c.bf16 %v1564_v19, %v1563_v14  ;;  %v1628_v25 = vsel %vm1372_vm13, %v3262_v13, %v1500_v18  ;;  %v1625_v26 = vsel %vm1369_vm12, %v1158_v8, %v1497_v11 }
 0x149   : > { %v2946_v27 = vpack.c.bf16 %v1628_v25, %v1627_v22  ;;  %v1562_v28 = vsel %vm1306_vm14, %v905_v16, %v1434_v20  ;;  %v1626_v29 = vsel %vm1370_vm15, %v1161_v17, %v1498_v21  ;;  %v3201_v30 = vpop.f32.mrb[40].mxu0  ;;  %v3265_v31 = vpop.f32.mrb[40].mxu1 }
 0x14a   : > { %3026 = vst [vmem:[%s3517_s6 + $0x98] sm:$0xff] %v2786_v24   ;;  %v2781_v32 = vpack.c.bf16 %v1562_v28, %v1561_v23  ;;  %v2941_v33 = vpack.c.bf16 %v1626_v29, %v1625_v26  ;;  %vm1311_vm0 = vcmp.ge.f32.partialorder %v3201_v30, 0.0  ;;  %v1439_v34 = vmul.f32 0.2, %v3201_v30  ;;  %v918_v35 = vpop.f32.mrb[41].mxu0  ;;  %v1174_v36 = vpop.f32.mrb[41].mxu1 }
 0x14b   : > { %3058 = vst [vmem:[%s3517_s6 + $0x198] sm:$0xff] %v2946_v27   ;;  %vm1375_vm1 = vcmp.ge.f32.partialorder %v3265_v31, 0.0  ;;  %v1503_v37 = vmul.f32 0.2, %v3265_v31  ;;  %v1437_v38 = vmul.f32 0.2, %v918_v35 }
 0x14c   : > { %3025 = vst [vmem:[%s3517_s6 + $0x90] sm:$0xff] %v2781_v32   ;;  %3057 = vst [vmem:[%s3517_s6 + $0x190] sm:$0xff] %v2941_v33   ;;  %v1501_v39 = vmul.f32 0.2, %v1174_v36  ;;  %v3202_v40 = vpop.f32.mrb[42].mxu0  ;;  %v3266_v41 = vpop.f32.mrb[42].mxu1  ;;  %v1567_v42 = vsel %vm1311_vm0, %v3201_v30, %v1439_v34 }
 0x14d   : > { %vm1309_vm2 = vcmp.ge.f32.partialorder %v918_v35, 0.0  ;;  %vm1312_vm3 = vcmp.ge.f32.partialorder %v3202_v40, 0.0  ;;  %v1440_v43 = vmul.f32 0.2, %v3202_v40  ;;  %v921_v44 = vpop.f32.mrb[43].mxu0  ;;  %v1177_v45 = vpop.f32.mrb[43].mxu1  ;;  %v1631_v50 = vsel %vm1375_vm1, %v3265_v31, %v1503_v37 }
 0x14e   : > { %vm1373_vm4 = vcmp.ge.f32.partialorder %v1174_v36, 0.0  ;;  %vm1376_vm5 = vcmp.ge.f32.partialorder %v3266_v41, 0.0  ;;  %v1504_v46 = vmul.f32 0.2, %v3266_v41  ;;  %vm1310_vm6 = vcmp.ge.f32.partialorder %v921_v44, 0.0 }
 0x14f   : > { %v1568_v47 = vsel %vm1312_vm3, %v3202_v40, %v1440_v43  ;;  %v1438_v48 = vmul.f32 0.2, %v921_v44  ;;  %vm1374_vm7 = vcmp.ge.f32.partialorder %v1177_v45, 0.0  ;;  %v1502_v49 = vmul.f32 0.2, %v1177_v45 }
 0x150   : > { %v1565_v51 = vsel %vm1309_vm2, %v918_v35, %v1437_v38  ;;  %v2796_v52 = vpack.c.bf16 %v1568_v47, %v1567_v42  ;;  %v1632_v53 = vsel %vm1376_vm5, %v3266_v41, %v1504_v46  ;;  %v1629_v54 = vsel %vm1373_vm4, %v1174_v36, %v1501_v39 }
 0x151   : > { %v2956_v55 = vpack.c.bf16 %v1632_v53, %v1631_v50  ;;  %v1566_v56 = vsel %vm1310_vm6, %v921_v44, %v1438_v48  ;;  %v1630_v57 = vsel %vm1374_vm7, %v1177_v45, %v1502_v49  ;;  %v3205_v58 = vpop.f32.mrb[44].mxu0  ;;  %v3269_v59 = vpop.f32.mrb[44].mxu1 }
 0x152   : > { %3028 = vst [vmem:[%s3517_s6 + $0xa8] sm:$0xff] %v2796_v52   ;;  %v2791_v60 = vpack.c.bf16 %v1566_v56, %v1565_v51  ;;  %v2951_v61 = vpack.c.bf16 %v1630_v57, %v1629_v54  ;;  %vm1315_vm8 = vcmp.ge.f32.partialorder %v3205_v58, 0.0  ;;  %v1443_v62 = vmul.f32 0.2, %v3205_v58  ;;  %v934_v63 = vpop.f32.mrb[45].mxu0  ;;  %v1190_v0 = vpop.f32.mrb[45].mxu1 }
 0x153   : > { %3060 = vst [vmem:[%s3517_s6 + $0x1a8] sm:$0xff] %v2956_v55   ;;  %vm1379_vm9 = vcmp.ge.f32.partialorder %v3269_v59, 0.0  ;;  %v1507_v1 = vmul.f32 0.2, %v3269_v59  ;;  %v1441_v2 = vmul.f32 0.2, %v934_v63 }
 0x154   : > { %3027 = vst [vmem:[%s3517_s6 + $0xa0] sm:$0xff] %v2791_v60   ;;  %3059 = vst [vmem:[%s3517_s6 + $0x1a0] sm:$0xff] %v2951_v61   ;;  %v1505_v3 = vmul.f32 0.2, %v1190_v0  ;;  %v3206_v4 = vpop.f32.mrb[46].mxu0  ;;  %v3270_v5 = vpop.f32.mrb[46].mxu1  ;;  %v1571_v6 = vsel %vm1315_vm8, %v3205_v58, %v1443_v62 }
 0x155   : > { %vm1313_vm10 = vcmp.ge.f32.partialorder %v934_v63, 0.0  ;;  %vm1316_vm11 = vcmp.ge.f32.partialorder %v3206_v4, 0.0  ;;  %v1444_v7 = vmul.f32 0.2, %v3206_v4  ;;  %v937_v8 = vpop.f32.mrb[47].mxu0  ;;  %v1193_v9 = vpop.f32.mrb[47].mxu1  ;;  %v1635_v14 = vsel %vm1379_vm9, %v3269_v59, %v1507_v1 }
 0x156   : > { %vm1377_vm12 = vcmp.ge.f32.partialorder %v1190_v0, 0.0  ;;  %vm1380_vm13 = vcmp.ge.f32.partialorder %v3270_v5, 0.0  ;;  %v1508_v10 = vmul.f32 0.2, %v3270_v5  ;;  %vm1314_vm14 = vcmp.ge.f32.partialorder %v937_v8, 0.0 }
 0x157   : > { %v1572_v11 = vsel %vm1316_vm11, %v3206_v4, %v1444_v7  ;;  %v1442_v12 = vmul.f32 0.2, %v937_v8  ;;  %vm1378_vm15 = vcmp.ge.f32.partialorder %v1193_v9, 0.0  ;;  %v1506_v13 = vmul.f32 0.2, %v1193_v9 }
 0x158   : > { %v1569_v15 = vsel %vm1313_vm10, %v934_v63, %v1441_v2  ;;  %v2806_v16 = vpack.c.bf16 %v1572_v11, %v1571_v6  ;;  %v1636_v17 = vsel %vm1380_vm13, %v3270_v5, %v1508_v10  ;;  %v1633_v18 = vsel %vm1377_vm12, %v1190_v0, %v1505_v3 }
 0x159   : > { %v2966_v19 = vpack.c.bf16 %v1636_v17, %v1635_v14  ;;  %v1570_v20 = vsel %vm1314_vm14, %v937_v8, %v1442_v12  ;;  %v1634_v21 = vsel %vm1378_vm15, %v1193_v9, %v1506_v13  ;;  %v3209_v22 = vpop.f32.mrb[48].mxu0  ;;  %v3273_v23 = vpop.f32.mrb[48].mxu1 }
 0x15a   : > { %3030 = vst [vmem:[%s3517_s6 + $0xb8] sm:$0xff] %v2806_v16   ;;  %v2801_v24 = vpack.c.bf16 %v1570_v20, %v1569_v15  ;;  %v2961_v25 = vpack.c.bf16 %v1634_v21, %v1633_v18  ;;  %vm1319_vm0 = vcmp.ge.f32.partialorder %v3209_v22, 0.0  ;;  %v1447_v26 = vmul.f32 0.2, %v3209_v22  ;;  %v950_v27 = vpop.f32.mrb[49].mxu0  ;;  %v1206_v28 = vpop.f32.mrb[49].mxu1 }
 0x15b   : > { %3062 = vst [vmem:[%s3517_s6 + $0x1b8] sm:$0xff] %v2966_v19   ;;  %vm1383_vm1 = vcmp.ge.f32.partialorder %v3273_v23, 0.0  ;;  %v1511_v29 = vmul.f32 0.2, %v3273_v23  ;;  %v1445_v30 = vmul.f32 0.2, %v950_v27 }
 0x15c   : > { %3029 = vst [vmem:[%s3517_s6 + $0xb0] sm:$0xff] %v2801_v24   ;;  %3061 = vst [vmem:[%s3517_s6 + $0x1b0] sm:$0xff] %v2961_v25   ;;  %v1509_v31 = vmul.f32 0.2, %v1206_v28  ;;  %v3210_v32 = vpop.f32.mrb[50].mxu0  ;;  %v3274_v33 = vpop.f32.mrb[50].mxu1  ;;  %v1575_v34 = vsel %vm1319_vm0, %v3209_v22, %v1447_v26 }
 0x15d   : > { %vm1317_vm2 = vcmp.ge.f32.partialorder %v950_v27, 0.0  ;;  %vm1320_vm3 = vcmp.ge.f32.partialorder %v3210_v32, 0.0  ;;  %v1448_v35 = vmul.f32 0.2, %v3210_v32  ;;  %v953_v36 = vpop.f32.mrb[51].mxu0  ;;  %v1209_v37 = vpop.f32.mrb[51].mxu1  ;;  %v1639_v42 = vsel %vm1383_vm1, %v3273_v23, %v1511_v29 }
 0x15e   : > { %vm1381_vm4 = vcmp.ge.f32.partialorder %v1206_v28, 0.0  ;;  %vm1384_vm5 = vcmp.ge.f32.partialorder %v3274_v33, 0.0  ;;  %v1512_v38 = vmul.f32 0.2, %v3274_v33  ;;  %vm1318_vm6 = vcmp.ge.f32.partialorder %v953_v36, 0.0 }
 0x15f   : > { %v1576_v39 = vsel %vm1320_vm3, %v3210_v32, %v1448_v35  ;;  %v1446_v40 = vmul.f32 0.2, %v953_v36  ;;  %vm1382_vm7 = vcmp.ge.f32.partialorder %v1209_v37, 0.0  ;;  %v1510_v41 = vmul.f32 0.2, %v1209_v37 }
 0x160   : > { %v1573_v43 = vsel %vm1317_vm2, %v950_v27, %v1445_v30  ;;  %v2816_v44 = vpack.c.bf16 %v1576_v39, %v1575_v34  ;;  %v1640_v45 = vsel %vm1384_vm5, %v3274_v33, %v1512_v38  ;;  %v1637_v46 = vsel %vm1381_vm4, %v1206_v28, %v1509_v31 }
 0x161   : > { %v2976_v47 = vpack.c.bf16 %v1640_v45, %v1639_v42  ;;  %v1574_v48 = vsel %vm1318_vm6, %v953_v36, %v1446_v40  ;;  %v1638_v49 = vsel %vm1382_vm7, %v1209_v37, %v1510_v41  ;;  %v3213_v50 = vpop.f32.mrb[52].mxu0  ;;  %v3277_v51 = vpop.f32.mrb[52].mxu1 }
 0x162   : > { %3032 = vst [vmem:[%s3517_s6 + $0xc8] sm:$0xff] %v2816_v44   ;;  %v2811_v52 = vpack.c.bf16 %v1574_v48, %v1573_v43  ;;  %v2971_v53 = vpack.c.bf16 %v1638_v49, %v1637_v46  ;;  %vm1323_vm8 = vcmp.ge.f32.partialorder %v3213_v50, 0.0  ;;  %v1451_v54 = vmul.f32 0.2, %v3213_v50  ;;  %v966_v55 = vpop.f32.mrb[53].mxu0  ;;  %v1222_v56 = vpop.f32.mrb[53].mxu1 }
 0x163   : > { %3064 = vst [vmem:[%s3517_s6 + $0x1c8] sm:$0xff] %v2976_v47   ;;  %vm1387_vm9 = vcmp.ge.f32.partialorder %v3277_v51, 0.0  ;;  %v1515_v57 = vmul.f32 0.2, %v3277_v51  ;;  %v1449_v58 = vmul.f32 0.2, %v966_v55 }
 0x164   : > { %3031 = vst [vmem:[%s3517_s6 + $0xc0] sm:$0xff] %v2811_v52   ;;  %3063 = vst [vmem:[%s3517_s6 + $0x1c0] sm:$0xff] %v2971_v53   ;;  %v1513_v59 = vmul.f32 0.2, %v1222_v56  ;;  %v3214_v60 = vpop.f32.mrb[54].mxu0  ;;  %v3278_v61 = vpop.f32.mrb[54].mxu1  ;;  %v1579_v62 = vsel %vm1323_vm8, %v3213_v50, %v1451_v54 }
 0x165   : > { %vm1321_vm10 = vcmp.ge.f32.partialorder %v966_v55, 0.0  ;;  %vm1324_vm11 = vcmp.ge.f32.partialorder %v3214_v60, 0.0  ;;  %v1452_v63 = vmul.f32 0.2, %v3214_v60  ;;  %v969_v0 = vpop.f32.mrb[55].mxu0  ;;  %v1225_v1 = vpop.f32.mrb[55].mxu1  ;;  %v1643_v6 = vsel %vm1387_vm9, %v3277_v51, %v1515_v57 }
 0x166   : > { %vm1385_vm12 = vcmp.ge.f32.partialorder %v1222_v56, 0.0  ;;  %vm1388_vm13 = vcmp.ge.f32.partialorder %v3278_v61, 0.0  ;;  %v1516_v2 = vmul.f32 0.2, %v3278_v61  ;;  %vm1322_vm14 = vcmp.ge.f32.partialorder %v969_v0, 0.0 }
 0x167   : > { %v1580_v3 = vsel %vm1324_vm11, %v3214_v60, %v1452_v63  ;;  %v1450_v4 = vmul.f32 0.2, %v969_v0  ;;  %vm1386_vm15 = vcmp.ge.f32.partialorder %v1225_v1, 0.0  ;;  %v1514_v5 = vmul.f32 0.2, %v1225_v1 }
 0x168   : > { %v1577_v7 = vsel %vm1321_vm10, %v966_v55, %v1449_v58  ;;  %v2826_v8 = vpack.c.bf16 %v1580_v3, %v1579_v62  ;;  %v1644_v9 = vsel %vm1388_vm13, %v3278_v61, %v1516_v2  ;;  %v1641_v10 = vsel %vm1385_vm12, %v1222_v56, %v1513_v59 }
 0x169   : > { %v2986_v11 = vpack.c.bf16 %v1644_v9, %v1643_v6  ;;  %v1578_v12 = vsel %vm1322_vm14, %v969_v0, %v1450_v4  ;;  %v1642_v13 = vsel %vm1386_vm15, %v1225_v1, %v1514_v5  ;;  %v3217_v14 = vpop.f32.mrb[56].mxu0  ;;  %v3281_v15 = vpop.f32.mrb[56].mxu1 }
 0x16a   : > { %3034 = vst [vmem:[%s3517_s6 + $0xd8] sm:$0xff] %v2826_v8   ;;  %v2821_v16 = vpack.c.bf16 %v1578_v12, %v1577_v7  ;;  %v2981_v17 = vpack.c.bf16 %v1642_v13, %v1641_v10  ;;  %vm1327_vm0 = vcmp.ge.f32.partialorder %v3217_v14, 0.0  ;;  %v1455_v18 = vmul.f32 0.2, %v3217_v14  ;;  %v982_v19 = vpop.f32.mrb[57].mxu0  ;;  %v1238_v20 = vpop.f32.mrb[57].mxu1 }
 0x16b   : > { %3066 = vst [vmem:[%s3517_s6 + $0x1d8] sm:$0xff] %v2986_v11   ;;  %vm1391_vm1 = vcmp.ge.f32.partialorder %v3281_v15, 0.0  ;;  %v1519_v21 = vmul.f32 0.2, %v3281_v15  ;;  %v1453_v22 = vmul.f32 0.2, %v982_v19 }
 0x16c   : > { %3033 = vst [vmem:[%s3517_s6 + $0xd0] sm:$0xff] %v2821_v16   ;;  %3065 = vst [vmem:[%s3517_s6 + $0x1d0] sm:$0xff] %v2981_v17   ;;  %v1517_v23 = vmul.f32 0.2, %v1238_v20  ;;  %v3218_v24 = vpop.f32.mrb[58].mxu0  ;;  %v3282_v25 = vpop.f32.mrb[58].mxu1  ;;  %v1583_v26 = vsel %vm1327_vm0, %v3217_v14, %v1455_v18 }
 0x16d   : > { %vm1325_vm2 = vcmp.ge.f32.partialorder %v982_v19, 0.0  ;;  %vm1328_vm3 = vcmp.ge.f32.partialorder %v3218_v24, 0.0  ;;  %v1456_v27 = vmul.f32 0.2, %v3218_v24  ;;  %v985_v28 = vpop.f32.mrb[59].mxu0  ;;  %v1241_v29 = vpop.f32.mrb[59].mxu1  ;;  %v1647_v34 = vsel %vm1391_vm1, %v3281_v15, %v1519_v21 }
 0x16e   : > { %vm1389_vm4 = vcmp.ge.f32.partialorder %v1238_v20, 0.0  ;;  %vm1392_vm5 = vcmp.ge.f32.partialorder %v3282_v25, 0.0  ;;  %v1520_v30 = vmul.f32 0.2, %v3282_v25  ;;  %vm1326_vm6 = vcmp.ge.f32.partialorder %v985_v28, 0.0 }
 0x16f   : > { %v1584_v31 = vsel %vm1328_vm3, %v3218_v24, %v1456_v27  ;;  %v1454_v32 = vmul.f32 0.2, %v985_v28  ;;  %vm1390_vm7 = vcmp.ge.f32.partialorder %v1241_v29, 0.0  ;;  %v1518_v33 = vmul.f32 0.2, %v1241_v29 }
 0x170   : > { %v1581_v35 = vsel %vm1325_vm2, %v982_v19, %v1453_v22  ;;  %v2836_v36 = vpack.c.bf16 %v1584_v31, %v1583_v26  ;;  %v1648_v37 = vsel %vm1392_vm5, %v3282_v25, %v1520_v30  ;;  %v1645_v38 = vsel %vm1389_vm4, %v1238_v20, %v1517_v23 }
 0x171   : > { %v2996_v39 = vpack.c.bf16 %v1648_v37, %v1647_v34  ;;  %v1582_v40 = vsel %vm1326_vm6, %v985_v28, %v1454_v32  ;;  %v1646_v41 = vsel %vm1390_vm7, %v1241_v29, %v1518_v33  ;;  %v3221_v42 = vpop.f32.mrb[60].mxu0  ;;  %v3285_v43 = vpop.f32.mrb[60].mxu1 }
 0x172   : > { %3036 = vst [vmem:[%s3517_s6 + $0xe8] sm:$0xff] %v2836_v36   ;;  %v2831_v44 = vpack.c.bf16 %v1582_v40, %v1581_v35  ;;  %v2991_v45 = vpack.c.bf16 %v1646_v41, %v1645_v38  ;;  %vm1331_vm8 = vcmp.ge.f32.partialorder %v3221_v42, 0.0  ;;  %v1459_v46 = vmul.f32 0.2, %v3221_v42  ;;  %v998_v47 = vpop.f32.mrb[61].mxu0  ;;  %v1254_v48 = vpop.f32.mrb[61].mxu1 }
 0x173   : > { %3068 = vst [vmem:[%s3517_s6 + $0x1e8] sm:$0xff] %v2996_v39   ;;  %vm1395_vm9 = vcmp.ge.f32.partialorder %v3285_v43, 0.0  ;;  %v1523_v49 = vmul.f32 0.2, %v3285_v43  ;;  %v1457_v50 = vmul.f32 0.2, %v998_v47 }
 0x174   : > { %3035 = vst [vmem:[%s3517_s6 + $0xe0] sm:$0xff] %v2831_v44   ;;  %3067 = vst [vmem:[%s3517_s6 + $0x1e0] sm:$0xff] %v2991_v45   ;;  %v1521_v51 = vmul.f32 0.2, %v1254_v48  ;;  %v3222_v52 = vpop.f32.mrb[62].mxu0  ;;  %v3286_v53 = vpop.f32.mrb[62].mxu1  ;;  %v1587_v54 = vsel %vm1331_vm8, %v3221_v42, %v1459_v46 }
 0x175   : > { %vm1329_vm10 = vcmp.ge.f32.partialorder %v998_v47, 0.0  ;;  %vm1332_vm11 = vcmp.ge.f32.partialorder %v3222_v52, 0.0  ;;  %v1460_v55 = vmul.f32 0.2, %v3222_v52  ;;  %v1001_v56 = vpop.f32.mrb[63].mxu0  ;;  %v1257_v57 = vpop.f32.mrb[63].mxu1  ;;  %v1651_v62 = vsel %vm1395_vm9, %v3285_v43, %v1523_v49 }
 0x176   : > { %vm1393_vm12 = vcmp.ge.f32.partialorder %v1254_v48, 0.0  ;;  %vm1396_vm13 = vcmp.ge.f32.partialorder %v3286_v53, 0.0  ;;  %v1524_v58 = vmul.f32 0.2, %v3286_v53  ;;  %vm1330_vm14 = vcmp.ge.f32.partialorder %v1001_v56, 0.0 }
 0x177   : > { %v1588_v59 = vsel %vm1332_vm11, %v3222_v52, %v1460_v55  ;;  %v1458_v60 = vmul.f32 0.2, %v1001_v56  ;;  %vm1394_vm15 = vcmp.ge.f32.partialorder %v1257_v57, 0.0  ;;  %v1522_v61 = vmul.f32 0.2, %v1257_v57 }
 0x178   : > { %v1585_v63 = vsel %vm1329_vm10, %v998_v47, %v1457_v50  ;;  %v2846_v0 = vpack.c.bf16 %v1588_v59, %v1587_v54  ;;  %v1652_v1 = vsel %vm1396_vm13, %v3286_v53, %v1524_v58  ;;  %v1649_v2 = vsel %vm1393_vm12, %v1254_v48, %v1521_v51 }
 0x179   : > { %v3006_v3 = vpack.c.bf16 %v1652_v1, %v1651_v62  ;;  %v1586_v4 = vsel %vm1330_vm14, %v1001_v56, %v1458_v60  ;;  %v1650_v5 = vsel %vm1394_vm15, %v1257_v57, %v1522_v61 }
 0x17a   : > { %3038 = vst [vmem:[%s3517_s6 + $0xf8] sm:$0xff] %v2846_v0   ;;  %v2841_v6 = vpack.c.bf16 %v1586_v4, %v1585_v63  ;;  %v3001_v7 = vpack.c.bf16 %v1650_v5, %v1649_v2 }
 0x17b   : > { %3070 = vst [vmem:[%s3517_s6 + $0x1f8] sm:$0xff] %v3006_v3  }
 0x17c   : > { %3037 = vst [vmem:[%s3517_s6 + $0xf0] sm:$0xff] %v2841_v6   ;;  %3069 = vst [vmem:[%s3517_s6 + $0x1f0] sm:$0xff] %v3001_v7  }
 0x17d PF: > { %s12_s9 = sadd.s32 1, %s3389_s9  }
 0x17e   : > { %p9_p4 = scmp.ge.s32.totalorder %s12_s9, 4  }
 0x180   :  { %11 = sbr.rel (!%p9_p4) target bundleno = 1 (0x1), region = 58 }

// kernel: sdf_encoder_forward.6
= control target key start
LH: loop header
LB: loop body
LE: loop exit
PB: predicated region body
PF: predicated region fallthrough
CT: control target
= control target key end

     0   :  { %s1474_s12 = smov 0   ;;  %s1687_s0 = inlined_call_operand.vmem [shape: bf16[512,256], index: 0, kind: input, shape index: {}]   ;;  %s1688_s1 = inlined_call_operand.vmem [shape: bf16[256,128], index: 1, kind: input, shape index: {}]   ;;  %s1689_s2 = inlined_call_operand.vmem [shape: bf16[512,128], index: 2, kind: output, shape index: {0}]   ;;  %s1690_s3 = inlined_call_operand.vmem [shape: f32[16,128], index: 3, kind: output, shape index: {1}]  }
   0x1 LB: > { %s1480_s13 = sadd.s32 4294967295, %s1452_s12   ;;  %p1029_p0 = scmp.ge.s32.totalorder %s1452_s12, 1  ;;  %s1452_s12 = sphi %s1474_s12, %s14_s12  }
   0x2   : > { %p142_p1 = scmp.lt.s32.totalorder %s1452_s12, 3 }
   0x4   : > { %p143_p2 = pnand %p1029_p0, %p142_p1 }
   0x5   : > { %v1382_v0 = vld [vmem:[%s1688_s1 + $0x40] sm:$0xff] (!%p143_p2)   ;;  %s1030_s16 = sshll.u32 (!%p143_p2), %s1480_s13, 5  ;;  %v1384_v2 = vld [vmem:[%s1688_s1 + $0x48] sm:$0xff] (!%p143_p2)   ;;  %v1386_v4 = vld [vmem:[%s1688_s1 + $0x50] sm:$0xff] (!%p143_p2)   ;;  %p184_p4 = scmp.lt.s32.totalorder (!%p143_p2), %s1480_s13, 1 }
   0x6   : > { %146 = sbr.rel (%p143_p2) target bundleno = 360 (0x168), region = 28  ;;  %v1383_v1 = vld [vmem:[%s1688_s1] sm:$0xff] (!%p143_p2)   ;;  %1246 = vmatprep.subr.bf16.mxu0 (!%p143_p2), %v1382_v0  ;;  %1358 = vmatprep.subr.bf16.mxu1 (!%p143_p2), %v1382_v0  ;;  %v1385_v3 = vld [vmem:[%s1688_s1 + $0x8] sm:$0xff] (!%p143_p2)   ;;  %p172_p3 = scmp.lt.s32.totalorder (!%p143_p2), %s1030_s16, 63  ;;  %v1387_v5 = vld [vmem:[%s1688_s1 + $0x10] sm:$0xff] (!%p143_p2)  }
   0x7   : > { %1247 = vmatpush3.bf16.msra.mxu0 (!%p143_p2), %v1383_v1  ;;  %1366 = vmatpush3.bf16.msra.mxu1 (!%p143_p2), %v1383_v1  ;;  %v1388_v6 = vld [vmem:[%s1688_s1 + $0x58] sm:$0xff] (!%p143_p2)   ;;  %v1390_v8 = vld [vmem:[%s1688_s1 + $0x60] sm:$0xff] (!%p143_p2)   ;;  %v1392_v10 = vld [vmem:[%s1688_s1 + $0x68] sm:$0xff] (!%p143_p2)  }
   0x8   : > { %1248 = vmatprep.subr.bf16.mxu0 (!%p143_p2), %v1384_v2  ;;  %1359 = vmatprep.subr.bf16.mxu1 (!%p143_p2), %v1384_v2  ;;  %v1389_v7 = vld [vmem:[%s1688_s1 + $0x18] sm:$0xff] (!%p143_p2)   ;;  %v1391_v9 = vld [vmem:[%s1688_s1 + $0x20] sm:$0xff] (!%p143_p2)   ;;  %v1393_v12 = vld [vmem:[%s1688_s1 + $0x28] sm:$0xff] (!%p143_p2)  }
   0x9   : > { %v1394_v13 = vld [vmem:[%s1688_s1 + $0x70] sm:$0xff] (!%p143_p2)   ;;  %v1396_v16 = vld [vmem:[%s1688_s1 + $0x78] sm:$0xff] (!%p143_p2)  }
   0xa   : > { %v1395_v15 = vld [vmem:[%s1688_s1 + $0x30] sm:$0xff] (!%p143_p2)   ;;  %v1397_v17 = vld [vmem:[%s1688_s1 + $0x38] sm:$0xff] (!%p143_p2)  }
   0xb   : > { %1249 = vmatpush3.bf16.msra.mxu0 (!%p143_p2), %v1385_v3  ;;  %1367 = vmatpush3.bf16.msra.mxu1 (!%p143_p2), %v1385_v3 }
   0xc   : > { %1250 = vmatprep.subr.bf16.mxu0 (!%p143_p2), %v1386_v4  ;;  %1360 = vmatprep.subr.bf16.mxu1 (!%p143_p2), %v1386_v4 }
   0xd   : > { %s1692_s16 = smov (!%p172_p3, %s1030_s16), 63  ;;  %s1694_s13 = smov (!%p184_p4, %s1480_s13), 1 }
   0xe   : > { %s1118_s4 = sshll.u32 %s1692_s16, 3  ;;  %s1034_s27 = sshll.u32 %s1692_s16, 2 }
   0xf   : > { %1251 = vmatpush3.bf16.msra.mxu0 %v1387_v5  ;;  %1368 = vmatpush3.bf16.msra.mxu1 %v1387_v5  ;;  %s1518_s9 = scalar_lea.vmem %s1687_s0, %s1118_s4  ;;  %s1579_s30 = scalar_lea.vmem %s1689_s2, %s1034_s27 }
  0x10   : > { %1252 = vmatprep.subr.bf16.mxu0 %v1388_v6  ;;  %1361 = vmatprep.subr.bf16.mxu1 %v1388_v6  ;;  %v1400_v11 = vld [vmem:[%s1518_s9 + $0x4] ss:$8 sps:$4 sm:$0xff]   ;;  %v1398_v18 = vld [vmem:[%s1518_s9] ss:$8 sps:$4 sm:$0xff]   ;;  %v1401_v19 = vld [vmem:[%s1518_s9 + $0x14] ss:$8 sps:$4 sm:$0xff]  }
  0x11   : > { %541 = vmatprep.mubr.bf16.mxu0 %v1400_v11  ;;  %v1412_v14 = vld [vmem:[%s1518_s9 + $0x84] ss:$8 sps:$4 sm:$0xff]   ;;  %v1410_v20 = vld [vmem:[%s1518_s9 + $0x80] ss:$8 sps:$4 sm:$0xff]   ;;  %v1416_v21 = vld [vmem:[%s1518_s9 + $0x94] ss:$8 sps:$4 sm:$0xff]  }
  0x12   : > { %605 = vmatprep.mubr.bf16.mxu1 %v1412_v14  ;;  %v1403_v22 = vld [vmem:[%s1518_s9 + $0x10] ss:$8 sps:$4 sm:$0xff]   ;;  %v1404_v23 = vld [vmem:[%s1518_s9 + $0x24] ss:$8 sps:$4 sm:$0xff]   ;;  %v1406_v26 = vld [vmem:[%s1518_s9 + $0x20] ss:$8 sps:$4 sm:$0xff]  }
  0x13   : > { %1253 = vmatpush3.bf16.msra.mxu0 %v1389_v7  ;;  %1369 = vmatpush3.bf16.msra.mxu1 %v1389_v7  ;;  %v1418_v24 = vld [vmem:[%s1518_s9 + $0x90] ss:$8 sps:$4 sm:$0xff]   ;;  %v1422_v25 = vld [vmem:[%s1518_s9 + $0xa4] ss:$8 sps:$4 sm:$0xff]   ;;  %v1407_v27 = vld [vmem:[%s1518_s9 + $0x34] ss:$8 sps:$4 sm:$0xff]  }
  0x14   : > { %1254 = vmatprep.subr.bf16.mxu0 %v1390_v8  ;;  %1362 = vmatprep.subr.bf16.mxu1 %v1390_v8  ;;  %v1424_v28 = vld [vmem:[%s1518_s9 + $0xa0] ss:$8 sps:$4 sm:$0xff]   ;;  %v1428_v29 = vld [vmem:[%s1518_s9 + $0xb4] ss:$8 sps:$4 sm:$0xff]   ;;  %v1409_v30 = vld [vmem:[%s1518_s9 + $0x30] ss:$8 sps:$4 sm:$0xff]  }
  0x15   : > { %v1413_v31 = vld [vmem:[%s1518_s9 + $0x44] ss:$8 sps:$4 sm:$0xff]   ;;  %v1430_v32 = vld [vmem:[%s1518_s9 + $0xb0] ss:$8 sps:$4 sm:$0xff]   ;;  %v1415_v34 = vld [vmem:[%s1518_s9 + $0x40] ss:$8 sps:$4 sm:$0xff]  }
  0x16   : > { %v1434_v33 = vld [vmem:[%s1518_s9 + $0xc4] ss:$8 sps:$4 sm:$0xff]   ;;  %v1419_v35 = vld [vmem:[%s1518_s9 + $0x54] ss:$8 sps:$4 sm:$0xff]   ;;  %v1436_v36 = vld [vmem:[%s1518_s9 + $0xc0] ss:$8 sps:$4 sm:$0xff]  }
  0x17   : > { %1255 = vmatpush3.bf16.msra.mxu0 %v1391_v9  ;;  %1370 = vmatpush3.bf16.msra.mxu1 %v1391_v9  ;;  %v1437_v37 = vld [vmem:[%s1518_s9 + $0xd4] ss:$8 sps:$4 sm:$0xff]   ;;  %v1421_v38 = vld [vmem:[%s1518_s9 + $0x50] ss:$8 sps:$4 sm:$0xff]   ;;  %v1425_v39 = vld [vmem:[%s1518_s9 + $0x64] ss:$8 sps:$4 sm:$0xff]  }
  0x18   : > { %1256 = vmatprep.subr.bf16.mxu0 %v1392_v10  ;;  %1363 = vmatprep.subr.bf16.mxu1 %v1392_v10  ;;  %v1439_v40 = vld [vmem:[%s1518_s9 + $0xd0] ss:$8 sps:$4 sm:$0xff]   ;;  %v1440_v41 = vld [vmem:[%s1518_s9 + $0xe4] ss:$8 sps:$4 sm:$0xff]   ;;  %v1427_v42 = vld [vmem:[%s1518_s9 + $0x60] ss:$8 sps:$4 sm:$0xff]  }
  0x19   : > { %v1431_v43 = vld [vmem:[%s1518_s9 + $0x74] ss:$8 sps:$4 sm:$0xff]   ;;  %v1442_v44 = vld [vmem:[%s1518_s9 + $0xe0] ss:$8 sps:$4 sm:$0xff]   ;;  %v1433_v46 = vld [vmem:[%s1518_s9 + $0x70] ss:$8 sps:$4 sm:$0xff]  }
  0x1a   : > { %v1443_v45 = vld [vmem:[%s1518_s9 + $0xf4] ss:$8 sps:$4 sm:$0xff]   ;;  %v1445_v47 = vld [vmem:[%s1518_s9 + $0xf0] ss:$8 sps:$4 sm:$0xff]   ;;  %s1035_s16 = sshll.u32 %s1694_s13, 3 }
  0x1b   : > { %1257 = vmatpush3.bf16.msra.mxu0 %v1393_v12  ;;  %1371 = vmatpush3.bf16.msra.mxu1 %v1393_v12  ;;  %s187_s6 = scalar_lea.vmem %s1690_s3, %s1035_s16 }
  0x1c   : > { %1258 = vmatprep.subr.bf16.mxu0 %v1394_v13  ;;  %1364 = vmatprep.subr.bf16.mxu1 %v1394_v13 }
  0x1f   : > { %1259 = vmatpush3.bf16.msra.mxu0 %v1395_v15  ;;  %1372 = vmatpush3.bf16.msra.mxu1 %v1395_v15 }
  0x20   : > { %1260 = vmatprep.subr.bf16.mxu0 %v1396_v16  ;;  %1365 = vmatprep.subr.bf16.mxu1 %v1396_v16 }
  0x23   : > { %1261 = vmatpush3.bf16.msra.mxu0 %v1397_v17  ;;  %1373 = vmatpush3.bf16.msra.mxu1 %v1397_v17 }
  0x26   : > { %542 = vmatmul.mubr.bf16.vlgmr.msra.gmra.mrb[0].mxu0 %v1398_v18  ;;  %606 = vmatmul.mubr.bf16.vlgmr.msra.gmra.mrb[0].mxu1 %v1410_v20 }
  0x27   : > { %549 = vmatprep.mubr.bf16.mxu0 %v1401_v19  ;;  %613 = vmatprep.mubr.bf16.mxu1 %v1416_v21 }
  0x2e   : > { %550 = vmatmul.mubr.bf16.gmra.mrb[4].mxu0 %v1403_v22  ;;  %614 = vmatmul.mubr.bf16.gmra.mrb[4].mxu1 %v1418_v24 }
  0x2f   : > { %557 = vmatprep.mubr.bf16.mxu0 %v1404_v23  ;;  %621 = vmatprep.mubr.bf16.mxu1 %v1422_v25 }
  0x36   : > { %558 = vmatmul.mubr.bf16.gmra.mrb[8].mxu0 %v1406_v26  ;;  %622 = vmatmul.mubr.bf16.gmra.mrb[8].mxu1 %v1424_v28 }
  0x37   : > { %565 = vmatprep.mubr.bf16.mxu0 %v1407_v27  ;;  %629 = vmatprep.mubr.bf16.mxu1 %v1428_v29 }
  0x3e   : > { %566 = vmatmul.mubr.bf16.gmra.mrb[12].mxu0 %v1409_v30  ;;  %630 = vmatmul.mubr.bf16.gmra.mrb[12].mxu1 %v1430_v32 }
  0x3f   : > { %573 = vmatprep.mubr.bf16.mxu0 %v1413_v31  ;;  %637 = vmatprep.mubr.bf16.mxu1 %v1434_v33 }
  0x46   : > { %574 = vmatmul.mubr.bf16.gmra.mrb[16].mxu0 %v1415_v34  ;;  %638 = vmatmul.mubr.bf16.gmra.mrb[16].mxu1 %v1436_v36 }
  0x47   : > { %581 = vmatprep.mubr.bf16.mxu0 %v1419_v35  ;;  %645 = vmatprep.mubr.bf16.mxu1 %v1437_v37 }
  0x4e   : > { %582 = vmatmul.mubr.bf16.gmra.mrb[20].mxu0 %v1421_v38  ;;  %646 = vmatmul.mubr.bf16.gmra.mrb[20].mxu1 %v1439_v40 }
  0x4f   : > { %589 = vmatprep.mubr.bf16.mxu0 %v1425_v39  ;;  %653 = vmatprep.mubr.bf16.mxu1 %v1440_v41 }
  0x56   : > { %590 = vmatmul.mubr.bf16.gmra.mrb[24].mxu0 %v1427_v42  ;;  %654 = vmatmul.mubr.bf16.gmra.mrb[24].mxu1 %v1442_v44 }
  0x57   : > { %597 = vmatprep.mubr.bf16.mxu0 %v1431_v43  ;;  %661 = vmatprep.mubr.bf16.mxu1 %v1443_v45 }
  0x5e   : > { %598 = vmatmul.mubr.bf16.gmra.mrb[28].mxu0 %v1433_v46  ;;  %662 = vmatmul.mubr.bf16.gmra.mrb[28].mxu1 %v1445_v47 }
  0xf9   : > { %v1262_v48 = vpop.f32.mrb[0].mxu0  ;;  %v1310_v50 = vpop.f32.mrb[0].mxu1 }
  0xfa   : > { %v1263_v49 = vpop.f32.mrb[1].mxu0  ;;  %v1311_v53 = vpop.f32.mrb[1].mxu1 }
  0xfb   : > { %v1264_v51 = vadd.f32 %v1263_v49, %v1262_v48  ;;  %v1265_v52 = vpop.f32.mrb[2].mxu0  ;;  %v1574_v55 = vadd.f32 %v1311_v53, %v1310_v50  ;;  %v1313_v56 = vpop.f32.mrb[2].mxu1 }
  0xfc   : > { %v1266_v54 = vpop.f32.mrb[3].mxu0  ;;  %v1314_v58 = vpop.f32.mrb[3].mxu1 }
  0xfd   : > { %v1267_v57 = vadd.f32 %v1266_v54, %v1265_v52  ;;  %v1581_v59 = vadd.f32 %v1314_v58, %v1313_v56  ;;  %v708_v60 = vmul.f32 %v1264_v51, %v1264_v51 }
  0xff   : > { %v670_v61 = vadd.f32 %v1267_v57, %v1264_v51  ;;  %v709_v62 = vmul.f32 %v1267_v57, %v1267_v57  ;;  %v1154_v63 = vpack.c.bf16 %v1267_v57, %v1264_v51  ;;  %v1194_v0 = vpack.c.bf16 %v1581_v59, %v1574_v55 }
 0x101   : > { %v740_v1 = vadd.f32 %v709_v62, %v708_v60  ;;  %1155 = vst [vmem:[%s1579_s30] sm:$0xff] %v1154_v63   ;;  %v1268_v2 = vpop.f32.mrb[4].mxu0  ;;  %1238 = vst [vmem:[%s1579_s30 + $0x40] sm:$0xff] %v1194_v0   ;;  %v1316_v4 = vpop.f32.mrb[4].mxu1 }
 0x102   : > { %v1269_v3 = vpop.f32.mrb[5].mxu0  ;;  %v1317_v7 = vpop.f32.mrb[5].mxu1 }
 0x103   : > { %v1270_v5 = vadd.f32 %v1269_v3, %v1268_v2  ;;  %v1271_v6 = vpop.f32.mrb[6].mxu0  ;;  %v1587_v9 = vadd.f32 %v1317_v7, %v1316_v4  ;;  %v1319_v10 = vpop.f32.mrb[6].mxu1 }
 0x104   : > { %v1272_v8 = vpop.f32.mrb[7].mxu0  ;;  %v1320_v14 = vpop.f32.mrb[7].mxu1 }
 0x105   : > { %v671_v11 = vadd.f32 %v1270_v5, %v670_v61  ;;  %v710_v12 = vmul.f32 %v1270_v5, %v1270_v5  ;;  %v1273_v13 = vadd.f32 %v1272_v8, %v1271_v6  ;;  %v1589_v15 = vadd.f32 %v1320_v14, %v1319_v10 }
 0x107   : > { %v741_v16 = vadd.f32 %v740_v1, %v710_v12  ;;  %v672_v17 = vadd.f32 %v1273_v13, %v671_v11  ;;  %v711_v18 = vmul.f32 %v1273_v13, %v1273_v13  ;;  %v1159_v19 = vpack.c.bf16 %v1273_v13, %v1270_v5 }
 0x108   : > { %v1199_v20 = vpack.c.bf16 %v1589_v15, %v1587_v9 }
 0x109   : > { %v742_v21 = vadd.f32 %v741_v16, %v711_v18  ;;  %1231 = vst [vmem:[%s1579_s30 + $0x8] sm:$0xff] %v1159_v19   ;;  %v1274_v22 = vpop.f32.mrb[8].mxu0  ;;  %v1322_v24 = vpop.f32.mrb[8].mxu1 }
 0x10a   : > { %v1275_v23 = vpop.f32.mrb[9].mxu0  ;;  %1239 = vst [vmem:[%s1579_s30 + $0x48] sm:$0xff] %v1199_v20   ;;  %v1323_v27 = vpop.f32.mrb[9].mxu1 }
 0x10b   : > { %v1276_v25 = vadd.f32 %v1275_v23, %v1274_v22  ;;  %v1277_v26 = vpop.f32.mrb[10].mxu0  ;;  %v1595_v29 = vadd.f32 %v1323_v27, %v1322_v24  ;;  %v1325_v30 = vpop.f32.mrb[10].mxu1 }
 0x10c   : > { %v1278_v28 = vpop.f32.mrb[11].mxu0  ;;  %v1326_v34 = vpop.f32.mrb[11].mxu1 }
 0x10d   : > { %v673_v31 = vadd.f32 %v1276_v25, %v672_v17  ;;  %v712_v32 = vmul.f32 %v1276_v25, %v1276_v25  ;;  %v1279_v33 = vadd.f32 %v1278_v28, %v1277_v26  ;;  %v1597_v35 = vadd.f32 %v1326_v34, %v1325_v30 }
 0x10f   : > { %v743_v36 = vadd.f32 %v742_v21, %v712_v32  ;;  %v674_v37 = vadd.f32 %v1279_v33, %v673_v31  ;;  %v713_v38 = vmul.f32 %v1279_v33, %v1279_v33  ;;  %v1164_v39 = vpack.c.bf16 %v1279_v33, %v1276_v25 }
 0x110   : > { %v1204_v40 = vpack.c.bf16 %v1597_v35, %v1595_v29 }
 0x111   : > { %v744_v41 = vadd.f32 %v743_v36, %v713_v38  ;;  %1232 = vst [vmem:[%s1579_s30 + $0x10] sm:$0xff] %v1164_v39   ;;  %v1280_v42 = vpop.f32.mrb[12].mxu0  ;;  %v1328_v44 = vpop.f32.mrb[12].mxu1 }
 0x112   : > { %v1281_v43 = vpop.f32.mrb[13].mxu0  ;;  %1240 = vst [vmem:[%s1579_s30 + $0x50] sm:$0xff] %v1204_v40   ;;  %v1329_v47 = vpop.f32.mrb[13].mxu1 }
 0x113   : > { %v1282_v45 = vadd.f32 %v1281_v43, %v1280_v42  ;;  %v1283_v46 = vpop.f32.mrb[14].mxu0  ;;  %v1603_v49 = vadd.f32 %v1329_v47, %v1328_v44  ;;  %v1331_v50 = vpop.f32.mrb[14].mxu1 }
 0x114   : > { %v1284_v48 = vpop.f32.mrb[15].mxu0  ;;  %v1332_v54 = vpop.f32.mrb[15].mxu1 }
 0x115   : > { %v675_v51 = vadd.f32 %v1282_v45, %v674_v37  ;;  %v714_v52 = vmul.f32 %v1282_v45, %v1282_v45  ;;  %v1285_v53 = vadd.f32 %v1284_v48, %v1283_v46  ;;  %v1605_v56 = vadd.f32 %v1332_v54, %v1331_v50 }
 0x117   : > { %v745_v57 = vadd.f32 %v744_v41, %v714_v52  ;;  %v676_v58 = vadd.f32 %v1285_v53, %v675_v51  ;;  %v715_v60 = vmul.f32 %v1285_v53, %v1285_v53  ;;  %v1169_v61 = vpack.c.bf16 %v1285_v53, %v1282_v45 }
 0x118   : > { %v1209_v62 = vpack.c.bf16 %v1605_v56, %v1603_v49 }
 0x119   : > { %v746_v63 = vadd.f32 %v745_v57, %v715_v60  ;;  %1233 = vst [vmem:[%s1579_s30 + $0x18] sm:$0xff] %v1169_v61   ;;  %v1286_v0 = vpop.f32.mrb[16].mxu0  ;;  %v1334_v2 = vpop.f32.mrb[16].mxu1 }
 0x11a   : > { %v1287_v1 = vpop.f32.mrb[17].mxu0  ;;  %1241 = vst [vmem:[%s1579_s30 + $0x58] sm:$0xff] %v1209_v62   ;;  %v1335_v5 = vpop.f32.mrb[17].mxu1 }
 0x11b   : > { %v1288_v3 = vadd.f32 %v1287_v1, %v1286_v0  ;;  %v1289_v4 = vpop.f32.mrb[18].mxu0  ;;  %v1611_v7 = vadd.f32 %v1335_v5, %v1334_v2  ;;  %v1337_v8 = vpop.f32.mrb[18].mxu1 }
 0x11c   : > { %v1290_v6 = vpop.f32.mrb[19].mxu0  ;;  %v1338_v13 = vpop.f32.mrb[19].mxu1 }
 0x11d   : > { %v677_v10 = vadd.f32 %v1288_v3, %v676_v58  ;;  %v716_v11 = vmul.f32 %v1288_v3, %v1288_v3  ;;  %v1291_v12 = vadd.f32 %v1290_v6, %v1289_v4  ;;  %v1613_v14 = vadd.f32 %v1338_v13, %v1337_v8 }
 0x11f   : > { %v747_v16 = vadd.f32 %v746_v63, %v716_v11  ;;  %v678_v17 = vadd.f32 %v1291_v12, %v677_v10  ;;  %v717_v18 = vmul.f32 %v1291_v12, %v1291_v12  ;;  %v1174_v19 = vpack.c.bf16 %v1291_v12, %v1288_v3 }
 0x120   : > { %v1214_v20 = vpack.c.bf16 %v1613_v14, %v1611_v7 }
 0x121   : > { %v748_v21 = vadd.f32 %v747_v16, %v717_v18  ;;  %1234 = vst [vmem:[%s1579_s30 + $0x20] sm:$0xff] %v1174_v19   ;;  %v1292_v22 = vpop.f32.mrb[20].mxu0  ;;  %v1340_v24 = vpop.f32.mrb[20].mxu1 }
 0x122   : > { %v1293_v23 = vpop.f32.mrb[21].mxu0  ;;  %1242 = vst [vmem:[%s1579_s30 + $0x60] sm:$0xff] %v1214_v20   ;;  %v1341_v27 = vpop.f32.mrb[21].mxu1 }
 0x123   : > { %v1294_v25 = vadd.f32 %v1293_v23, %v1292_v22  ;;  %v1295_v26 = vpop.f32.mrb[22].mxu0  ;;  %v1619_v30 = vadd.f32 %v1341_v27, %v1340_v24  ;;  %v1343_v31 = vpop.f32.mrb[22].mxu1  ;;  %v724_v27 = vmul.f32 %v1574_v55, %v1574_v55 }
 0x124   : > { %v1296_v28 = vpop.f32.mrb[23].mxu0  ;;  %v1344_v36 = vpop.f32.mrb[23].mxu1 }
 0x125   : > { %v679_v32 = vadd.f32 %v1294_v25, %v678_v17  ;;  %v718_v33 = vmul.f32 %v1294_v25, %v1294_v25  ;;  %v1297_v34 = vadd.f32 %v1296_v28, %v1295_v26  ;;  %v1621_v37 = vadd.f32 %v1344_v36, %v1343_v31 }
 0x126   : > { %v726_v36 = vmul.f32 %v1587_v9, %v1587_v9 }
 0x127   : > { %v749_v38 = vadd.f32 %v748_v21, %v718_v33  ;;  %v680_v39 = vadd.f32 %v1297_v34, %v679_v32  ;;  %v719_v40 = vmul.f32 %v1297_v34, %v1297_v34  ;;  %v1179_v41 = vpack.c.bf16 %v1297_v34, %v1294_v25 }
 0x128   : > { %v1219_v42 = vpack.c.bf16 %v1621_v37, %v1619_v30  ;;  %v725_v32 = vmul.f32 %v1581_v59, %v1581_v59 }
 0x129   : > { %v750_v43 = vadd.f32 %v749_v38, %v719_v40  ;;  %1235 = vst [vmem:[%s1579_s30 + $0x28] sm:$0xff] %v1179_v41   ;;  %v1298_v44 = vpop.f32.mrb[24].mxu0  ;;  %v1346_v46 = vpop.f32.mrb[24].mxu1  ;;  %v727_v40 = vmul.f32 %v1589_v15, %v1589_v15 }
 0x12a   : > { %v1299_v45 = vpop.f32.mrb[25].mxu0  ;;  %1243 = vst [vmem:[%s1579_s30 + $0x68] sm:$0xff] %v1219_v42   ;;  %v1347_v50 = vpop.f32.mrb[25].mxu1  ;;  %v728_v42 = vmul.f32 %v1595_v29, %v1595_v29 }
 0x12b   : > { %v1300_v47 = vadd.f32 %v1299_v45, %v1298_v44  ;;  %v1301_v48 = vpop.f32.mrb[26].mxu0  ;;  %v1627_v52 = vadd.f32 %v1347_v50, %v1346_v46  ;;  %v1349_v53 = vpop.f32.mrb[26].mxu1 }
 0x12c   : > { %v1302_v51 = vpop.f32.mrb[27].mxu0  ;;  %v1350_v60 = vpop.f32.mrb[27].mxu1 }
 0x12d   : > { %v681_v54 = vadd.f32 %v1300_v47, %v680_v39  ;;  %v720_v57 = vmul.f32 %v1300_v47, %v1300_v47  ;;  %v1303_v58 = vadd.f32 %v1302_v51, %v1301_v48  ;;  %v1629_v61 = vadd.f32 %v1350_v60, %v1349_v53 }
 0x12e   : > { %v732_v53 = vmul.f32 %v1611_v7, %v1611_v7 }
 0x12f   : > { %v751_v62 = vadd.f32 %v750_v43, %v720_v57  ;;  %v682_v63 = vadd.f32 %v1303_v58, %v681_v54  ;;  %v721_v0 = vmul.f32 %v1303_v58, %v1303_v58  ;;  %v1184_v1 = vpack.c.bf16 %v1303_v58, %v1300_v47 }
 0x130   : > { %v1224_v2 = vpack.c.bf16 %v1629_v61, %v1627_v52  ;;  %v733_v58 = vmul.f32 %v1613_v14, %v1613_v14 }
 0x131   : > { %v752_v3 = vadd.f32 %v751_v62, %v721_v0  ;;  %1236 = vst [vmem:[%s1579_s30 + $0x30] sm:$0xff] %v1184_v1   ;;  %v1304_v4 = vpop.f32.mrb[28].mxu0  ;;  %v1352_v6 = vpop.f32.mrb[28].mxu1 }
 0x132   : > { %v1305_v5 = vpop.f32.mrb[29].mxu0  ;;  %1244 = vst [vmem:[%s1579_s30 + $0x70] sm:$0xff] %v1224_v2   ;;  %v1353_v11 = vpop.f32.mrb[29].mxu1 }
 0x133   : > { %v1306_v8 = vadd.f32 %v1305_v5, %v1304_v4  ;;  %v1307_v10 = vpop.f32.mrb[30].mxu0  ;;  %v1354_v13 = vadd.f32 %v1353_v11, %v1352_v6  ;;  %v1355_v16 = vpop.f32.mrb[30].mxu1  ;;  %v737_v4 = vmul.f32 %v1629_v61, %v1629_v61 }
 0x134   : > { %v1308_v12 = vpop.f32.mrb[31].mxu0  ;;  %v1356_v20 = vpop.f32.mrb[31].mxu1 }
 0x135   : > { %v683_v17 = vadd.f32 %v1306_v8, %v682_v63  ;;  %v722_v18 = vmul.f32 %v1306_v8, %v1306_v8  ;;  %v1309_v19 = vadd.f32 %v1308_v12, %v1307_v10  ;;  %v1357_v21 = vadd.f32 %v1356_v20, %v1355_v16 }
 0x137   : > { %v753_v22 = vadd.f32 %v752_v3, %v722_v18  ;;  %v684_v23 = vadd.f32 %v1309_v19, %v683_v17  ;;  %v723_v24 = vmul.f32 %v1309_v19, %v1309_v19  ;;  %v1189_v25 = vpack.c.bf16 %v1309_v19, %v1306_v8 }
 0x138   : > { %v1229_v26 = vpack.c.bf16 %v1357_v21, %v1354_v13 }
 0x139   : > { %v685_v28 = vadd.f32 %v1574_v55, %v684_v23  ;;  %v754_v31 = vadd.f32 %v753_v22, %v723_v24  ;;  %1237 = vst [vmem:[%s1579_s30 + $0x38] sm:$0xff] %v1189_v25  }
 0x13a   : > { %1245 = vst [vmem:[%s1579_s30 + $0x78] sm:$0xff] %v1229_v26  }
 0x13b   : > { %v686_v33 = vadd.f32 %v1581_v59, %v685_v28  ;;  %v755_v34 = vadd.f32 %v754_v31, %v724_v27  ;;  %v729_v59 = vmul.f32 %v1597_v35, %v1597_v35 }
 0x13d   : > { %v687_v38 = vadd.f32 %v1587_v9, %v686_v33  ;;  %v756_v39 = vadd.f32 %v755_v34, %v725_v32  ;;  %v730_v9 = vmul.f32 %v1603_v49, %v1603_v49 }
 0x13f   : > { %v688_v55 = vadd.f32 %v1589_v15, %v687_v38  ;;  %v757_v41 = vadd.f32 %v756_v39, %v726_v36  ;;  %v731_v15 = vmul.f32 %v1605_v56, %v1605_v56 }
 0x141   : > { %v758_v43 = vadd.f32 %v757_v41, %v727_v40  ;;  %v689_v44 = vadd.f32 %v1595_v29, %v688_v55 }
 0x143   : > { %v690_v45 = vadd.f32 %v1597_v35, %v689_v44  ;;  %v759_v46 = vadd.f32 %v758_v43, %v728_v42 }
 0x145   : > { %v691_v47 = vadd.f32 %v1603_v49, %v690_v45  ;;  %v760_v48 = vadd.f32 %v759_v46, %v729_v59 }
 0x147   : > { %v692_v50 = vadd.f32 %v1605_v56, %v691_v47  ;;  %v761_v51 = vadd.f32 %v760_v48, %v730_v9  ;;  %v734_v56 = vmul.f32 %v1619_v30, %v1619_v30 }
 0x149   : > { %v693_v29 = vadd.f32 %v1611_v7, %v692_v50  ;;  %v762_v54 = vadd.f32 %v761_v51, %v731_v15  ;;  %v735_v7 = vmul.f32 %v1621_v37, %v1621_v37 }
 0x14b   : > { %v763_v35 = vadd.f32 %v762_v54, %v732_v53  ;;  %v694_v57 = vadd.f32 %v1613_v14, %v693_v29  ;;  %v736_v14 = vmul.f32 %v1627_v52, %v1627_v52 }
 0x14d   : > { %v764_v49 = vadd.f32 %v763_v35, %v733_v58  ;;  %v695_v60 = vadd.f32 %v1619_v30, %v694_v57  ;;  %v738_v30 = vmul.f32 %v1354_v13, %v1354_v13 }
 0x14f   : > { %v765_v62 = vadd.f32 %v764_v49, %v734_v56  ;;  %v696_v63 = vadd.f32 %v1621_v37, %v695_v60  ;;  %v739_v37 = vmul.f32 %v1357_v21, %v1357_v21 }
 0x151   : > { %v766_v0 = vadd.f32 %v765_v62, %v735_v7  ;;  %v697_v1 = vadd.f32 %v1627_v52, %v696_v63 }
 0x153   : > { %v767_v2 = vadd.f32 %v766_v0, %v736_v14  ;;  %v698_v3 = vadd.f32 %v1629_v61, %v697_v1 }
 0x155   : > { %v768_v5 = vadd.f32 %v767_v2, %v737_v4  ;;  %v699_v6 = vadd.f32 %v1354_v13, %v698_v3 }
 0x157   : > { %v769_v8 = vadd.f32 %v768_v5, %v738_v30  ;;  %v700_v10 = vadd.f32 %v1357_v21, %v699_v6 }
 0x159   : > { %v701_v11 = vrot.slane %v700_v10, 4  ;;  %v770_v12 = vadd.f32 %v769_v8, %v739_v37 }
 0x15b   : > { %v702_v16 = vadd.f32 %v701_v11, %v700_v10  ;;  %v771_v17 = vrot.slane %v770_v12, 4 }
 0x15d   : > { %v703_v18 = vrot.slane %v702_v16, 2  ;;  %v772_v52 = vadd.f32 %v771_v17, %v770_v12 }
 0x15f   : > { %v704_v19 = vadd.f32 %v703_v18, %v702_v16  ;;  %v773_v20 = vrot.slane %v772_v52, 2 }
 0x161   : > { %v705_v22 = vrot.slane %v704_v19, 1  ;;  %v774_v23 = vadd.f32 %v773_v20, %v772_v52 }
 0x163   : > { %v706_v61 = vadd.f32 %v705_v22, %v704_v19  ;;  %v775_v13 = vrot.slane %v774_v23, 1 }
 0x165   : > { %707 = vst [vmem:[%s187_s6] sm:$0x1] %v706_v61  ;;  %v776_v21 = vadd.f32 %v775_v13, %v774_v23 }
 0x167   : > { %777 = vst [vmem:[%s187_s6 + $0x1] sm:$0x1] %v776_v21 }
 0x168 PF: > { %s14_s12 = sadd.s32 1, %s1452_s12  }
 0x169   : > { %p11_p5 = scmp.ge.s32.totalorder %s14_s12, 4  }
 0x16b   :  { %13 = sbr.rel (!%p11_p5) target bundleno = 1 (0x1), region = 70 }

// kernel: sdf_encoder_forward.7
= control target key start
LH: loop header
LB: loop body
LE: loop exit
PB: predicated region body
PF: predicated region fallthrough
CT: control target
= control target key end

     0   :  { %s1107_s12 = smov 0   ;;  %s1256_s0 = inlined_call_operand.vmem [shape: bf16[128,512], index: 0, kind: input, shape index: {}]   ;;  %s1257_s1 = inlined_call_operand.vmem [shape: bf16[512,128], index: 1, kind: input, shape index: {}]   ;;  %s1258_s2 = inlined_call_operand.vmem [shape: bf16[128,128], index: 2, kind: output, shape index: {0}]   ;;  %s1259_s3 = inlined_call_operand.vmem [shape: f32[16,128], index: 3, kind: output, shape index: {1}]  }
   0x1 LB: > { %s1113_s13 = sadd.s32 4294967295, %s1085_s12   ;;  %p838_p0 = scmp.ge.s32.totalorder %s1085_s12, 1  ;;  %s1085_s12 = sphi %s1107_s12, %s14_s12  }
   0x2   : > { %p142_p1 = scmp.lt.s32.totalorder %s1085_s12, 3 }
   0x4   : > { %p143_p2 = pnand %p838_p0, %p142_p1 }
   0x5   : > { %v1023_v0 = vld [vmem:[%s1257_s1 + $0x40] sm:$0xff] (!%p143_p2)   ;;  %v1027_v4 = vld [vmem:[%s1257_s1 + $0x48] sm:$0xff] (!%p143_p2)   ;;  %v1031_v8 = vld [vmem:[%s1257_s1 + $0x50] sm:$0xff] (!%p143_p2)   ;;  %s839_s21 = sshll.u32 (!%p143_p2), %s1113_s13, 3  ;;  %p184_p4 = scmp.lt.s32.totalorder (!%p143_p2), %s1113_s13, 1 }
   0x6   : > { %146 = sbr.rel (%p143_p2) target bundleno = 300 (0x12c), region = 28  ;;  %v1024_v1 = vld [vmem:[%s1257_s1 + $0xc0] sm:$0xff] (!%p143_p2)   ;;  %935 = vmatprep.subr.bf16.mxu0 (!%p143_p2), %v1023_v0  ;;  %v1028_v5 = vld [vmem:[%s1257_s1 + $0xc8] sm:$0xff] (!%p143_p2)   ;;  %v1032_v9 = vld [vmem:[%s1257_s1 + $0xd0] sm:$0xff] (!%p143_p2)   ;;  %p172_p3 = scmp.lt.s32.totalorder (!%p143_p2), %s839_s21, 15 }
   0x7   : > { %v1025_v2 = vld [vmem:[%s1257_s1] sm:$0xff] (!%p143_p2)   ;;  %975 = vmatprep.subr.bf16.mxu1 (!%p143_p2), %v1024_v1  ;;  %v1029_v6 = vld [vmem:[%s1257_s1 + $0x8] sm:$0xff] (!%p143_p2)   ;;  %v1033_v10 = vld [vmem:[%s1257_s1 + $0x10] sm:$0xff] (!%p143_p2)  }
   0x8   : > { %v1026_v3 = vld [vmem:[%s1257_s1 + $0x80] sm:$0xff] (!%p143_p2)   ;;  %936 = vmatpush3.bf16.msra.mxu0 (!%p143_p2), %v1025_v2  ;;  %v1030_v7 = vld [vmem:[%s1257_s1 + $0x88] sm:$0xff] (!%p143_p2)   ;;  %v1034_v11 = vld [vmem:[%s1257_s1 + $0x90] sm:$0xff] (!%p143_p2)  }
   0x9   : > { %976 = vmatpush3.bf16.msra.mxu1 (!%p143_p2), %v1026_v3  ;;  %937 = vmatprep.subr.bf16.mxu0 (!%p143_p2), %v1027_v4  ;;  %v1035_v12 = vld [vmem:[%s1257_s1 + $0x58] sm:$0xff] (!%p143_p2)   ;;  %v1039_v16 = vld [vmem:[%s1257_s1 + $0x60] sm:$0xff] (!%p143_p2)   ;;  %v1043_v20 = vld [vmem:[%s1257_s1 + $0x68] sm:$0xff] (!%p143_p2)  }
   0xa   : > { %977 = vmatprep.subr.bf16.mxu1 (!%p143_p2), %v1028_v5  ;;  %v1036_v13 = vld [vmem:[%s1257_s1 + $0xd8] sm:$0xff] (!%p143_p2)   ;;  %v1040_v17 = vld [vmem:[%s1257_s1 + $0xe0] sm:$0xff] (!%p143_p2)   ;;  %v1044_v21 = vld [vmem:[%s1257_s1 + $0xe8] sm:$0xff] (!%p143_p2)  }
   0xb   : > { %v1037_v14 = vld [vmem:[%s1257_s1 + $0x18] sm:$0xff] (!%p143_p2)   ;;  %v1041_v18 = vld [vmem:[%s1257_s1 + $0x20] sm:$0xff] (!%p143_p2)   ;;  %v1045_v22 = vld [vmem:[%s1257_s1 + $0x28] sm:$0xff] (!%p143_p2)  }
   0xc   : > { %938 = vmatpush3.bf16.msra.mxu0 (!%p143_p2), %v1029_v6  ;;  %v1038_v15 = vld [vmem:[%s1257_s1 + $0x98] sm:$0xff] (!%p143_p2)   ;;  %v1042_v19 = vld [vmem:[%s1257_s1 + $0xa0] sm:$0xff] (!%p143_p2)   ;;  %v1046_v23 = vld [vmem:[%s1257_s1 + $0xa8] sm:$0xff] (!%p143_p2)  }
   0xd   : > { %978 = vmatpush3.bf16.msra.mxu1 %v1030_v7  ;;  %939 = vmatprep.subr.bf16.mxu0 %v1031_v8  ;;  %s1261_s21 = smov (!%p172_p3, %s839_s21), 15  ;;  %v1047_v24 = vld [vmem:[%s1257_s1 + $0x70] sm:$0xff]   ;;  %v1051_v28 = vld [vmem:[%s1257_s1 + $0x78] sm:$0xff]   ;;  %s1263_s13 = smov (!%p184_p4, %s1113_s13), 1 }
   0xe   : > { %979 = vmatprep.subr.bf16.mxu1 %v1032_v9  ;;  %v1048_v25 = vld [vmem:[%s1257_s1 + $0xf0] sm:$0xff]   ;;  %s903_s19 = sshll.u32 %s1261_s21, 4  ;;  %v1052_v29 = vld [vmem:[%s1257_s1 + $0xf8] sm:$0xff]   ;;  %s843_s7 = sshll.u32 %s1261_s21, 2 }
   0xf   : > { %v1049_v26 = vld [vmem:[%s1257_s1 + $0x30] sm:$0xff]   ;;  %s1214_s29 = scalar_lea.vmem %s1256_s0, %s903_s19  ;;  %v1053_v30 = vld [vmem:[%s1257_s1 + $0x38] sm:$0xff]   ;;  %s1242_s10 = scalar_lea.vmem %s1258_s2, %s843_s7 }
  0x10   : > { %940 = vmatpush3.bf16.msra.mxu0 %v1033_v10  ;;  %v1050_v27 = vld [vmem:[%s1257_s1 + $0xb0] sm:$0xff]   ;;  %v1054_v31 = vld [vmem:[%s1257_s1 + $0xb8] sm:$0xff]   ;;  %s844_s21 = sshll.u32 %s1263_s13, 3 }
  0x11   : > { %980 = vmatpush3.bf16.msra.mxu1 %v1034_v11  ;;  %941 = vmatprep.subr.bf16.mxu0 %v1035_v12  ;;  %v1055_v32 = vld [vmem:[%s1214_s29] ss:$16 sps:$4 sm:$0xff]   ;;  %v1057_v33 = vld [vmem:[%s1214_s29 + $0x4] ss:$16 sps:$4 sm:$0xff]   ;;  %v1058_v34 = vld [vmem:[%s1214_s29 + $0x8] ss:$16 sps:$4 sm:$0xff]   ;;  %s187_s15 = scalar_lea.vmem %s1259_s3, %s844_s21 }
  0x12   : > { %981 = vmatprep.subr.bf16.mxu1 %v1036_v13  ;;  %v1060_v35 = vld [vmem:[%s1214_s29 + $0xc] ss:$16 sps:$4 sm:$0xff]   ;;  %573 = vmatprep.mubr.bf16.mxu0 %v1057_v33  ;;  %v1061_v36 = vld [vmem:[%s1214_s29 + $0x24] ss:$16 sps:$4 sm:$0xff]   ;;  %v1065_v38 = vld [vmem:[%s1214_s29 + $0x20] ss:$16 sps:$4 sm:$0xff]  }
  0x13   : > { %638 = vmatprep.mubr.bf16.mxu1 %v1060_v35  ;;  %v1063_v37 = vld [vmem:[%s1214_s29 + $0x2c] ss:$16 sps:$4 sm:$0xff]   ;;  %v1066_v39 = vld [vmem:[%s1214_s29 + $0x28] ss:$16 sps:$4 sm:$0xff]   ;;  %v1067_v40 = vld [vmem:[%s1214_s29 + $0x44] ss:$16 sps:$4 sm:$0xff]  }
  0x14   : > { %942 = vmatpush3.bf16.msra.mxu0 %v1037_v14  ;;  %v1069_v41 = vld [vmem:[%s1214_s29 + $0x4c] ss:$16 sps:$4 sm:$0xff]   ;;  %v1071_v42 = vld [vmem:[%s1214_s29 + $0x40] ss:$16 sps:$4 sm:$0xff]   ;;  %v1072_v43 = vld [vmem:[%s1214_s29 + $0x48] ss:$16 sps:$4 sm:$0xff]  }
  0x15   : > { %982 = vmatpush3.bf16.msra.mxu1 %v1038_v15  ;;  %943 = vmatprep.subr.bf16.mxu0 %v1039_v16  ;;  %v1073_v44 = vld [vmem:[%s1214_s29 + $0x64] ss:$16 sps:$4 sm:$0xff]   ;;  %v1075_v45 = vld [vmem:[%s1214_s29 + $0x6c] ss:$16 sps:$4 sm:$0xff]   ;;  %v1077_v46 = vld [vmem:[%s1214_s29 + $0x60] ss:$16 sps:$4 sm:$0xff]  }
  0x16   : > { %983 = vmatprep.subr.bf16.mxu1 %v1040_v17  ;;  %v1078_v47 = vld [vmem:[%s1214_s29 + $0x68] ss:$16 sps:$4 sm:$0xff]  }
  0x18   : > { %944 = vmatpush3.bf16.msra.mxu0 %v1041_v18 }
  0x19   : > { %984 = vmatpush3.bf16.msra.mxu1 %v1042_v19  ;;  %945 = vmatprep.subr.bf16.mxu0 %v1043_v20 }
  0x1a   : > { %985 = vmatprep.subr.bf16.mxu1 %v1044_v21 }
  0x1c   : > { %946 = vmatpush3.bf16.msra.mxu0 %v1045_v22 }
  0x1d   : > { %986 = vmatpush3.bf16.msra.mxu1 %v1046_v23  ;;  %947 = vmatprep.subr.bf16.mxu0 %v1047_v24 }
  0x1e   : > { %987 = vmatprep.subr.bf16.mxu1 %v1048_v25 }
  0x20   : > { %948 = vmatpush3.bf16.msra.mxu0 %v1049_v26 }
  0x21   : > { %988 = vmatpush3.bf16.msra.mxu1 %v1050_v27  ;;  %949 = vmatprep.subr.bf16.mxu0 %v1051_v28 }
  0x22   : > { %989 = vmatprep.subr.bf16.mxu1 %v1052_v29 }
  0x24   : > { %950 = vmatpush3.bf16.msra.mxu0 %v1053_v30 }
  0x25   : > { %990 = vmatpush3.bf16.msra.mxu1 %v1054_v31 }
  0x27   : > { %574 = vmatmul.mubr.bf16.vlgmr.msra.gmra.mrb[0].mxu0 %v1055_v32 }
  0x28   : > { %639 = vmatmul.mubr.bf16.vlgmr.msra.gmra.mrb[0].mxu1 %v1058_v34  ;;  %581 = vmatprep.mubr.bf16.mxu0 %v1061_v36 }
  0x29   : > { %646 = vmatprep.mubr.bf16.mxu1 %v1063_v37 }
  0x2f   : > { %582 = vmatmul.mubr.bf16.gmra.mrb[4].mxu0 %v1065_v38 }
  0x30   : > { %647 = vmatmul.mubr.bf16.gmra.mrb[4].mxu1 %v1066_v39  ;;  %589 = vmatprep.mubr.bf16.mxu0 %v1067_v40 }
  0x31   : > { %654 = vmatprep.mubr.bf16.mxu1 %v1069_v41 }
  0x37   : > { %590 = vmatmul.mubr.bf16.gmra.mrb[8].mxu0 %v1071_v42 }
  0x38   : > { %655 = vmatmul.mubr.bf16.gmra.mrb[8].mxu1 %v1072_v43  ;;  %597 = vmatprep.mubr.bf16.mxu0 %v1073_v44 }
  0x39   : > { %662 = vmatprep.mubr.bf16.mxu1 %v1075_v45 }
  0x3f   : > { %598 = vmatmul.mubr.bf16.gmra.mrb[12].mxu0 %v1077_v46 }
  0x40   : > { %663 = vmatmul.mubr.bf16.gmra.mrb[12].mxu1 %v1078_v47 }
  0xfa   : > { %v951_v48 = vpop.f32.mrb[0].mxu0 }
  0xfb   : > { %v991_v49 = vpop.f32.mrb[0].mxu1  ;;  %v952_v50 = vpop.f32.mrb[1].mxu0 }
  0xfc   : > { %v953_v51 = vadd.f32 %v952_v50, %v951_v48  ;;  %v992_v52 = vpop.f32.mrb[1].mxu1  ;;  %v954_v53 = vpop.f32.mrb[2].mxu0 }
  0xfd   : > { %v993_v54 = vadd.f32 %v992_v52, %v991_v49  ;;  %v994_v55 = vpop.f32.mrb[2].mxu1  ;;  %v955_v56 = vpop.f32.mrb[3].mxu0 }
  0xfe   : > { %v956_v57 = vadd.f32 %v955_v56, %v954_v53  ;;  %v995_v58 = vpop.f32.mrb[3].mxu1 }
  0xff   : > { %v641_v59 = vadd.f32 %v993_v54, %v953_v51  ;;  %v996_v60 = vadd.f32 %v995_v58, %v994_v55 }
 0x101   : > { %v644_v61 = vadd.f32 %v996_v60, %v956_v57  ;;  %v685_v63 = vmul.f32 %v641_v59, %v641_v59 }
 0x102   : > { %v957_v62 = vpop.f32.mrb[4].mxu0 }
 0x103   : > { %v671_v0 = vadd.f32 %v644_v61, %v641_v59  ;;  %v686_v1 = vmul.f32 %v644_v61, %v644_v61  ;;  %v915_v2 = vpack.c.bf16 %v644_v61, %v641_v59  ;;  %v997_v3 = vpop.f32.mrb[4].mxu1  ;;  %v958_v4 = vpop.f32.mrb[5].mxu0 }
 0x104   : > { %v959_v5 = vadd.f32 %v958_v4, %v957_v62  ;;  %v998_v6 = vpop.f32.mrb[5].mxu1  ;;  %v960_v7 = vpop.f32.mrb[6].mxu0 }
 0x105   : > { %v693_v8 = vadd.f32 %v686_v1, %v685_v63  ;;  %916 = vst [vmem:[%s1242_s10] sm:$0xff] %v915_v2   ;;  %v999_v9 = vadd.f32 %v998_v6, %v997_v3  ;;  %v1000_v10 = vpop.f32.mrb[6].mxu1  ;;  %v961_v11 = vpop.f32.mrb[7].mxu0 }
 0x106   : > { %v962_v12 = vadd.f32 %v961_v11, %v960_v7  ;;  %v1001_v13 = vpop.f32.mrb[7].mxu1 }
 0x107   : > { %v649_v14 = vadd.f32 %v999_v9, %v959_v5  ;;  %v1002_v15 = vadd.f32 %v1001_v13, %v1000_v10 }
 0x109   : > { %v672_v16 = vadd.f32 %v671_v0, %v649_v14  ;;  %v687_v17 = vmul.f32 %v649_v14, %v649_v14  ;;  %v652_v18 = vadd.f32 %v1002_v15, %v962_v12 }
 0x10a   : > { %v963_v19 = vpop.f32.mrb[8].mxu0 }
 0x10b   : > { %v694_v20 = vadd.f32 %v693_v8, %v687_v17  ;;  %v673_v21 = vadd.f32 %v672_v16, %v652_v18  ;;  %v688_v22 = vmul.f32 %v652_v18, %v652_v18  ;;  %v920_v23 = vpack.c.bf16 %v652_v18, %v649_v14  ;;  %v1003_v24 = vpop.f32.mrb[8].mxu1  ;;  %v964_v25 = vpop.f32.mrb[9].mxu0 }
 0x10c   : > { %v965_v26 = vadd.f32 %v964_v25, %v963_v19  ;;  %v1004_v27 = vpop.f32.mrb[9].mxu1  ;;  %v966_v28 = vpop.f32.mrb[10].mxu0 }
 0x10d   : > { %v695_v29 = vadd.f32 %v694_v20, %v688_v22  ;;  %932 = vst [vmem:[%s1242_s10 + $0x8] sm:$0xff] %v920_v23   ;;  %v1005_v30 = vadd.f32 %v1004_v27, %v1003_v24  ;;  %v1006_v31 = vpop.f32.mrb[10].mxu1  ;;  %v967_v32 = vpop.f32.mrb[11].mxu0 }
 0x10e   : > { %v968_v33 = vadd.f32 %v967_v32, %v966_v28  ;;  %v1007_v34 = vpop.f32.mrb[11].mxu1 }
 0x10f   : > { %v657_v35 = vadd.f32 %v1005_v30, %v965_v26  ;;  %v1008_v36 = vadd.f32 %v1007_v34, %v1006_v31 }
 0x111   : > { %v674_v37 = vadd.f32 %v673_v21, %v657_v35  ;;  %v689_v38 = vmul.f32 %v657_v35, %v657_v35  ;;  %v660_v39 = vadd.f32 %v1008_v36, %v968_v33 }
 0x112   : > { %v969_v40 = vpop.f32.mrb[12].mxu0 }
 0x113   : > { %v696_v41 = vadd.f32 %v695_v29, %v689_v38  ;;  %v675_v42 = vadd.f32 %v674_v37, %v660_v39  ;;  %v690_v43 = vmul.f32 %v660_v39, %v660_v39  ;;  %v925_v44 = vpack.c.bf16 %v660_v39, %v657_v35  ;;  %v1009_v45 = vpop.f32.mrb[12].mxu1  ;;  %v970_v46 = vpop.f32.mrb[13].mxu0 }
 0x114   : > { %v971_v47 = vadd.f32 %v970_v46, %v969_v40  ;;  %v1010_v48 = vpop.f32.mrb[13].mxu1  ;;  %v972_v49 = vpop.f32.mrb[14].mxu0 }
 0x115   : > { %v697_v50 = vadd.f32 %v696_v41, %v690_v43  ;;  %933 = vst [vmem:[%s1242_s10 + $0x10] sm:$0xff] %v925_v44   ;;  %v1011_v51 = vadd.f32 %v1010_v48, %v1009_v45  ;;  %v1012_v52 = vpop.f32.mrb[14].mxu1  ;;  %v973_v53 = vpop.f32.mrb[15].mxu0 }
 0x116   : > { %v974_v54 = vadd.f32 %v973_v53, %v972_v49  ;;  %v1013_v55 = vpop.f32.mrb[15].mxu1 }
 0x117   : > { %v665_v56 = vadd.f32 %v1011_v51, %v971_v47  ;;  %v1014_v57 = vadd.f32 %v1013_v55, %v1012_v52 }
 0x119   : > { %v676_v58 = vadd.f32 %v675_v42, %v665_v56  ;;  %v691_v59 = vmul.f32 %v665_v56, %v665_v56  ;;  %v668_v60 = vadd.f32 %v1014_v57, %v974_v54 }
 0x11b   : > { %v698_v61 = vadd.f32 %v697_v50, %v691_v59  ;;  %v677_v62 = vadd.f32 %v676_v58, %v668_v60  ;;  %v692_v63 = vmul.f32 %v668_v60, %v668_v60  ;;  %v930_v0 = vpack.c.bf16 %v668_v60, %v665_v56 }
 0x11d   : > { %v678_v1 = vrot.slane %v677_v62, 4  ;;  %v699_v2 = vadd.f32 %v698_v61, %v692_v63  ;;  %934 = vst [vmem:[%s1242_s10 + $0x18] sm:$0xff] %v930_v0  }
 0x11f   : > { %v679_v3 = vadd.f32 %v678_v1, %v677_v62  ;;  %v700_v4 = vrot.slane %v699_v2, 4 }
 0x121   : > { %v680_v5 = vrot.slane %v679_v3, 2  ;;  %v701_v6 = vadd.f32 %v700_v4, %v699_v2 }
 0x123   : > { %v681_v7 = vadd.f32 %v680_v5, %v679_v3  ;;  %v702_v8 = vrot.slane %v701_v6, 2 }
 0x125   : > { %v682_v9 = vrot.slane %v681_v7, 1  ;;  %v703_v10 = vadd.f32 %v702_v8, %v701_v6 }
 0x127   : > { %v683_v11 = vadd.f32 %v682_v9, %v681_v7  ;;  %v704_v12 = vrot.slane %v703_v10, 1 }
 0x129   : > { %684 = vst [vmem:[%s187_s15] sm:$0x1] %v683_v11  ;;  %v705_v13 = vadd.f32 %v704_v12, %v703_v10 }
 0x12b   : > { %706 = vst [vmem:[%s187_s15 + $0x1] sm:$0x1] %v705_v13 }
 0x12c PF: > { %s14_s12 = sadd.s32 1, %s1085_s12  }
 0x12d   : > { %p11_p5 = scmp.ge.s32.totalorder %s14_s12, 4  }
 0x12f   :  { %13 = sbr.rel (!%p11_p5) target bundleno = 1 (0x1), region = 70 }

// kernel: sdf_encoder_forward.8
= control target key start
LH: loop header
LB: loop body
LE: loop exit
PB: predicated region body
PF: predicated region fallthrough
CT: control target
= control target key end

     0   :  { %s1311_s12 = smov 0   ;;  %s1542_s0 = inlined_call_operand.vmem [shape: bf16[32,1024], index: 0, kind: input, shape index: {}]   ;;  %s1543_s1 = inlined_call_operand.vmem [shape: bf16[1024,128], index: 1, kind: input, shape index: {}]   ;;  %s1544_s2 = inlined_call_operand.vmem [shape: bf16[32,128], index: 2, kind: output, shape index: {0}]   ;;  %s1545_s3 = inlined_call_operand.vmem [shape: f32[16,128], index: 3, kind: output, shape index: {1}]  }
   0x1 LB: > { %s1317_s13 = sadd.s32 4294967295, %s1289_s12   ;;  %p1032_p0 = scmp.ge.s32.totalorder %s1289_s12, 1  ;;  %s1289_s12 = sphi %s1311_s12, %s14_s12  }
   0x2   : > { %p142_p1 = scmp.lt.s32.totalorder %s1289_s12, 3 }
   0x4   : > { %p143_p2 = pnand %p1032_p0, %p142_p1 }
   0x5   : > { %v1219_v0 = vld [vmem:[%s1543_s1 + $0x40] sm:$0xff] (!%p143_p2)   ;;  %v1223_v4 = vld [vmem:[%s1543_s1 + $0x48] sm:$0xff] (!%p143_p2)   ;;  %v1227_v8 = vld [vmem:[%s1543_s1 + $0x50] sm:$0xff] (!%p143_p2)   ;;  %s1033_s21 = sshll.u32 (!%p143_p2), %s1317_s13, 1  ;;  %p184_p4 = scmp.lt.s32.totalorder (!%p143_p2), %s1317_s13, 1 }
   0x6   : > { %146 = sbr.rel (%p143_p2) target bundleno = 309 (0x135), region = 28  ;;  %v1220_v1 = vld [vmem:[%s1543_s1 + $0xc0] sm:$0xff] (!%p143_p2)   ;;  %1123 = vmatprep.subr.bf16.mxu0 (!%p143_p2), %v1219_v0  ;;  %v1224_v5 = vld [vmem:[%s1543_s1 + $0xc8] sm:$0xff] (!%p143_p2)   ;;  %v1228_v9 = vld [vmem:[%s1543_s1 + $0xd0] sm:$0xff] (!%p143_p2)   ;;  %p172_p3 = scmp.lt.s32.totalorder (!%p143_p2), %s1033_s21, 3 }
   0x7   : > { %v1221_v2 = vld [vmem:[%s1543_s1] sm:$0xff] (!%p143_p2)   ;;  %1145 = vmatprep.subr.bf16.mxu1 (!%p143_p2), %v1220_v1  ;;  %v1225_v6 = vld [vmem:[%s1543_s1 + $0x8] sm:$0xff] (!%p143_p2)   ;;  %v1229_v10 = vld [vmem:[%s1543_s1 + $0x10] sm:$0xff] (!%p143_p2)  }
   0x8   : > { %v1222_v3 = vld [vmem:[%s1543_s1 + $0x80] sm:$0xff] (!%p143_p2)   ;;  %1124 = vmatpush3.bf16.msra.mxu0 (!%p143_p2), %v1221_v2  ;;  %v1226_v7 = vld [vmem:[%s1543_s1 + $0x88] sm:$0xff] (!%p143_p2)   ;;  %v1230_v11 = vld [vmem:[%s1543_s1 + $0x90] sm:$0xff] (!%p143_p2)  }
   0x9   : > { %1146 = vmatpush3.bf16.msra.mxu1 (!%p143_p2), %v1222_v3  ;;  %1125 = vmatprep.subr.bf16.mxu0 (!%p143_p2), %v1223_v4  ;;  %v1231_v12 = vld [vmem:[%s1543_s1 + $0x58] sm:$0xff] (!%p143_p2)   ;;  %v1235_v16 = vld [vmem:[%s1543_s1 + $0x60] sm:$0xff] (!%p143_p2)   ;;  %v1239_v20 = vld [vmem:[%s1543_s1 + $0x68] sm:$0xff] (!%p143_p2)  }
   0xa   : > { %1147 = vmatprep.subr.bf16.mxu1 (!%p143_p2), %v1224_v5  ;;  %v1232_v13 = vld [vmem:[%s1543_s1 + $0xd8] sm:$0xff] (!%p143_p2)   ;;  %v1236_v17 = vld [vmem:[%s1543_s1 + $0xe0] sm:$0xff] (!%p143_p2)   ;;  %v1240_v21 = vld [vmem:[%s1543_s1 + $0xe8] sm:$0xff] (!%p143_p2)  }
   0xb   : > { %v1233_v14 = vld [vmem:[%s1543_s1 + $0x18] sm:$0xff] (!%p143_p2)   ;;  %v1237_v18 = vld [vmem:[%s1543_s1 + $0x20] sm:$0xff] (!%p143_p2)   ;;  %v1241_v22 = vld [vmem:[%s1543_s1 + $0x28] sm:$0xff] (!%p143_p2)  }
   0xc   : > { %1126 = vmatpush3.bf16.msra.mxu0 (!%p143_p2), %v1225_v6  ;;  %v1234_v15 = vld [vmem:[%s1543_s1 + $0x98] sm:$0xff] (!%p143_p2)   ;;  %v1238_v19 = vld [vmem:[%s1543_s1 + $0xa0] sm:$0xff] (!%p143_p2)   ;;  %v1242_v23 = vld [vmem:[%s1543_s1 + $0xa8] sm:$0xff] (!%p143_p2)  }
   0xd   : > { %1148 = vmatpush3.bf16.msra.mxu1 %v1226_v7  ;;  %1127 = vmatprep.subr.bf16.mxu0 %v1227_v8  ;;  %s1547_s21 = smov (!%p172_p3, %s1033_s21), 3  ;;  %v1243_v24 = vld [vmem:[%s1543_s1 + $0x70] sm:$0xff]   ;;  %v1247_v28 = vld [vmem:[%s1543_s1 + $0x78] sm:$0xff]   ;;  %v1251_v40 = vld [vmem:[%s1543_s1 + $0x140] sm:$0xff]   ;;  %s1549_s13 = smov (!%p184_p4, %s1317_s13), 1 }
   0xe   : > { %1149 = vmatprep.subr.bf16.mxu1 %v1228_v9  ;;  %v1244_v25 = vld [vmem:[%s1543_s1 + $0xf0] sm:$0xff]   ;;  %s1115_s19 = sshll.u32 %s1547_s21, 5  ;;  %v1248_v29 = vld [vmem:[%s1543_s1 + $0xf8] sm:$0xff]   ;;  %v1252_v41 = vld [vmem:[%s1543_s1 + $0x1c0] sm:$0xff]   ;;  %s1038_s5 = sshll.u32 %s1549_s13, 3 }
   0xf   : > { %v1245_v26 = vld [vmem:[%s1543_s1 + $0x30] sm:$0xff]   ;;  %s1418_s29 = scalar_lea.vmem %s1542_s0, %s1115_s19  ;;  %v1249_v30 = vld [vmem:[%s1543_s1 + $0x38] sm:$0xff]   ;;  %v1253_v42 = vld [vmem:[%s1543_s1 + $0x100] sm:$0xff]   ;;  %s187_s7 = scalar_lea.vmem %s1545_s3, %s1038_s5 }
  0x10   : > { %1128 = vmatpush3.bf16.msra.mxu0 %v1229_v10  ;;  %v1246_v27 = vld [vmem:[%s1543_s1 + $0xb0] sm:$0xff]   ;;  %v1250_v31 = vld [vmem:[%s1543_s1 + $0xb8] sm:$0xff]   ;;  %v189_v32 = vld [vmem:[%s1418_s29] sm:$0xff] }
  0x11   : > { %1150 = vmatpush3.bf16.msra.mxu1 %v1230_v11  ;;  %1129 = vmatprep.subr.bf16.mxu0 %v1231_v12  ;;  %v193_v33 = vld [vmem:[%s1418_s29 + $0x20] sm:$0xff]  ;;  %v190_v34 = vld [vmem:[%s1418_s29 + $0x8] sm:$0xff]  ;;  %v1259_v48 = vld [vmem:[%s1543_s1 + $0x150] sm:$0xff]  }
  0x12   : > { %1151 = vmatprep.subr.bf16.mxu1 %v1232_v13  ;;  %v1039_v35 = vcombine.low %v189_v32, %v193_v33  ;;  %v1040_v36 = vcombine.high %v189_v32, %v193_v33  ;;  %v194_v37 = vld [vmem:[%s1418_s29 + $0x28] sm:$0xff]  ;;  %v1254_v43 = vld [vmem:[%s1543_s1 + $0x180] sm:$0xff]   ;;  %v1260_v49 = vld [vmem:[%s1543_s1 + $0x1d0] sm:$0xff]  }
  0x13   : > { %v1041_v38 = vcombine.low %v190_v34, %v194_v37  ;;  %v1042_v39 = vcombine.high %v190_v34, %v194_v37  ;;  %v1255_v44 = vld [vmem:[%s1543_s1 + $0x148] sm:$0xff]   ;;  %v1261_v50 = vld [vmem:[%s1543_s1 + $0x110] sm:$0xff]   ;;  %v1263_v52 = vld [vmem:[%s1543_s1 + $0x158] sm:$0xff]  }
  0x14   : > { %1130 = vmatpush3.bf16.msra.mxu0 %v1233_v14  ;;  %781 = vmatprep.mubr.bf16.mxu0 %v1040_v36  ;;  %v1256_v45 = vld [vmem:[%s1543_s1 + $0x1c8] sm:$0xff]   ;;  %v1262_v51 = vld [vmem:[%s1543_s1 + $0x190] sm:$0xff]   ;;  %v1264_v53 = vld [vmem:[%s1543_s1 + $0x1d8] sm:$0xff]  }
  0x15   : > { %1152 = vmatpush3.bf16.msra.mxu1 %v1234_v15  ;;  %1131 = vmatprep.subr.bf16.mxu0 %v1235_v16  ;;  %v1257_v46 = vld [vmem:[%s1543_s1 + $0x108] sm:$0xff]   ;;  %v1265_v54 = vld [vmem:[%s1543_s1 + $0x118] sm:$0xff]   ;;  %v1267_v56 = vld [vmem:[%s1543_s1 + $0x160] sm:$0xff]  }
  0x16   : > { %1153 = vmatprep.subr.bf16.mxu1 %v1236_v17  ;;  %822 = vmatprep.mubr.bf16.mxu1 %v1042_v39  ;;  %v1258_v47 = vld [vmem:[%s1543_s1 + $0x188] sm:$0xff]   ;;  %v1266_v55 = vld [vmem:[%s1543_s1 + $0x198] sm:$0xff]   ;;  %v1268_v57 = vld [vmem:[%s1543_s1 + $0x1e0] sm:$0xff]  }
  0x17   : > { %v1269_v58 = vld [vmem:[%s1543_s1 + $0x120] sm:$0xff]   ;;  %v1271_v60 = vld [vmem:[%s1543_s1 + $0x168] sm:$0xff]   ;;  %v1275_v0 = vld [vmem:[%s1543_s1 + $0x170] sm:$0xff]  }
  0x18   : > { %1132 = vmatpush3.bf16.msra.mxu0 %v1237_v18  ;;  %v1270_v59 = vld [vmem:[%s1543_s1 + $0x1a0] sm:$0xff]   ;;  %v1272_v61 = vld [vmem:[%s1543_s1 + $0x1e8] sm:$0xff]   ;;  %v1276_v1 = vld [vmem:[%s1543_s1 + $0x1f0] sm:$0xff]  }
  0x19   : > { %1154 = vmatpush3.bf16.msra.mxu1 %v1238_v19  ;;  %1133 = vmatprep.subr.bf16.mxu0 %v1239_v20  ;;  %v1273_v62 = vld [vmem:[%s1543_s1 + $0x128] sm:$0xff]   ;;  %v1277_v2 = vld [vmem:[%s1543_s1 + $0x130] sm:$0xff]   ;;  %v1279_v4 = vld [vmem:[%s1543_s1 + $0x178] sm:$0xff]  }
  0x1a   : > { %1155 = vmatprep.subr.bf16.mxu1 %v1240_v21  ;;  %v1274_v63 = vld [vmem:[%s1543_s1 + $0x1a8] sm:$0xff]   ;;  %v1278_v3 = vld [vmem:[%s1543_s1 + $0x1b0] sm:$0xff]   ;;  %v1280_v5 = vld [vmem:[%s1543_s1 + $0x1f8] sm:$0xff]  }
  0x1b   : > { %v1281_v6 = vld [vmem:[%s1543_s1 + $0x138] sm:$0xff]   ;;  %v191_v8 = vld [vmem:[%s1418_s29 + $0x10] sm:$0xff] }
  0x1c   : > { %1134 = vmatpush3.bf16.msra.mxu0 %v1241_v22  ;;  %v1282_v7 = vld [vmem:[%s1543_s1 + $0x1b8] sm:$0xff]   ;;  %v195_v9 = vld [vmem:[%s1418_s29 + $0x30] sm:$0xff] }
  0x1d   : > { %1156 = vmatpush3.bf16.msra.mxu1 %v1242_v23  ;;  %1135 = vmatprep.subr.bf16.mxu0 %v1243_v24  ;;  %v1043_v10 = vcombine.low %v191_v8, %v195_v9  ;;  %v1044_v11 = vcombine.high %v191_v8, %v195_v9  ;;  %v192_v12 = vld [vmem:[%s1418_s29 + $0x18] sm:$0xff] }
  0x1e   : > { %1157 = vmatprep.subr.bf16.mxu1 %v1244_v25  ;;  %v196_v13 = vld [vmem:[%s1418_s29 + $0x38] sm:$0xff]  ;;  %s1037_s29 = sshll.u32 %s1547_s21, 2 }
  0x1f   : > { %v1045_v14 = vcombine.low %v192_v12, %v196_v13  ;;  %v1046_v15 = vcombine.high %v192_v12, %v196_v13  ;;  %s182_s4 = scalar_lea.vmem %s1544_s2, %s1037_s29 }
  0x20   : > { %1136 = vmatpush3.bf16.msra.mxu0 %v1245_v26 }
  0x21   : > { %1158 = vmatpush3.bf16.msra.mxu1 %v1246_v27  ;;  %1137 = vmatprep.subr.bf16.mxu0 %v1247_v28 }
  0x22   : > { %1159 = vmatprep.subr.bf16.mxu1 %v1248_v29 }
  0x24   : > { %1138 = vmatpush3.bf16.msra.mxu0 %v1249_v30 }
  0x25   : > { %1160 = vmatpush3.bf16.msra.mxu1 %v1250_v31  ;;  %1167 = vmatprep.subr.bf16.mxu0 %v1251_v40 }
  0x26   : > { %1189 = vmatprep.subr.bf16.mxu1 %v1252_v41 }
  0x27   : > { %782 = vmatmul.mubr.bf16.vlgmr.msra.gmra.mrb[0].mxu0 %v1039_v35 }
  0x28   : > { %823 = vmatmul.mubr.bf16.vlgmr.msra.gmra.mrb[0].mxu1 %v1041_v38  ;;  %1168 = vmatpush3.bf16.msra.mxu0 %v1253_v42 }
  0x29   : > { %1190 = vmatpush3.bf16.msra.mxu1 %v1254_v43  ;;  %1169 = vmatprep.subr.bf16.mxu0 %v1255_v44 }
  0x2a   : > { %1191 = vmatprep.subr.bf16.mxu1 %v1256_v45  ;;  %863 = vmatprep.mubr.bf16.mxu0 %v1044_v11 }
  0x2b   : > { %904 = vmatprep.mubr.bf16.mxu1 %v1046_v15 }
  0x2c   : > { %1170 = vmatpush3.bf16.msra.mxu0 %v1257_v46 }
  0x2d   : > { %1192 = vmatpush3.bf16.msra.mxu1 %v1258_v47  ;;  %1171 = vmatprep.subr.bf16.mxu0 %v1259_v48 }
  0x2e   : > { %1193 = vmatprep.subr.bf16.mxu1 %v1260_v49 }
  0x30   : > { %1172 = vmatpush3.bf16.msra.mxu0 %v1261_v50 }
  0x31   : > { %1194 = vmatpush3.bf16.msra.mxu1 %v1262_v51  ;;  %1173 = vmatprep.subr.bf16.mxu0 %v1263_v52 }
  0x32   : > { %1195 = vmatprep.subr.bf16.mxu1 %v1264_v53 }
  0x34   : > { %1174 = vmatpush3.bf16.msra.mxu0 %v1265_v54 }
  0x35   : > { %1196 = vmatpush3.bf16.msra.mxu1 %v1266_v55  ;;  %1175 = vmatprep.subr.bf16.mxu0 %v1267_v56 }
  0x36   : > { %1197 = vmatprep.subr.bf16.mxu1 %v1268_v57 }
  0x38   : > { %1176 = vmatpush3.bf16.msra.mxu0 %v1269_v58 }
  0x39   : > { %1198 = vmatpush3.bf16.msra.mxu1 %v1270_v59  ;;  %1177 = vmatprep.subr.bf16.mxu0 %v1271_v60 }
  0x3a   : > { %1199 = vmatprep.subr.bf16.mxu1 %v1272_v61 }
  0x3c   : > { %1178 = vmatpush3.bf16.msra.mxu0 %v1273_v62 }
  0x3d   : > { %1200 = vmatpush3.bf16.msra.mxu1 %v1274_v63  ;;  %1179 = vmatprep.subr.bf16.mxu0 %v1275_v0 }
  0x3e   : > { %1201 = vmatprep.subr.bf16.mxu1 %v1276_v1 }
  0x40   : > { %1180 = vmatpush3.bf16.msra.mxu0 %v1277_v2 }
  0x41   : > { %1202 = vmatpush3.bf16.msra.mxu1 %v1278_v3  ;;  %1181 = vmatprep.subr.bf16.mxu0 %v1279_v4 }
  0x42   : > { %1203 = vmatprep.subr.bf16.mxu1 %v1280_v5 }
  0x44   : > { %1182 = vmatpush3.bf16.msra.mxu0 %v1281_v6 }
  0x45   : > { %1204 = vmatpush3.bf16.msra.mxu1 %v1282_v7 }
  0x47   : > { %864 = vmatmul.mubr.bf16.vlgmr.msra.gmra.mrb[4].mxu0 %v1043_v10 }
  0x48   : > { %905 = vmatmul.mubr.bf16.vlgmr.msra.gmra.mrb[4].mxu1 %v1045_v14 }
  0xfa   : > { %v1139_v16 = vpop.f32.mrb[0].mxu0 }
  0xfb   : > { %v1161_v17 = vpop.f32.mrb[0].mxu1  ;;  %v1140_v18 = vpop.f32.mrb[1].mxu0 }
  0xfc   : > { %v1141_v19 = vadd.f32 %v1140_v18, %v1139_v16  ;;  %v1162_v20 = vpop.f32.mrb[1].mxu1  ;;  %v1142_v21 = vpop.f32.mrb[2].mxu0 }
  0xfd   : > { %v1163_v22 = vadd.f32 %v1162_v20, %v1161_v17  ;;  %v1164_v23 = vpop.f32.mrb[2].mxu1  ;;  %v1143_v24 = vpop.f32.mrb[3].mxu0 }
  0xfe   : > { %v1144_v25 = vadd.f32 %v1143_v24, %v1142_v21  ;;  %v1165_v26 = vpop.f32.mrb[3].mxu1 }
  0xff   : > { %v825_v27 = vadd.f32 %v1163_v22, %v1141_v19  ;;  %v1166_v28 = vadd.f32 %v1165_v26, %v1164_v23 }
 0x101   : > { %v828_v29 = vadd.f32 %v1166_v28, %v1144_v25 }
 0x11a   : > { %v1183_v30 = vpop.f32.mrb[4].mxu0 }
 0x11b   : > { %v1205_v31 = vpop.f32.mrb[4].mxu1  ;;  %v1184_v32 = vpop.f32.mrb[5].mxu0 }
 0x11c   : > { %v1185_v33 = vadd.f32 %v1184_v32, %v1183_v30  ;;  %v1206_v34 = vpop.f32.mrb[5].mxu1  ;;  %v1186_v35 = vpop.f32.mrb[6].mxu0 }
 0x11d   : > { %v1207_v36 = vadd.f32 %v1206_v34, %v1205_v31  ;;  %v1208_v37 = vpop.f32.mrb[6].mxu1  ;;  %v1187_v38 = vpop.f32.mrb[7].mxu0 }
 0x11e   : > { %v866_v39 = vadd.f32 %v1185_v33, %v825_v27  ;;  %v1188_v40 = vadd.f32 %v1187_v38, %v1186_v35  ;;  %v1209_v41 = vpop.f32.mrb[7].mxu1 }
 0x11f   : > { %v1210_v42 = vadd.f32 %v1209_v41, %v1208_v37 }
 0x120   : > { %v907_v43 = vadd.f32 %v1207_v36, %v866_v39  ;;  %v869_v44 = vadd.f32 %v1188_v40, %v828_v29 }
 0x122   : > { %v910_v45 = vadd.f32 %v1210_v42, %v869_v44  ;;  %v921_v46 = vmul.f32 %v907_v43, %v907_v43 }
 0x124   : > { %v913_v47 = vadd.f32 %v910_v45, %v907_v43  ;;  %v922_v48 = vmul.f32 %v910_v45, %v910_v45  ;;  %v1121_v49 = vpack.c.bf16 %v910_v45, %v907_v43 }
 0x126   : > { %v914_v50 = vrot.slane %v913_v47, 4  ;;  %v923_v51 = vadd.f32 %v922_v48, %v921_v46  ;;  %1122 = vst [vmem:[%s182_s4] sm:$0xff] %v1121_v49  }
 0x128   : > { %v915_v52 = vadd.f32 %v914_v50, %v913_v47  ;;  %v924_v53 = vrot.slane %v923_v51, 4 }
 0x12a   : > { %v916_v54 = vrot.slane %v915_v52, 2  ;;  %v925_v55 = vadd.f32 %v924_v53, %v923_v51 }
 0x12c   : > { %v917_v56 = vadd.f32 %v916_v54, %v915_v52  ;;  %v926_v57 = vrot.slane %v925_v55, 2 }
 0x12e   : > { %v918_v58 = vrot.slane %v917_v56, 1  ;;  %v927_v59 = vadd.f32 %v926_v57, %v925_v55 }
 0x130   : > { %v919_v60 = vadd.f32 %v918_v58, %v917_v56  ;;  %v928_v61 = vrot.slane %v927_v59, 1 }
 0x132   : > { %920 = vst [vmem:[%s187_s7] sm:$0x1] %v919_v60  ;;  %v929_v62 = vadd.f32 %v928_v61, %v927_v59 }
 0x134   : > { %930 = vst [vmem:[%s187_s7 + $0x1] sm:$0x1] %v929_v62 }
 0x135 PF: > { %s14_s12 = sadd.s32 1, %s1289_s12  }
 0x136   : > { %p11_p5 = scmp.ge.s32.totalorder %s14_s12, 4  }
 0x138   :  { %13 = sbr.rel (!%p11_p5) target bundleno = 1 (0x1), region = 70 }

// kernel: sdf_encoder_forward.9
= control target key start
LH: loop header
LB: loop body
LE: loop exit
PB: predicated region body
PF: predicated region fallthrough
CT: control target
= control target key end

     0   :  { %vm2054_vm0 = vmmov 0   ;;  %s2518_s1 = inlined_call_operand.vmem [shape: bf16[2048,128], index: 1, kind: input, shape index: {}]   ;;  %s2519_s0 = inlined_call_operand.vmem [shape: bf16[8,2048], index: 0, kind: input, shape index: {}]   ;;  %s2520_s2 = inlined_call_operand.vmem [shape: bf16[128,128], index: 2, kind: input, shape index: {}]   ;;  %s2521_s3 = inlined_call_operand.vmem [shape: f32[8,128], index: 3, kind: input, shape index: {}]   ;;  %s2522_s4 = inlined_call_operand.vmem [shape: f32[8,128], index: 4, kind: output, shape index: {}]  }
   0x1   :  { %v1901_v0 = vld [vmem:[%s2518_s1 + $0x40] sm:$0xff]   ;;  %v1905_v4 = vld [vmem:[%s2518_s1 + $0x48] sm:$0xff]   ;;  %v1909_v8 = vld [vmem:[%s2518_s1 + $0x50] sm:$0xff]  }
   0x2   :  { %v1902_v1 = vld [vmem:[%s2518_s1 + $0xc0] sm:$0xff]   ;;  %1694 = vmatprep.subr.bf16.mxu0 %v1901_v0  ;;  %v1906_v5 = vld [vmem:[%s2518_s1 + $0xc8] sm:$0xff]   ;;  %v1910_v9 = vld [vmem:[%s2518_s1 + $0xd0] sm:$0xff]  }
   0x3   :  { %v1903_v2 = vld [vmem:[%s2518_s1] sm:$0xff]   ;;  %1716 = vmatprep.subr.bf16.mxu1 %v1902_v1  ;;  %v1907_v6 = vld [vmem:[%s2518_s1 + $0x8] sm:$0xff]   ;;  %v1911_v10 = vld [vmem:[%s2518_s1 + $0x10] sm:$0xff]  }
   0x4   :  { %v1904_v3 = vld [vmem:[%s2518_s1 + $0x80] sm:$0xff]   ;;  %1695 = vmatpush3.bf16.msra.mxu0 %v1903_v2  ;;  %v1908_v7 = vld [vmem:[%s2518_s1 + $0x88] sm:$0xff]   ;;  %v1912_v11 = vld [vmem:[%s2518_s1 + $0x90] sm:$0xff]  }
   0x5   :  { %1717 = vmatpush3.bf16.msra.mxu1 %v1904_v3  ;;  %1696 = vmatprep.subr.bf16.mxu0 %v1905_v4  ;;  %v1913_v12 = vld [vmem:[%s2518_s1 + $0x58] sm:$0xff]   ;;  %v1917_v16 = vld [vmem:[%s2518_s1 + $0x60] sm:$0xff]   ;;  %v1921_v20 = vld [vmem:[%s2518_s1 + $0x68] sm:$0xff]  }
   0x6   :  { %1718 = vmatprep.subr.bf16.mxu1 %v1906_v5  ;;  %v1914_v13 = vld [vmem:[%s2518_s1 + $0xd8] sm:$0xff]   ;;  %v1918_v17 = vld [vmem:[%s2518_s1 + $0xe0] sm:$0xff]   ;;  %v1922_v21 = vld [vmem:[%s2518_s1 + $0xe8] sm:$0xff]  }
   0x7   :  { %v1915_v14 = vld [vmem:[%s2518_s1 + $0x18] sm:$0xff]   ;;  %v1919_v18 = vld [vmem:[%s2518_s1 + $0x20] sm:$0xff]   ;;  %v1923_v22 = vld [vmem:[%s2518_s1 + $0x28] sm:$0xff]  }
   0x8   :  { %1697 = vmatpush3.bf16.msra.mxu0 %v1907_v6  ;;  %v1916_v15 = vld [vmem:[%s2518_s1 + $0x98] sm:$0xff]   ;;  %v1920_v19 = vld [vmem:[%s2518_s1 + $0xa0] sm:$0xff]   ;;  %v1924_v23 = vld [vmem:[%s2518_s1 + $0xa8] sm:$0xff]  }
   0x9   :  { %1719 = vmatpush3.bf16.msra.mxu1 %v1908_v7  ;;  %1698 = vmatprep.subr.bf16.mxu0 %v1909_v8  ;;  %v1925_v24 = vld [vmem:[%s2518_s1 + $0x70] sm:$0xff]   ;;  %v1929_v28 = vld [vmem:[%s2518_s1 + $0x78] sm:$0xff]   ;;  %v18_v32 = vld [vmem:[%s2519_s0] sm:$0xff] }
   0xa   :  { %1720 = vmatprep.subr.bf16.mxu1 %v1910_v9  ;;  %v1926_v25 = vld [vmem:[%s2518_s1 + $0xf0] sm:$0xff]   ;;  %v1930_v29 = vld [vmem:[%s2518_s1 + $0xf8] sm:$0xff]   ;;  %v19_v33 = vld [vmem:[%s2519_s0 + $0x8] sm:$0xff]  ;;  %v1541_v34 = vcombine.low %v18_v32, %v18_v32  ;;  %v1542_v35 = vcombine.high %v18_v32, %v18_v32 }
   0xb   :  { %v1927_v26 = vld [vmem:[%s2518_s1 + $0x30] sm:$0xff]   ;;  %v1931_v30 = vld [vmem:[%s2518_s1 + $0x38] sm:$0xff]   ;;  %v1543_v36 = vcombine.low %v19_v33, %v19_v33  ;;  %v1544_v37 = vcombine.high %v19_v33, %v19_v33  ;;  %v1937_v38 = vld [vmem:[%s2518_s1 + $0x140] sm:$0xff]  }
   0xc   :  { %1699 = vmatpush3.bf16.msra.mxu0 %v1911_v10  ;;  %v1928_v27 = vld [vmem:[%s2518_s1 + $0xb0] sm:$0xff]   ;;  %v1932_v31 = vld [vmem:[%s2518_s1 + $0xb8] sm:$0xff]   ;;  %v1938_v39 = vld [vmem:[%s2518_s1 + $0x1c0] sm:$0xff]   ;;  %1138 = vmatprep.mubr.bf16.mxu0 %v1542_v35 }
   0xd   :  { %1721 = vmatpush3.bf16.msra.mxu1 %v1912_v11  ;;  %1700 = vmatprep.subr.bf16.mxu0 %v1913_v12  ;;  %v1939_v40 = vld [vmem:[%s2518_s1 + $0x100] sm:$0xff]   ;;  %v1941_v42 = vld [vmem:[%s2518_s1 + $0x148] sm:$0xff]   ;;  %v1945_v46 = vld [vmem:[%s2518_s1 + $0x150] sm:$0xff]  }
   0xe   :  { %1722 = vmatprep.subr.bf16.mxu1 %v1914_v13  ;;  %1178 = vmatprep.mubr.bf16.mxu1 %v1544_v37  ;;  %v1940_v41 = vld [vmem:[%s2518_s1 + $0x180] sm:$0xff]   ;;  %v1942_v43 = vld [vmem:[%s2518_s1 + $0x1c8] sm:$0xff]   ;;  %v1946_v47 = vld [vmem:[%s2518_s1 + $0x1d0] sm:$0xff]  }
   0xf   :  { %v1943_v44 = vld [vmem:[%s2518_s1 + $0x108] sm:$0xff]   ;;  %v1947_v48 = vld [vmem:[%s2518_s1 + $0x110] sm:$0xff]   ;;  %v1949_v50 = vld [vmem:[%s2518_s1 + $0x158] sm:$0xff]  }
  0x10   :  { %1701 = vmatpush3.bf16.msra.mxu0 %v1915_v14  ;;  %v1944_v45 = vld [vmem:[%s2518_s1 + $0x188] sm:$0xff]   ;;  %v1948_v49 = vld [vmem:[%s2518_s1 + $0x190] sm:$0xff]   ;;  %v1950_v51 = vld [vmem:[%s2518_s1 + $0x1d8] sm:$0xff]  }
  0x11   :  { %1723 = vmatpush3.bf16.msra.mxu1 %v1916_v15  ;;  %1702 = vmatprep.subr.bf16.mxu0 %v1917_v16  ;;  %v1951_v52 = vld [vmem:[%s2518_s1 + $0x118] sm:$0xff]   ;;  %v1953_v54 = vld [vmem:[%s2518_s1 + $0x160] sm:$0xff]   ;;  %v1957_v58 = vld [vmem:[%s2518_s1 + $0x168] sm:$0xff]  }
  0x12   :  { %1724 = vmatprep.subr.bf16.mxu1 %v1918_v17  ;;  %v1952_v53 = vld [vmem:[%s2518_s1 + $0x198] sm:$0xff]   ;;  %v1954_v55 = vld [vmem:[%s2518_s1 + $0x1e0] sm:$0xff]   ;;  %v1958_v59 = vld [vmem:[%s2518_s1 + $0x1e8] sm:$0xff]  }
  0x13   :  { %v1955_v56 = vld [vmem:[%s2518_s1 + $0x120] sm:$0xff]   ;;  %v1959_v60 = vld [vmem:[%s2518_s1 + $0x128] sm:$0xff]   ;;  %v1961_v62 = vld [vmem:[%s2518_s1 + $0x170] sm:$0xff]  }
  0x14   :  { %1703 = vmatpush3.bf16.msra.mxu0 %v1919_v18  ;;  %v1956_v57 = vld [vmem:[%s2518_s1 + $0x1a0] sm:$0xff]   ;;  %v1960_v61 = vld [vmem:[%s2518_s1 + $0x1a8] sm:$0xff]   ;;  %v1962_v63 = vld [vmem:[%s2518_s1 + $0x1f0] sm:$0xff]  }
  0x15   :  { %1725 = vmatpush3.bf16.msra.mxu1 %v1920_v19  ;;  %1704 = vmatprep.subr.bf16.mxu0 %v1921_v20  ;;  %v1963_v0 = vld [vmem:[%s2518_s1 + $0x130] sm:$0xff]   ;;  %v1965_v2 = vld [vmem:[%s2518_s1 + $0x178] sm:$0xff]   ;;  %v1973_v12 = vld [vmem:[%s2518_s1 + $0x240] sm:$0xff]  }
  0x16   :  { %1726 = vmatprep.subr.bf16.mxu1 %v1922_v21  ;;  %v1964_v1 = vld [vmem:[%s2518_s1 + $0x1b0] sm:$0xff]   ;;  %v1966_v3 = vld [vmem:[%s2518_s1 + $0x1f8] sm:$0xff]   ;;  %v1974_v13 = vld [vmem:[%s2518_s1 + $0x2c0] sm:$0xff]  }
  0x17   :  { %v1967_v4 = vld [vmem:[%s2518_s1 + $0x138] sm:$0xff]   ;;  %v20_v6 = vld [vmem:[%s2519_s0 + $0x10] sm:$0xff]  ;;  %v1975_v14 = vld [vmem:[%s2518_s1 + $0x200] sm:$0xff]  }
  0x18   :  { %1705 = vmatpush3.bf16.msra.mxu0 %v1923_v22  ;;  %v1968_v5 = vld [vmem:[%s2518_s1 + $0x1b8] sm:$0xff]   ;;  %v1545_v7 = vcombine.low %v20_v6, %v20_v6  ;;  %v1546_v8 = vcombine.high %v20_v6, %v20_v6  ;;  %v1976_v15 = vld [vmem:[%s2518_s1 + $0x280] sm:$0xff]   ;;  %v1977_v16 = vld [vmem:[%s2518_s1 + $0x248] sm:$0xff]  }
  0x19   :  { %1727 = vmatpush3.bf16.msra.mxu1 %v1924_v23  ;;  %1706 = vmatprep.subr.bf16.mxu0 %v1925_v24  ;;  %v21_v9 = vld [vmem:[%s2519_s0 + $0x18] sm:$0xff]  ;;  %v1978_v17 = vld [vmem:[%s2518_s1 + $0x2c8] sm:$0xff]   ;;  %v1981_v20 = vld [vmem:[%s2518_s1 + $0x250] sm:$0xff]  }
  0x1a   :  { %1728 = vmatprep.subr.bf16.mxu1 %v1926_v25  ;;  %v1547_v10 = vcombine.low %v21_v9, %v21_v9  ;;  %v1548_v11 = vcombine.high %v21_v9, %v21_v9  ;;  %v1979_v18 = vld [vmem:[%s2518_s1 + $0x208] sm:$0xff]   ;;  %v1982_v21 = vld [vmem:[%s2518_s1 + $0x2d0] sm:$0xff]   ;;  %v1985_v24 = vld [vmem:[%s2518_s1 + $0x258] sm:$0xff]  }
  0x1b   :  { %v1980_v19 = vld [vmem:[%s2518_s1 + $0x288] sm:$0xff]   ;;  %v1983_v22 = vld [vmem:[%s2518_s1 + $0x210] sm:$0xff]   ;;  %v1986_v25 = vld [vmem:[%s2518_s1 + $0x2d8] sm:$0xff]  }
  0x1c   :  { %1707 = vmatpush3.bf16.msra.mxu0 %v1927_v26  ;;  %v1984_v23 = vld [vmem:[%s2518_s1 + $0x290] sm:$0xff]   ;;  %v1987_v26 = vld [vmem:[%s2518_s1 + $0x218] sm:$0xff]   ;;  %v1993_v32 = vld [vmem:[%s2518_s1 + $0x268] sm:$0xff]  }
  0x1d   :  { %1729 = vmatpush3.bf16.msra.mxu1 %v1928_v27  ;;  %1708 = vmatprep.subr.bf16.mxu0 %v1929_v28  ;;  %v1988_v27 = vld [vmem:[%s2518_s1 + $0x298] sm:$0xff]   ;;  %v1989_v28 = vld [vmem:[%s2518_s1 + $0x260] sm:$0xff]   ;;  %v1994_v33 = vld [vmem:[%s2518_s1 + $0x2e8] sm:$0xff]  }
  0x1e   :  { %1730 = vmatprep.subr.bf16.mxu1 %v1930_v29  ;;  %v1990_v29 = vld [vmem:[%s2518_s1 + $0x2e0] sm:$0xff]   ;;  %v1996_v35 = vld [vmem:[%s2518_s1 + $0x2a8] sm:$0xff]   ;;  %v1998_v37 = vld [vmem:[%s2518_s1 + $0x2f0] sm:$0xff]  }
  0x1f   :  { %v2029_v6 = vld [vmem:[%s2518_s1 + $0x368] sm:$0xff]  }
  0x20   :  { %1709 = vmatpush3.bf16.msra.mxu0 %v1931_v30  ;;  %v1991_v30 = vld [vmem:[%s2518_s1 + $0x220] sm:$0xff]   ;;  %v2032_v9 = vld [vmem:[%s2518_s1 + $0x3a8] sm:$0xff]  }
  0x21   :  { %1731 = vmatpush3.bf16.msra.mxu1 %v1932_v31  ;;  %1738 = vmatprep.subr.bf16.mxu0 %v1937_v38  ;;  %v1992_v31 = vld [vmem:[%s2518_s1 + $0x2a0] sm:$0xff]   ;;  %v1999_v38 = vld [vmem:[%s2518_s1 + $0x230] sm:$0xff]  }
  0x22   :  { %1760 = vmatprep.subr.bf16.mxu1 %v1938_v39  ;;  %v2000_v39 = vld [vmem:[%s2518_s1 + $0x2b0] sm:$0xff]  }
  0x23   :  { %1139 = vmatmul.mubr.bf16.vlgmr.msra.gmra.mrb[0].mxu0 %v1541_v34  ;;  %v1995_v34 = vld [vmem:[%s2518_s1 + $0x228] sm:$0xff]  }
  0x24   :  { %1179 = vmatmul.mubr.bf16.vlgmr.msra.gmra.mrb[0].mxu1 %v1543_v36  ;;  %1739 = vmatpush3.bf16.msra.mxu0 %v1939_v40  ;;  %v1997_v36 = vld [vmem:[%s2518_s1 + $0x270] sm:$0xff]   ;;  %v2001_v40 = vld [vmem:[%s2518_s1 + $0x278] sm:$0xff]  }
  0x25   :  { %1761 = vmatpush3.bf16.msra.mxu1 %v1940_v41  ;;  %1740 = vmatprep.subr.bf16.mxu0 %v1941_v42  ;;  %v2002_v41 = vld [vmem:[%s2518_s1 + $0x2f8] sm:$0xff]  }
  0x26   :  { %1762 = vmatprep.subr.bf16.mxu1 %v1942_v43  ;;  %1218 = vmatprep.mubr.bf16.mxu0 %v1546_v8  ;;  %v2003_v42 = vld [vmem:[%s2518_s1 + $0x238] sm:$0xff]   ;;  %v2031_v8 = vld [vmem:[%s2518_s1 + $0x328] sm:$0xff]  }
  0x27   :  { %1258 = vmatprep.mubr.bf16.mxu1 %v1548_v11  ;;  %v2004_v43 = vld [vmem:[%s2518_s1 + $0x2b8] sm:$0xff]   ;;  %v2034_v11 = vld [vmem:[%s2518_s1 + $0x3f0] sm:$0xff]  }
  0x28   :  { %1741 = vmatpush3.bf16.msra.mxu0 %v1943_v44  ;;  %v22_v44 = vld [vmem:[%s2519_s0 + $0x20] sm:$0xff] }
  0x29   :  { %1763 = vmatpush3.bf16.msra.mxu1 %v1944_v45  ;;  %1742 = vmatprep.subr.bf16.mxu0 %v1945_v46  ;;  %v23_v45 = vld [vmem:[%s2519_s0 + $0x28] sm:$0xff]  ;;  %v1549_v46 = vcombine.low %v22_v44, %v22_v44 }
  0x2a   :  { %1764 = vmatprep.subr.bf16.mxu1 %v1946_v47  ;;  %v1550_v47 = vcombine.high %v22_v44, %v22_v44 }
  0x2c   :  { %1743 = vmatpush3.bf16.msra.mxu0 %v1947_v48  ;;  %v1551_v48 = vcombine.low %v23_v45, %v23_v45 }
  0x2d   :  { %1765 = vmatpush3.bf16.msra.mxu1 %v1948_v49  ;;  %1744 = vmatprep.subr.bf16.mxu0 %v1949_v50  ;;  %v1552_v49 = vcombine.high %v23_v45, %v23_v45  ;;  %v2009_v50 = vld [vmem:[%s2518_s1 + $0x340] sm:$0xff]  }
  0x2e   :  { %1766 = vmatprep.subr.bf16.mxu1 %v1950_v51  ;;  %v2010_v51 = vld [vmem:[%s2518_s1 + $0x3c0] sm:$0xff]  }
  0x30   :  { %1745 = vmatpush3.bf16.msra.mxu0 %v1951_v52  ;;  %v2011_v52 = vld [vmem:[%s2518_s1 + $0x300] sm:$0xff]  }
  0x31   :  { %1767 = vmatpush3.bf16.msra.mxu1 %v1952_v53  ;;  %1746 = vmatprep.subr.bf16.mxu0 %v1953_v54  ;;  %v2012_v53 = vld [vmem:[%s2518_s1 + $0x380] sm:$0xff]   ;;  %v2013_v54 = vld [vmem:[%s2518_s1 + $0x348] sm:$0xff]  }
  0x32   :  { %1768 = vmatprep.subr.bf16.mxu1 %v1954_v55  ;;  %v2014_v55 = vld [vmem:[%s2518_s1 + $0x3c8] sm:$0xff]  }
  0x34   :  { %1747 = vmatpush3.bf16.msra.mxu0 %v1955_v56  ;;  %v2015_v56 = vld [vmem:[%s2518_s1 + $0x308] sm:$0xff]  }
  0x35   :  { %1769 = vmatpush3.bf16.msra.mxu1 %v1956_v57  ;;  %1748 = vmatprep.subr.bf16.mxu0 %v1957_v58  ;;  %v2016_v57 = vld [vmem:[%s2518_s1 + $0x388] sm:$0xff]   ;;  %v2017_v58 = vld [vmem:[%s2518_s1 + $0x350] sm:$0xff]  }
  0x36   :  { %1770 = vmatprep.subr.bf16.mxu1 %v1958_v59  ;;  %v2018_v59 = vld [vmem:[%s2518_s1 + $0x3d0] sm:$0xff]  }
  0x38   :  { %1749 = vmatpush3.bf16.msra.mxu0 %v1959_v60  ;;  %v2019_v60 = vld [vmem:[%s2518_s1 + $0x310] sm:$0xff]  }
  0x39   :  { %1771 = vmatpush3.bf16.msra.mxu1 %v1960_v61  ;;  %1750 = vmatprep.subr.bf16.mxu0 %v1961_v62  ;;  %v2020_v61 = vld [vmem:[%s2518_s1 + $0x390] sm:$0xff]   ;;  %v2021_v62 = vld [vmem:[%s2518_s1 + $0x358] sm:$0xff]  }
  0x3a   :  { %1772 = vmatprep.subr.bf16.mxu1 %v1962_v63  ;;  %v2022_v63 = vld [vmem:[%s2518_s1 + $0x3d8] sm:$0xff]  }
  0x3c   :  { %1751 = vmatpush3.bf16.msra.mxu0 %v1963_v0  ;;  %v2023_v0 = vld [vmem:[%s2518_s1 + $0x318] sm:$0xff]  }
  0x3d   :  { %1773 = vmatpush3.bf16.msra.mxu1 %v1964_v1  ;;  %1752 = vmatprep.subr.bf16.mxu0 %v1965_v2  ;;  %v2024_v1 = vld [vmem:[%s2518_s1 + $0x398] sm:$0xff]   ;;  %v2025_v2 = vld [vmem:[%s2518_s1 + $0x360] sm:$0xff]  }
  0x3e   :  { %1774 = vmatprep.subr.bf16.mxu1 %v1966_v3  ;;  %v2026_v3 = vld [vmem:[%s2518_s1 + $0x3e0] sm:$0xff]  }
  0x40   :  { %1753 = vmatpush3.bf16.msra.mxu0 %v1967_v4  ;;  %v2027_v4 = vld [vmem:[%s2518_s1 + $0x320] sm:$0xff]  }
  0x41   :  { %1775 = vmatpush3.bf16.msra.mxu1 %v1968_v5  ;;  %1782 = vmatprep.subr.bf16.mxu0 %v1973_v12  ;;  %v2028_v5 = vld [vmem:[%s2518_s1 + $0x3a0] sm:$0xff]   ;;  %v2035_v12 = vld [vmem:[%s2518_s1 + $0x330] sm:$0xff]  }
  0x42   :  { %1804 = vmatprep.subr.bf16.mxu1 %v1974_v13  ;;  %v2036_v13 = vld [vmem:[%s2518_s1 + $0x3b0] sm:$0xff]  }
  0x43   :  { %1219 = vmatmul.mubr.bf16.vlgmr.msra.gmra.mrb[4].mxu0 %v1545_v7  ;;  %v2030_v7 = vld [vmem:[%s2518_s1 + $0x3e8] sm:$0xff]  }
  0x44   :  { %1259 = vmatmul.mubr.bf16.vlgmr.msra.gmra.mrb[4].mxu1 %v1547_v10  ;;  %1783 = vmatpush3.bf16.msra.mxu0 %v1975_v14  ;;  %v2033_v10 = vld [vmem:[%s2518_s1 + $0x370] sm:$0xff]   ;;  %v2037_v14 = vld [vmem:[%s2518_s1 + $0x378] sm:$0xff]  }
  0x45   :  { %1805 = vmatpush3.bf16.msra.mxu1 %v1976_v15  ;;  %1784 = vmatprep.subr.bf16.mxu0 %v1977_v16  ;;  %v2038_v15 = vld [vmem:[%s2518_s1 + $0x3f8] sm:$0xff]  }
  0x46   :  { %1806 = vmatprep.subr.bf16.mxu1 %v1978_v17  ;;  %1298 = vmatprep.mubr.bf16.mxu0 %v1550_v47  ;;  %v2039_v16 = vld [vmem:[%s2518_s1 + $0x338] sm:$0xff]  }
  0x47   :  { %1338 = vmatprep.mubr.bf16.mxu1 %v1552_v49  ;;  %v2040_v17 = vld [vmem:[%s2518_s1 + $0x3b8] sm:$0xff]  }
  0x48   :  { %1785 = vmatpush3.bf16.msra.mxu0 %v1979_v18  ;;  %v24_v18 = vld [vmem:[%s2519_s0 + $0x30] sm:$0xff] }
  0x49   :  { %1807 = vmatpush3.bf16.msra.mxu1 %v1980_v19  ;;  %1786 = vmatprep.subr.bf16.mxu0 %v1981_v20  ;;  %v25_v19 = vld [vmem:[%s2519_s0 + $0x38] sm:$0xff]  ;;  %v1553_v20 = vcombine.low %v24_v18, %v24_v18 }
  0x4a   :  { %1808 = vmatprep.subr.bf16.mxu1 %v1982_v21  ;;  %v1554_v21 = vcombine.high %v24_v18, %v24_v18 }
  0x4c   :  { %1787 = vmatpush3.bf16.msra.mxu0 %v1983_v22  ;;  %v1555_v22 = vcombine.low %v25_v19, %v25_v19 }
  0x4d   :  { %1809 = vmatpush3.bf16.msra.mxu1 %v1984_v23  ;;  %1788 = vmatprep.subr.bf16.mxu0 %v1985_v24  ;;  %v1556_v23 = vcombine.high %v25_v19, %v25_v19  ;;  %v2053_v24 = vmov 0.0  }
  0x4e   :  { %1810 = vmatprep.subr.bf16.mxu1 %v1986_v25  ;;  %v2045_v25 = vld [vmem:[%s2520_s2] sm:$0xff]  }
  0x50   :  { %1789 = vmatpush3.bf16.msra.mxu0 %v1987_v26  ;;  %v2046_v26 = vld [vmem:[%s2520_s2 + $0x8] sm:$0xff]  }
  0x51   :  { %1811 = vmatpush3.bf16.msra.mxu1 %v1988_v27  ;;  %1790 = vmatprep.subr.bf16.mxu0 %v1989_v28  ;;  %v2047_v27 = vld [vmem:[%s2520_s2 + $0x10] sm:$0xff]   ;;  %v2048_v28 = vld [vmem:[%s2520_s2 + $0x18] sm:$0xff]  }
  0x52   :  { %1812 = vmatprep.subr.bf16.mxu1 %v1990_v29  ;;  %v2049_v29 = vld [vmem:[%s2520_s2 + $0x20] sm:$0xff]  }
  0x54   :  { %1791 = vmatpush3.bf16.msra.mxu0 %v1991_v30  ;;  %v2050_v30 = vld [vmem:[%s2520_s2 + $0x28] sm:$0xff]  }
  0x55   :  { %1813 = vmatpush3.bf16.msra.mxu1 %v1992_v31  ;;  %1792 = vmatprep.subr.bf16.mxu0 %v1993_v32  ;;  %v2051_v31 = vld [vmem:[%s2520_s2 + $0x30] sm:$0xff]   ;;  %v2052_v32 = vld [vmem:[%s2520_s2 + $0x38] sm:$0xff]  }
  0x56   :  { %1814 = vmatprep.subr.bf16.mxu1 %v1994_v33 }
  0x58   :  { %1793 = vmatpush3.bf16.msra.mxu0 %v1995_v34 }
  0x59   :  { %1815 = vmatpush3.bf16.msra.mxu1 %v1996_v35  ;;  %1794 = vmatprep.subr.bf16.mxu0 %v1997_v36 }
  0x5a   :  { %1816 = vmatprep.subr.bf16.mxu1 %v1998_v37 }
  0x5c   :  { %1795 = vmatpush3.bf16.msra.mxu0 %v1999_v38 }
  0x5d   :  { %1817 = vmatpush3.bf16.msra.mxu1 %v2000_v39  ;;  %1796 = vmatprep.subr.bf16.mxu0 %v2001_v40 }
  0x5e   :  { %1818 = vmatprep.subr.bf16.mxu1 %v2002_v41 }
  0x60   :  { %1797 = vmatpush3.bf16.msra.mxu0 %v2003_v42 }
  0x61   :  { %1819 = vmatpush3.bf16.msra.mxu1 %v2004_v43  ;;  %1826 = vmatprep.subr.bf16.mxu0 %v2009_v50 }
  0x62   :  { %1848 = vmatprep.subr.bf16.mxu1 %v2010_v51 }
  0x63   :  { %1299 = vmatmul.mubr.bf16.vlgmr.msra.gmra.mrb[8].mxu0 %v1549_v46 }
  0x64   :  { %1339 = vmatmul.mubr.bf16.vlgmr.msra.gmra.mrb[8].mxu1 %v1551_v48  ;;  %1827 = vmatpush3.bf16.msra.mxu0 %v2011_v52 }
  0x65   :  { %1849 = vmatpush3.bf16.msra.mxu1 %v2012_v53  ;;  %1828 = vmatprep.subr.bf16.mxu0 %v2013_v54 }
  0x66   :  { %1850 = vmatprep.subr.bf16.mxu1 %v2014_v55  ;;  %1378 = vmatprep.mubr.bf16.mxu0 %v1554_v21 }
  0x67   :  { %1418 = vmatprep.mubr.bf16.mxu1 %v1556_v23 }
  0x68   :  { %1829 = vmatpush3.bf16.msra.mxu0 %v2015_v56 }
  0x69   :  { %1851 = vmatpush3.bf16.msra.mxu1 %v2016_v57  ;;  %1830 = vmatprep.subr.bf16.mxu0 %v2017_v58 }
  0x6a   :  { %1852 = vmatprep.subr.bf16.mxu1 %v2018_v59 }
  0x6c   :  { %1831 = vmatpush3.bf16.msra.mxu0 %v2019_v60 }
  0x6d   :  { %1853 = vmatpush3.bf16.msra.mxu1 %v2020_v61  ;;  %1832 = vmatprep.subr.bf16.mxu0 %v2021_v62 }
  0x6e   :  { %1854 = vmatprep.subr.bf16.mxu1 %v2022_v63 }
  0x70   :  { %1833 = vmatpush3.bf16.msra.mxu0 %v2023_v0 }
  0x71   :  { %1855 = vmatpush3.bf16.msra.mxu1 %v2024_v1  ;;  %1834 = vmatprep.subr.bf16.mxu0 %v2025_v2 }
  0x72   :  { %1856 = vmatprep.subr.bf16.mxu1 %v2026_v3 }
  0x74   :  { %1835 = vmatpush3.bf16.msra.mxu0 %v2027_v4 }
  0x75   :  { %1857 = vmatpush3.bf16.msra.mxu1 %v2028_v5  ;;  %1836 = vmatprep.subr.bf16.mxu0 %v2029_v6 }
  0x76   :  { %1858 = vmatprep.subr.bf16.mxu1 %v2030_v7 }
  0x78   :  { %1837 = vmatpush3.bf16.msra.mxu0 %v2031_v8 }
  0x79   :  { %1859 = vmatpush3.bf16.msra.mxu1 %v2032_v9  ;;  %1838 = vmatprep.subr.bf16.mxu0 %v2033_v10 }
  0x7a   :  { %1860 = vmatprep.subr.bf16.mxu1 %v2034_v11 }
  0x7c   :  { %1839 = vmatpush3.bf16.msra.mxu0 %v2035_v12 }
  0x7d   :  { %1861 = vmatpush3.bf16.msra.mxu1 %v2036_v13  ;;  %1840 = vmatprep.subr.bf16.mxu0 %v2037_v14 }
  0x7e   :  { %1862 = vmatprep.subr.bf16.mxu1 %v2038_v15 }
  0x80   :  { %1841 = vmatpush3.bf16.msra.mxu0 %v2039_v16 }
  0x81   :  { %1863 = vmatpush3.bf16.msra.mxu1 %v2040_v17  ;;  %1879 = vmatprep.subr.bf16.mxu0 %v2053_v24  ;;  %v1685_v17 = vld [vmem:[%s2521_s3] ss:$0 sm:$0xff] }
  0x83   :  { %1379 = vmatmul.mubr.bf16.vlgmr.msra.gmra.mrb[12].mxu0 %v1553_v20 }
  0x84   :  { %1419 = vmatmul.mubr.bf16.vlgmr.msra.gmra.mrb[12].mxu1 %v1555_v22  ;;  %1880 = vmatpush3.bf16.msra.mxu0 %v2045_v25 }
  0x85   :  { %1881 = vmatprep.subr.bf16.mxu0 %v2053_v24  ;;  %1895 = vmatprep.mubr.msk.bf16.mxu0 %vm2054_vm0, %v2053_v24 }
  0x88   :  { %1882 = vmatpush3.bf16.msra.mxu0 %v2046_v26 }
  0x89   :  { %1883 = vmatprep.subr.bf16.mxu0 %v2053_v24 }
  0x8c   :  { %1884 = vmatpush3.bf16.msra.mxu0 %v2047_v27 }
  0x8d   :  { %1885 = vmatprep.subr.bf16.mxu0 %v2053_v24 }
  0x90   :  { %1886 = vmatpush3.bf16.msra.mxu0 %v2048_v28 }
  0x91   :  { %1887 = vmatprep.subr.bf16.mxu0 %v2053_v24 }
  0x94   :  { %1888 = vmatpush3.bf16.msra.mxu0 %v2049_v29 }
  0x95   :  { %1889 = vmatprep.subr.bf16.mxu0 %v2053_v24 }
  0x98   :  { %1890 = vmatpush3.bf16.msra.mxu0 %v2050_v30 }
  0x99   :  { %1891 = vmatprep.subr.bf16.mxu0 %v2053_v24 }
  0x9c   :  { %1892 = vmatpush3.bf16.msra.mxu0 %v2051_v31 }
  0x9d   :  { %1893 = vmatprep.subr.bf16.mxu0 %v2053_v24 }
  0xa0   :  { %1894 = vmatpush3.bf16.msra.mxu0 %v2052_v32 }
  0xf6   :  { %v1710_v33 = vpop.f32.mrb[0].mxu0 }
  0xf7   :  { %v1732_v34 = vpop.f32.mrb[0].mxu1  ;;  %v1711_v35 = vpop.f32.mrb[1].mxu0 }
  0xf8   :  { %v1733_v36 = vpop.f32.mrb[1].mxu1  ;;  %v1712_v37 = vadd.f32 %v1711_v35, %v1710_v33  ;;  %v1713_v39 = vpop.f32.mrb[2].mxu0 }
  0xf9   :  { %v1734_v38 = vadd.f32 %v1733_v36, %v1732_v34  ;;  %v1735_v40 = vpop.f32.mrb[2].mxu1  ;;  %v1714_v41 = vpop.f32.mrb[3].mxu0 }
  0xfa   :  { %v1736_v42 = vpop.f32.mrb[3].mxu1 }
  0xfb   :  { %v1181_v43 = vadd.f32 %v1734_v38, %v1712_v37 }
 0x116   :  { %v1754_v44 = vpop.f32.mrb[4].mxu0 }
 0x117   :  { %v1776_v45 = vpop.f32.mrb[4].mxu1  ;;  %v1755_v46 = vpop.f32.mrb[5].mxu0 }
 0x118   :  { %v1777_v47 = vpop.f32.mrb[5].mxu1  ;;  %v1756_v48 = vadd.f32 %v1755_v46, %v1754_v44  ;;  %v1757_v50 = vpop.f32.mrb[6].mxu0 }
 0x119   :  { %v1778_v49 = vadd.f32 %v1777_v47, %v1776_v45  ;;  %v1779_v51 = vpop.f32.mrb[6].mxu1  ;;  %v1758_v52 = vpop.f32.mrb[7].mxu0 }
 0x11a   :  { %v1780_v53 = vpop.f32.mrb[7].mxu1  ;;  %v1221_v54 = vadd.f32 %v1756_v48, %v1181_v43 }
 0x11c   :  { %v1261_v55 = vadd.f32 %v1778_v49, %v1221_v54 }
 0x136   :  { %v1798_v56 = vpop.f32.mrb[8].mxu0 }
 0x137   :  { %v1820_v57 = vpop.f32.mrb[8].mxu1  ;;  %v1799_v58 = vpop.f32.mrb[9].mxu0 }
 0x138   :  { %v1800_v59 = vadd.f32 %v1799_v58, %v1798_v56  ;;  %v1821_v60 = vpop.f32.mrb[9].mxu1  ;;  %v1801_v61 = vpop.f32.mrb[10].mxu0 }
 0x139   :  { %v1822_v62 = vadd.f32 %v1821_v60, %v1820_v57  ;;  %v1823_v63 = vpop.f32.mrb[10].mxu1  ;;  %v1802_v0 = vpop.f32.mrb[11].mxu0 }
 0x13a   :  { %v1301_v1 = vadd.f32 %v1800_v59, %v1261_v55  ;;  %v1824_v2 = vpop.f32.mrb[11].mxu1 }
 0x13c   :  { %v1341_v3 = vadd.f32 %v1822_v62, %v1301_v1 }
 0x156   :  { %v1842_v4 = vpop.f32.mrb[12].mxu0 }
 0x157   :  { %v1864_v5 = vpop.f32.mrb[12].mxu1  ;;  %v1843_v6 = vpop.f32.mrb[13].mxu0 }
 0x158   :  { %v1844_v7 = vadd.f32 %v1843_v6, %v1842_v4  ;;  %v1865_v8 = vpop.f32.mrb[13].mxu1  ;;  %v1845_v9 = vpop.f32.mrb[14].mxu0 }
 0x159   :  { %v1866_v10 = vadd.f32 %v1865_v8, %v1864_v5  ;;  %v1867_v11 = vpop.f32.mrb[14].mxu1  ;;  %v1846_v12 = vpop.f32.mrb[15].mxu0 }
 0x15a   :  { %v1381_v13 = vadd.f32 %v1844_v7, %v1341_v3  ;;  %v1868_v14 = vpop.f32.mrb[15].mxu1 }
 0x15c   :  { %v1421_v15 = vadd.f32 %v1866_v10, %v1381_v13 }
 0x15e   :  { %v1426_v16 = vpack.c.bf16 %v1421_v15, %v1421_v15 }
 0x160   :  { %1896 = vmatmul.mubr.bf16.vlgmr.msra.gmra.mrb[16].mxu0 %v1426_v16 }
 0x233   :  { %v1530_v18 = vpop.f32.mrb[16].mxu0 }
 0x234   :  { %v1531_v19 = vadd.f32 %v1685_v17, %v1530_v18  ;;  %v1897_v20 = vpop.f32.mrb[17].mxu0 }
 0x235   :  { %v1533_v21 = vpop.f32.mrb[18].mxu0 }
 0x236   :  { %1536 = vst [vmem:[%s2522_s4] sm:$0xff] %v1531_v19  ;;  %v1898_v22 = vpop.f32.mrb[19].mxu0 }

</bundles_post_ra>
